<compile_context>
chip_gen: v7x
topology: tpu7x:2x2x1
jax: 0.10.0
libtpu: 0.0.40
codegen_flags: <defaults>
</compile_context>

<pallas_src>
import jax
import jax.numpy as jnp
from jax.experimental import pallas as pl
from jax.experimental.pallas import tpu as pltpu


def _make_attention_kernel(num_heads, key_dim, d, nh_kd):
    """Build the per-batch-sample kernel (all heads fused into the body)."""

    def kernel(x_ref, wqkv_ref, bqkv_ref, wp_ref, bp_ref, o_ref):
        f32 = jnp.float32
        bf16 = jnp.bfloat16

        x = x_ref[0]                                                # (C, N)

        # Fused q/k/v projection for all heads: (Ctot, C) @ (C, N) -> (Ctot, N)
        qkv = jnp.dot(wqkv_ref[...], x,
                      preferred_element_type=f32) + bqkv_ref[...]  # (Ctot, N)

        q_all = qkv[:nh_kd, :].astype(bf16)                         # (nh*kd, N)
        k_all = qkv[nh_kd:2 * nh_kd, :]                             # (nh*kd, N) f32
        v_all = qkv[2 * nh_kd:, :].astype(bf16)                     # (nh*d,  N)

        heads = []
        for h in range(num_heads):                                  # nh is small & static
            q_h = q_all[h * key_dim:(h + 1) * key_dim, :]           # (kd, Nq)
            # transpose only the tiny per-head K tile so keys sit on sublanes
            k_t = jnp.transpose(
                k_all[h * key_dim:(h + 1) * key_dim, :]).astype(bf16)   # (Nk, kd)
            v_h = v_all[h * d:(h + 1) * d, :]                       # (d, Nk)

            # s[m, n] = sum_j k[j, m] * q[j, n]
            # (module defines self.scale but never applies it -> no scaling)
            s = jnp.dot(k_t, q_h, preferred_element_type=f32)       # (Nk, Nq)
            s_max = jnp.max(s, axis=0, keepdims=True)               # (1, Nq)
            p = jnp.exp(s - s_max)                                  # f32 elementwise
            denom = jnp.sum(p, axis=0, keepdims=True)               # (1, Nq)

            # Deferred softmax normalization: scale after the p @ v matmul.
            head = jnp.dot(v_h, p.astype(bf16),
                           preferred_element_type=f32)              # (d, Nq)
            head = head * pl.reciprocal(denom, approx=True)
            heads.append(jnp.maximum(head, 0.0))                    # proj activation (ReLU)

        xx = jnp.concatenate(heads, axis=0)                         # (dh, N), head-major
        out = jnp.dot(wp_ref[...], xx,
                      preferred_element_type=f32) + bp_ref[...]     # (dim, N)
        o_ref[0] = out.astype(o_ref.dtype)

    return kernel


def attention_forward(x, params, *, num_heads, key_dim, attn_ratio):
    """x: (B, C, H, W) NCHW. params: BN-folded 1x1-conv weights/biases. Returns (B, C, H, W)."""
    B, C, H, W = x.shape
    N = H * W
    d = int(attn_ratio * key_dim)
    dh = d * num_heads
    nh_kd = num_heads * key_dim
    ctot = 2 * nh_kd + dh
    dim = C

    # Free reshape (no transpose): tokens stay lane-dense end-to-end.
    x_cn = x.reshape(B, C, N)

    # Fuse the three projection weights / biases so they are DMA'd once.
    wqkv = jnp.concatenate([params["wq"], params["wk"], params["wv"]], axis=0)  # (Ctot, C)
    bqkv = jnp.concatenate(
        [params["bq"], params["bk"], params["bv"]], axis=0).reshape(ctot, 1)    # (Ctot, 1)
    wp = params["wp"]                                                            # (dim, dh)
    bp = params["bp"].reshape(dim, 1)                                            # (dim, 1)

    cost = pl.CostEstimate(
        flops=2 * B * (ctot * C * N
                       + num_heads * N * N * (key_dim + d)
                       + dim * dh * N),
        transcendentals=B * num_heads * N * N,
        bytes_accessed=4 * (B * C * N + B * dim * N
                            + ctot * C + ctot + dim * dh + dim),
    )

    out = pl.pallas_call(
        _make_attention_kernel(num_heads, key_dim, d, nh_kd),
        out_shape=jax.ShapeDtypeStruct((B, dim, N), x.dtype),
        grid=(B,),
        in_specs=[
            pl.BlockSpec((1, C, N), lambda b: (b, 0, 0)),   # x (per batch sample)
            pl.BlockSpec((ctot, C), lambda b: (0, 0)),      # fused Wq|Wk|Wv (loaded once)
            pl.BlockSpec((ctot, 1), lambda b: (0, 0)),      # fused bq|bk|bv
            pl.BlockSpec((dim, dh), lambda b: (0, 0)),      # Wproj
            pl.BlockSpec((dim, 1), lambda b: (0, 0)),       # bproj
        ],
        out_specs=pl.BlockSpec((1, dim, N), lambda b: (b, 0, 0)),
        compiler_params=pltpu.CompilerParams(
            dimension_semantics=("parallel",),
            vmem_limit_bytes=32 * 1024 * 1024,
        ),
        cost_estimate=cost,
    )(x_cn, wqkv, bqkv, wp, bp)

    return out.reshape(B, dim, H, W)


# ----------------------------------------------------------------------------
# Pure-JAX reference (mirrors the PyTorch forward, BN folded the same way).
# ----------------------------------------------------------------------------
def attention_ref(x, p, *, num_heads, key_dim, attn_ratio):
    B, C, H, W = x.shape
    N = H * W
    d = int(attn_ratio * key_dim)
    dh = d * num_heads
    hp = jax.lax.Precision.HIGHEST
    xf = x.reshape(B, C, N)

    def conv1x1(w, b):
        return jnp.einsum("oc,bcn->bon", w, xf, precision=hp) + b[None, :, None]

    qq = conv1x1(p["wq"], p["bq"]).reshape(B, num_heads, key_dim, N).transpose(0, 1, 3, 2)
    kk = conv1x1(p["wk"], p["bk"]).reshape(B, num_heads, key_dim, N)
    vv = conv1x1(p["wv"], p["bv"]).reshape(B, num_heads, d, N).transpose(0, 1, 3, 2)

    attn = jnp.einsum("bhnk,bhkm->bhnm", qq, kk, precision=hp)
    attn = jax.nn.softmax(attn, axis=-1)
    xx = jnp.einsum("bhnm,bhmd->bhnd", attn, vv, precision=hp)
    xx = xx.transpose(0, 1, 3, 2).reshape(B, dh, N)
    xx = jax.nn.relu(xx)
    out = jnp.einsum("od,bdn->bon", p["wp"], xx, precision=hp) + p["bp"][None, :, None]
    return out.reshape(B, C, H, W)


def fold_conv_bn(key, in_ch, out_ch, *, w_std, eps=1e-5):
    """Random 1x1-conv weight + BN params, folded to an effective (weight, bias)."""
    k1, k2, k3, k4, k5 = jax.random.split(key, 5)
    w = jax.random.normal(k1, (out_ch, in_ch), jnp.float32) * w_std
    gamma = jax.random.uniform(k2, (out_ch,), jnp.float32, minval=0.5, maxval=1.5)
    beta = jax.random.normal(k3, (out_ch,), jnp.float32) * 0.1
    mean = jax.random.normal(k4, (out_ch,), jnp.float32) * 0.1
    var = jax.random.uniform(k5, (out_ch,), jnp.float32, minval=0.5, maxval=1.5)
    scale = gamma / jnp.sqrt(var + eps)
    return w * scale[:, None], beta - mean * scale


if __name__ == "__main__":
    key = jax.random.PRNGKey(0)

    # Shapes consistent with the module: dim=32, key_dim=16, heads=4,
    # attn_ratio=2 -> d=32, dh=128; H=W=16 -> N=256 tokens (lane-dense).
    B, C, H, W = 2, 32, 16, 16
    num_heads, key_dim, attn_ratio = 4, 16, 2
    d = int(attn_ratio * key_dim)
    dh = d * num_heads
    nh_kd = key_dim * num_heads

    kx, kq, kk_, kv, kp = jax.random.split(key, 5)
    x = jax.random.normal(kx, (B, C, H, W), jnp.float32)

    wq, bq = fold_conv_bn(kq, C, nh_kd, w_std=0.5 / (C ** 0.5))
    wk, bk = fold_conv_bn(kk_, C, nh_kd, w_std=0.5 / (C ** 0.5))
    wv, bv = fold_conv_bn(kv, C, dh, w_std=1.0 / (C ** 0.5))
    wp, bp = fold_conv_bn(kp, dh, C, w_std=1.0 / (dh ** 0.5))
    params = dict(wq=wq, bq=bq, wk=wk, bk=bk, wv=wv, bv=bv, wp=wp, bp=bp)

    out = attention_forward(x, params, num_heads=num_heads,
                            key_dim=key_dim, attn_ratio=attn_ratio)
    out = jax.block_until_ready(out)

    ref = attention_ref(x, params, num_heads=num_heads,
                        key_dim=key_dim, attn_ratio=attn_ratio)

    assert out.shape == (B, C, H, W) and out.dtype == x.dtype
    max_err = float(jnp.max(jnp.abs(out - ref)))
    rel_rms = float(jnp.linalg.norm(out - ref) / jnp.linalg.norm(ref))
    # Tolerance accounts for bf16 MXU operands on the attention matmuls (per
    # the perf review) + approx reciprocal vs the f32 HIGHEST-precision
    # reference; real logic errors would be O(0.1 - 1).
    assert jnp.allclose(out, ref, atol=5e-2, rtol=5e-2), f"max abs err {max_err}"
    assert rel_rms < 2e-2, f"relative RMS err {rel_rms}"
    print("KERNEL_OK")
</pallas_src>

<mosaic_0001>
module attributes {stable_mosaic.version = 11 : i64} {
  func.func @kernel(%arg0: i32, %arg1: memref<1x32x256xf32, #tpu.memory_space<vmem>>, %arg2: memref<256x32xf32, #tpu.memory_space<vmem>>, %arg3: memref<256x1xf32, #tpu.memory_space<vmem>>, %arg4: memref<32x128xf32, #tpu.memory_space<vmem>>, %arg5: memref<32x1xf32, #tpu.memory_space<vmem>>, %arg6: memref<1x32x256xf32, #tpu.memory_space<vmem>>) attributes {dimension_semantics = [#tpu.dimension_semantics<parallel>], iteration_bounds = array<i64: 2>, scalar_prefetch = 0 : i64, scratch_operands = 0 : i64, tpu.core_type = #tpu.core_type<tc>, window_params = [{transform_indices = @transform_0, window_bounds = array<i64: 1, 32, 256>}, {pipeline_mode = #tpu.pipeline_mode<synchronous>, transform_indices = @transform_1, window_bounds = array<i64: 256, 32>}, {pipeline_mode = #tpu.pipeline_mode<synchronous>, transform_indices = @transform_2, window_bounds = array<i64: 256, 1>}, {pipeline_mode = #tpu.pipeline_mode<synchronous>, transform_indices = @transform_3, window_bounds = array<i64: 32, 128>}, {pipeline_mode = #tpu.pipeline_mode<synchronous>, transform_indices = @transform_4, window_bounds = array<i64: 32, 1>}, {transform_indices = @transform_5, window_bounds = array<i64: 1, 32, 256>}]} {
    %c0 = arith.constant 0 : index
    %c0_0 = arith.constant 0 : index
    %c0_1 = arith.constant 0 : index
    %0 = vector.load %arg1[%c0, %c0_0, %c0_1] : memref<1x32x256xf32, #tpu.memory_space<vmem>>, vector<1x32x256xf32>
    %1 = vector.shape_cast %0 : vector<1x32x256xf32> to vector<32x256xf32>
    %c0_2 = arith.constant 0 : index
    %c0_3 = arith.constant 0 : index
    %2 = vector.load %arg2[%c0_2, %c0_3] : memref<256x32xf32, #tpu.memory_space<vmem>>, vector<256x32xf32>
    %cst = arith.constant dense<0.000000e+00> : vector<256x256xf32>
    %3 = tpu.matmul %2, %1, %cst {dimension_numbers = #tpu.dot_dimension_numbers<[1], [0], [0], [1], [0, 0, 1, 1], [], []>} : vector<256x32xf32>, vector<32x256xf32>, vector<256x256xf32> -> vector<256x256xf32>
    %c0_4 = arith.constant 0 : index
    %c0_5 = arith.constant 0 : index
    %4 = vector.load %arg3[%c0_4, %c0_5] : memref<256x1xf32, #tpu.memory_space<vmem>>, vector<256x1xf32>
    %5 = vector.broadcast %4 : vector<256x1xf32> to vector<256x256xf32>
    %6 = arith.addf %3, %5 : vector<256x256xf32>
    %7 = vector.extract_strided_slice %6 {offsets = [0, 0], sizes = [64, 256], strides = [1, 1]} : vector<256x256xf32> to vector<64x256xf32>
    %8 = arith.truncf %7 : vector<64x256xf32> to vector<64x256xbf16>
    %9 = vector.extract_strided_slice %6 {offsets = [64, 0], sizes = [64, 256], strides = [1, 1]} : vector<256x256xf32> to vector<64x256xf32>
    %10 = vector.extract_strided_slice %6 {offsets = [128, 0], sizes = [128, 256], strides = [1, 1]} : vector<256x256xf32> to vector<128x256xf32>
    %11 = arith.truncf %10 : vector<128x256xf32> to vector<128x256xbf16>
    %12 = vector.extract_strided_slice %8 {offsets = [0, 0], sizes = [16, 256], strides = [1, 1]} : vector<64x256xbf16> to vector<16x256xbf16>
    %13 = vector.extract_strided_slice %9 {offsets = [0, 0], sizes = [16, 256], strides = [1, 1]} : vector<64x256xf32> to vector<16x256xf32>
    %14 = tpu.transpose %13, [1, 0] : vector<16x256xf32> -> vector<256x16xf32>
    %15 = arith.truncf %14 : vector<256x16xf32> to vector<256x16xbf16>
    %16 = vector.extract_strided_slice %11 {offsets = [0, 0], sizes = [32, 256], strides = [1, 1]} : vector<128x256xbf16> to vector<32x256xbf16>
    %cst_6 = arith.constant dense<0.000000e+00> : vector<256x256xf32>
    %17 = tpu.matmul %15, %12, %cst_6 {dimension_numbers = #tpu.dot_dimension_numbers<[1], [0], [0], [1], [0, 0, 1, 1], [], []>} : vector<256x16xbf16>, vector<16x256xbf16>, vector<256x256xf32> -> vector<256x256xf32>
    %cst_7 = arith.constant dense<0xFF800000> : vector<256xf32>
    %18 = vector.multi_reduction <maximumf>, %17, %cst_7 [0] : vector<256x256xf32> to vector<256xf32>
    %19 = vector.shape_cast %18 : vector<256xf32> to vector<1x256xf32>
    %20 = vector.broadcast %19 : vector<1x256xf32> to vector<256x256xf32>
    %21 = arith.subf %17, %20 : vector<256x256xf32>
    %22 = math.exp %21 : vector<256x256xf32>
    %cst_8 = arith.constant dense<0.000000e+00> : vector<256xf32>
    %23 = vector.multi_reduction <add>, %22, %cst_8 [0] : vector<256x256xf32> to vector<256xf32>
    %24 = vector.shape_cast %23 : vector<256xf32> to vector<1x256xf32>
    %25 = arith.truncf %22 : vector<256x256xf32> to vector<256x256xbf16>
    %cst_9 = arith.constant dense<0.000000e+00> : vector<32x256xf32>
    %26 = tpu.matmul %16, %25, %cst_9 {dimension_numbers = #tpu.dot_dimension_numbers<[1], [0], [0], [1], [0, 0, 1, 1], [], []>} : vector<32x256xbf16>, vector<256x256xbf16>, vector<32x256xf32> -> vector<32x256xf32>
    %27 = tpu.reciprocal %24 {approx = true} : vector<1x256xf32> -> vector<1x256xf32>
    %28 = vector.broadcast %27 : vector<1x256xf32> to vector<32x256xf32>
    %29 = arith.mulf %26, %28 : vector<32x256xf32>
    %cst_10 = arith.constant 0.000000e+00 : f32
    %30 = vector.broadcast %cst_10 : f32 to vector<32x256xf32>
    %31 = arith.maximumf %29, %30 : vector<32x256xf32>
    %32 = vector.extract_strided_slice %8 {offsets = [16, 0], sizes = [16, 256], strides = [1, 1]} : vector<64x256xbf16> to vector<16x256xbf16>
    %33 = vector.extract_strided_slice %9 {offsets = [16, 0], sizes = [16, 256], strides = [1, 1]} : vector<64x256xf32> to vector<16x256xf32>
    %34 = tpu.transpose %33, [1, 0] : vector<16x256xf32> -> vector<256x16xf32>
    %35 = arith.truncf %34 : vector<256x16xf32> to vector<256x16xbf16>
    %36 = vector.extract_strided_slice %11 {offsets = [32, 0], sizes = [32, 256], strides = [1, 1]} : vector<128x256xbf16> to vector<32x256xbf16>
    %cst_11 = arith.constant dense<0.000000e+00> : vector<256x256xf32>
    %37 = tpu.matmul %35, %32, %cst_11 {dimension_numbers = #tpu.dot_dimension_numbers<[1], [0], [0], [1], [0, 0, 1, 1], [], []>} : vector<256x16xbf16>, vector<16x256xbf16>, vector<256x256xf32> -> vector<256x256xf32>
    %cst_12 = arith.constant dense<0xFF800000> : vector<256xf32>
    %38 = vector.multi_reduction <maximumf>, %37, %cst_12 [0] : vector<256x256xf32> to vector<256xf32>
    %39 = vector.shape_cast %38 : vector<256xf32> to vector<1x256xf32>
    %40 = vector.broadcast %39 : vector<1x256xf32> to vector<256x256xf32>
    %41 = arith.subf %37, %40 : vector<256x256xf32>
    %42 = math.exp %41 : vector<256x256xf32>
    %cst_13 = arith.constant dense<0.000000e+00> : vector<256xf32>
    %43 = vector.multi_reduction <add>, %42, %cst_13 [0] : vector<256x256xf32> to vector<256xf32>
    %44 = vector.shape_cast %43 : vector<256xf32> to vector<1x256xf32>
    %45 = arith.truncf %42 : vector<256x256xf32> to vector<256x256xbf16>
    %cst_14 = arith.constant dense<0.000000e+00> : vector<32x256xf32>
    %46 = tpu.matmul %36, %45, %cst_14 {dimension_numbers = #tpu.dot_dimension_numbers<[1], [0], [0], [1], [0, 0, 1, 1], [], []>} : vector<32x256xbf16>, vector<256x256xbf16>, vector<32x256xf32> -> vector<32x256xf32>
    %47 = tpu.reciprocal %44 {approx = true} : vector<1x256xf32> -> vector<1x256xf32>
    %48 = vector.broadcast %47 : vector<1x256xf32> to vector<32x256xf32>
    %49 = arith.mulf %46, %48 : vector<32x256xf32>
    %cst_15 = arith.constant 0.000000e+00 : f32
    %50 = vector.broadcast %cst_15 : f32 to vector<32x256xf32>
    %51 = arith.maximumf %49, %50 : vector<32x256xf32>
    %52 = vector.extract_strided_slice %8 {offsets = [32, 0], sizes = [16, 256], strides = [1, 1]} : vector<64x256xbf16> to vector<16x256xbf16>
    %53 = vector.extract_strided_slice %9 {offsets = [32, 0], sizes = [16, 256], strides = [1, 1]} : vector<64x256xf32> to vector<16x256xf32>
    %54 = tpu.transpose %53, [1, 0] : vector<16x256xf32> -> vector<256x16xf32>
    %55 = arith.truncf %54 : vector<256x16xf32> to vector<256x16xbf16>
    %56 = vector.extract_strided_slice %11 {offsets = [64, 0], sizes = [32, 256], strides = [1, 1]} : vector<128x256xbf16> to vector<32x256xbf16>
    %cst_16 = arith.constant dense<0.000000e+00> : vector<256x256xf32>
    %57 = tpu.matmul %55, %52, %cst_16 {dimension_numbers = #tpu.dot_dimension_numbers<[1], [0], [0], [1], [0, 0, 1, 1], [], []>} : vector<256x16xbf16>, vector<16x256xbf16>, vector<256x256xf32> -> vector<256x256xf32>
    %cst_17 = arith.constant dense<0xFF800000> : vector<256xf32>
    %58 = vector.multi_reduction <maximumf>, %57, %cst_17 [0] : vector<256x256xf32> to vector<256xf32>
    %59 = vector.shape_cast %58 : vector<256xf32> to vector<1x256xf32>
    %60 = vector.broadcast %59 : vector<1x256xf32> to vector<256x256xf32>
    %61 = arith.subf %57, %60 : vector<256x256xf32>
    %62 = math.exp %61 : vector<256x256xf32>
    %cst_18 = arith.constant dense<0.000000e+00> : vector<256xf32>
    %63 = vector.multi_reduction <add>, %62, %cst_18 [0] : vector<256x256xf32> to vector<256xf32>
    %64 = vector.shape_cast %63 : vector<256xf32> to vector<1x256xf32>
    %65 = arith.truncf %62 : vector<256x256xf32> to vector<256x256xbf16>
    %cst_19 = arith.constant dense<0.000000e+00> : vector<32x256xf32>
    %66 = tpu.matmul %56, %65, %cst_19 {dimension_numbers = #tpu.dot_dimension_numbers<[1], [0], [0], [1], [0, 0, 1, 1], [], []>} : vector<32x256xbf16>, vector<256x256xbf16>, vector<32x256xf32> -> vector<32x256xf32>
    %67 = tpu.reciprocal %64 {approx = true} : vector<1x256xf32> -> vector<1x256xf32>
    %68 = vector.broadcast %67 : vector<1x256xf32> to vector<32x256xf32>
    %69 = arith.mulf %66, %68 : vector<32x256xf32>
    %cst_20 = arith.constant 0.000000e+00 : f32
    %70 = vector.broadcast %cst_20 : f32 to vector<32x256xf32>
    %71 = arith.maximumf %69, %70 : vector<32x256xf32>
    %72 = vector.extract_strided_slice %8 {offsets = [48, 0], sizes = [16, 256], strides = [1, 1]} : vector<64x256xbf16> to vector<16x256xbf16>
    %73 = vector.extract_strided_slice %9 {offsets = [48, 0], sizes = [16, 256], strides = [1, 1]} : vector<64x256xf32> to vector<16x256xf32>
    %74 = tpu.transpose %73, [1, 0] : vector<16x256xf32> -> vector<256x16xf32>
    %75 = arith.truncf %74 : vector<256x16xf32> to vector<256x16xbf16>
    %76 = vector.extract_strided_slice %11 {offsets = [96, 0], sizes = [32, 256], strides = [1, 1]} : vector<128x256xbf16> to vector<32x256xbf16>
    %cst_21 = arith.constant dense<0.000000e+00> : vector<256x256xf32>
    %77 = tpu.matmul %75, %72, %cst_21 {dimension_numbers = #tpu.dot_dimension_numbers<[1], [0], [0], [1], [0, 0, 1, 1], [], []>} : vector<256x16xbf16>, vector<16x256xbf16>, vector<256x256xf32> -> vector<256x256xf32>
    %cst_22 = arith.constant dense<0xFF800000> : vector<256xf32>
    %78 = vector.multi_reduction <maximumf>, %77, %cst_22 [0] : vector<256x256xf32> to vector<256xf32>
    %79 = vector.shape_cast %78 : vector<256xf32> to vector<1x256xf32>
    %80 = vector.broadcast %79 : vector<1x256xf32> to vector<256x256xf32>
    %81 = arith.subf %77, %80 : vector<256x256xf32>
    %82 = math.exp %81 : vector<256x256xf32>
    %cst_23 = arith.constant dense<0.000000e+00> : vector<256xf32>
    %83 = vector.multi_reduction <add>, %82, %cst_23 [0] : vector<256x256xf32> to vector<256xf32>
    %84 = vector.shape_cast %83 : vector<256xf32> to vector<1x256xf32>
    %85 = arith.truncf %82 : vector<256x256xf32> to vector<256x256xbf16>
    %cst_24 = arith.constant dense<0.000000e+00> : vector<32x256xf32>
    %86 = tpu.matmul %76, %85, %cst_24 {dimension_numbers = #tpu.dot_dimension_numbers<[1], [0], [0], [1], [0, 0, 1, 1], [], []>} : vector<32x256xbf16>, vector<256x256xbf16>, vector<32x256xf32> -> vector<32x256xf32>
    %87 = tpu.reciprocal %84 {approx = true} : vector<1x256xf32> -> vector<1x256xf32>
    %88 = vector.broadcast %87 : vector<1x256xf32> to vector<32x256xf32>
    %89 = arith.mulf %86, %88 : vector<32x256xf32>
    %cst_25 = arith.constant 0.000000e+00 : f32
    %90 = vector.broadcast %cst_25 : f32 to vector<32x256xf32>
    %91 = arith.maximumf %89, %90 : vector<32x256xf32>
    %92 = tpu.concatenate %31, %51, %71, %91 in 0 : vector<32x256xf32>, vector<32x256xf32>, vector<32x256xf32>, vector<32x256xf32> -> vector<128x256xf32>
    %c0_26 = arith.constant 0 : index
    %c0_27 = arith.constant 0 : index
    %93 = vector.load %arg4[%c0_26, %c0_27] : memref<32x128xf32, #tpu.memory_space<vmem>>, vector<32x128xf32>
    %cst_28 = arith.constant dense<0.000000e+00> : vector<32x256xf32>
    %94 = tpu.matmul %93, %92, %cst_28 {dimension_numbers = #tpu.dot_dimension_numbers<[1], [0], [0], [1], [0, 0, 1, 1], [], []>} : vector<32x128xf32>, vector<128x256xf32>, vector<32x256xf32> -> vector<32x256xf32>
    %c0_29 = arith.constant 0 : index
    %c0_30 = arith.constant 0 : index
    %95 = vector.load %arg5[%c0_29, %c0_30] : memref<32x1xf32, #tpu.memory_space<vmem>>, vector<32x1xf32>
    %96 = vector.broadcast %95 : vector<32x1xf32> to vector<32x256xf32>
    %97 = arith.addf %94, %96 : vector<32x256xf32>
    %c0_31 = arith.constant 0 : index
    %c0_32 = arith.constant 0 : index
    %c0_33 = arith.constant 0 : index
    %98 = vector.load %arg6[%c0_31, %c0_32, %c0_33] : memref<1x32x256xf32, #tpu.memory_space<vmem>>, vector<1x32x256xf32>
    %99 = vector.shape_cast %98 : vector<1x32x256xf32> to vector<32x256xf32>
    %100 = vector.shape_cast %97 : vector<32x256xf32> to vector<1x32x256xf32>
    tpu.vector_store %arg6[%c0_31, %c0_32, %c0_33], %100 {strides = array<i32>} : memref<1x32x256xf32, #tpu.memory_space<vmem>>, vector<1x32x256xf32>,
    return
  }
  func.func @transform_0(%arg0: i32) -> (i32, i32, i32) {
    %c0_i32 = arith.constant 0 : i32
    %c0_i32_0 = arith.constant 0 : i32
    %c0_i32_1 = arith.constant 0 : i32
    return %arg0, %c0_i32, %c0_i32_0 : i32, i32, i32
  }
  func.func @transform_1(%arg0: i32) -> (i32, i32) {
    %c0_i32 = arith.constant 0 : i32
    %c0_i32_0 = arith.constant 0 : i32
    %c0_i32_1 = arith.constant 0 : i32
    return %c0_i32, %c0_i32_0 : i32, i32
  }
  func.func @transform_2(%arg0: i32) -> (i32, i32) {
    %c0_i32 = arith.constant 0 : i32
    %c0_i32_0 = arith.constant 0 : i32
    %c0_i32_1 = arith.constant 0 : i32
    return %c0_i32, %c0_i32_0 : i32, i32
  }
  func.func @transform_3(%arg0: i32) -> (i32, i32) {
    %c0_i32 = arith.constant 0 : i32
    %c0_i32_0 = arith.constant 0 : i32
    %c0_i32_1 = arith.constant 0 : i32
    return %c0_i32, %c0_i32_0 : i32, i32
  }
  func.func @transform_4(%arg0: i32) -> (i32, i32) {
    %c0_i32 = arith.constant 0 : i32
    %c0_i32_0 = arith.constant 0 : i32
    %c0_i32_1 = arith.constant 0 : i32
    return %c0_i32, %c0_i32_0 : i32, i32
  }
  func.func @transform_5(%arg0: i32) -> (i32, i32, i32) {
    %c0_i32 = arith.constant 0 : i32
    %c0_i32_0 = arith.constant 0 : i32
    %c0_i32_1 = arith.constant 0 : i32
    return %arg0, %c0_i32, %c0_i32_0 : i32, i32, i32
  }
}

</mosaic_0001>

<bundles_post_ra>
// kernel: tpu_custom_call.1
= control target key start
LH: loop header
LB: loop body
LE: loop exit
PB: predicated region body
PF: predicated region fallthrough
CT: control target
= control target key end

     0   :  { %10 = vsyncpa [#allocation3], 0  ;;  %s9315_s0 = inlined_call_operand.vmem [shape: f32[2,32,256], index: 0, kind: input, shape index: {}]   ;;  %s9316_s1 = inlined_call_operand.vmem [shape: f32[256,32], index: 1, kind: input, shape index: {}]   ;;  %s9317_s2 = inlined_call_operand.vmem [shape: f32[256,1], index: 2, kind: input, shape index: {}]   ;;  %s9318_s3 = inlined_call_operand.vmem [shape: f32[32,128], index: 3, kind: input, shape index: {}]   ;;  %s9319_s4 = inlined_call_operand.vmem [shape: f32[32,1], index: 4, kind: input, shape index: {}]   ;;  %s9320_s5 = inlined_call_operand.hbm [shape: f32[2,32,256], index: 5, kind: output, shape index: {}]  }
   0x1   :  { %12 = vsyncpa [#allocation3 + $0x1], 0  ;;  %s5002_s18 = smov 0   ;;  %s5004_s19 = smov 0  }
   0x2   :  { %s5006_s20 = smov 0   ;;  %s5008_s21 = smov 0  }
   0x3 LB: > { %s5023_s22 = sadd.s32 4294967295, %s4965_s21   ;;  %s4092_s23 = sadd.s32 4294967294, %s4965_s21   ;;  %s4965_s21 = sphi %s5008_s21, %s10896_s21   ;;  %s4961_s20 = sphi %s5006_s20, %s10895_s20   ;;  %s4957_s19 = sphi %s5004_s19, %s10894_s19   ;;  %s4953_s18 = sphi %s5002_s18, %s10893_s18  }
   0x4   : > { %s5027_s24 = sadd.s32 1, %s4965_s21   ;;  %s135_s25 = sadd.s32 1, %s4961_s20 }
   0x5   : > { %s132_s26 = ssub.s32 %s4965_s21, %s5027_s24  ;;  %p145_p0 = scmp.ne.s32.totalorder %s4961_s20, %s4957_s19 }
   0x6   : > { %p133_p1 = scmp.eq.s32.totalorder %s132_s26, 0  ;;  %p146_p2 = scmp.eq.s32.totalorder %s5023_s22, 1 }
   0x7   : > { %p151_p3 = scmp.ne.s32.totalorder %s4957_s19, %s4953_s18  ;;  %p152_p4 = scmp.eq.s32.totalorder %s4092_s23, 1 }
   0x8   : > { %s5038_s27 = scalar_select %p133_p1, %s4961_s20, %s135_s25  }
   0x9   : > { %p5040_p5 = por %p146_p2, %p145_p0  ;;  %p5044_p6 = por %p152_p4, %p151_p3 }
   0xa   : > { %p4095_p7 = scmp.ge.s32.totalorder %s4965_s21, 1  ;;  %p190_p8 = scmp.lt.s32.totalorder %s4965_s21, 3 }
   0xc   : > { %p191_p9 = pnand %p4095_p7, %p190_p8 }
   0xe   : > { %194 = sbr.rel (%p191_p9) target bundleno = 2482 (0x9b2), region = 40 }
  0x15   : > { %p218_p10 = scmp.lt.s32.totalorder %s5023_s22, 1  ;;  %v9321_v0 = vmov 0.0   ;;  %v9323_v1 = vmov 0   ;;  %v264_v2 = vld [vmem:[%s9317_s2] sm:$0xff]  ;;  %v265_v3 = vld [vmem:[%s9317_s2 + $0x8] sm:$0xff]  ;;  %v275_v18 = vld [vmem:[%s9317_s2 + $0x58] sm:$0xff] }
  0x16   : > { %617 = vmatprep.mubr.f32.mxu0 %v9321_v0  ;;  %797 = vmatprep.mubr.f32.mxu1 %v9321_v0  ;;  %v272_v4 = vld [vmem:[%s9317_s2 + $0x40] sm:$0xff]  ;;  %v273_v16 = vld [vmem:[%s9317_s2 + $0x48] sm:$0xff]  ;;  %v274_v19 = vld [vmem:[%s9317_s2 + $0x50] sm:$0xff]  ;;  %vm456_vm0 = vcmask 261120   ;;  %vm914_vm1 = vcmask 130048   ;;  %s215_s10 = sand.u32 1, %s4957_s19  }
  0x17   : > { %s219_s30 = scalar_select %p218_p10, %s5023_s22, 1  ;;  %4290 = vset.pattern.permute.xlu1 %v9323_v1  ;;  %4289 = vset.pattern.permute.xlu0 %v9323_v1  ;;  %v232_v20 = vld [vmem:[%s9316_s1] sm:$0xff]  ;;  %v266_v21 = vld [vmem:[%s9317_s2 + $0x10] sm:$0xff]  ;;  %v233_v22 = vld [vmem:[%s9316_s1 + $0x8] sm:$0xff] }
  0x18   : > { %298 = vperm.xlu1 %4290, %v264_v2   ;;  %338 = vperm.xlu0 %4289, %v272_v4   ;;  %v267_v23 = vld [vmem:[%s9317_s2 + $0x18] sm:$0xff]  ;;  %v234_v24 = vld [vmem:[%s9316_s1 + $0x10] sm:$0xff]  ;;  %v236_v26 = vld [vmem:[%s9316_s1 + $0x20] sm:$0xff]  ;;  %s4201_s13 = sshll.u32 %s5023_s22, 10  ;;  %s9274_s22 = scalar_lea.sflag [#allocation3], %s215_s10 }
  0x19   : > { %s4200_s6 = sshll.u32 %s219_s30, 6  ;;  %v235_v25 = vld [vmem:[%s9316_s1 + $0x18] sm:$0xff]  ;;  %v237_v27 = vld [vmem:[%s9316_s1 + $0x28] sm:$0xff]  ;;  %v238_v28 = vld [vmem:[%s9316_s1 + $0x30] sm:$0xff]  ;;  %s9268_s17 = scalar_lea.hbm %s9320_s5, %s4201_s13 }
  0x1a   : > { %s222_s11 = scalar_lea.vmem %s9315_s0, %s4200_s6  ;;  %v239_v29 = vld [vmem:[%s9316_s1 + $0x38] sm:$0xff]  ;;  %v240_v30 = vld [vmem:[%s9316_s1 + $0x40] sm:$0xff]  ;;  %v241_v31 = vld [vmem:[%s9316_s1 + $0x48] sm:$0xff]  ;;  %s4969_s25 = smov [#allocation2]  }
  0x1b   : > { %v225_v5 = vld [vmem:[%s222_s11 + $0x8] sm:$0xff]  ;;  %v227_v6 = vld [vmem:[%s222_s11 + $0x18] sm:$0xff]  ;;  %v224_v7 = vld [vmem:[%s222_s11] sm:$0xff]  ;;  %s4907_s26 = sshll.u32 %s4969_s25, 4  ;;  %s4908_s26 = int_to_ptr.vmem [resolvable:$false] %s4907_s26 }
  0x1c   : > { %v4202_v8 = vpack.c.bf16 %v227_v6, %v225_v5  ;;  %v226_v9 = vld [vmem:[%s222_s11 + $0x10] sm:$0xff]  ;;  %v229_v10 = vld [vmem:[%s222_s11 + $0x28] sm:$0xff]  ;;  %v231_v11 = vld [vmem:[%s222_s11 + $0x38] sm:$0xff]  ;;  %303 = vperm.xlu1 %4290, %v265_v3   ;;  %343 = vperm.xlu0 %4289, %v273_v16   ;;  %s4909_s30 = scalar_lea.vmem %s4908_s26, 2048 }
  0x1d   : > { %v4204_v12 = vpack.c.bf16 %v226_v9, %v224_v7  ;;  %v4206_v13 = vpack.c.bf16 %v231_v11, %v229_v10  ;;  %v228_v14 = vld [vmem:[%s222_s11 + $0x20] sm:$0xff]  ;;  %v230_v15 = vld [vmem:[%s222_s11 + $0x30] sm:$0xff]  ;;  %v243_v33 = vld [vmem:[%s9316_s1 + $0x58] sm:$0xff]  ;;  %s4096_s11 = sshll.u32 %s215_s10, 6 }
  0x1e   : > { %4203 = vmatprep.subr.bf16.mxu0 %v4202_v8  ;;  %v4208_v17 = vpack.c.bf16 %v230_v15, %v228_v14  ;;  %4242 = vmatprep.subr.bf16.mxu1 %v4202_v8  ;;  %v242_v32 = vld [vmem:[%s9316_s1 + $0x50] sm:$0xff]  ;;  %v244_v35 = vld [vmem:[%s9316_s1 + $0x60] sm:$0xff]  ;;  %v245_v36 = vld [vmem:[%s9316_s1 + $0x68] sm:$0xff]  ;;  %s217_s12 = scalar_lea.vmem [#allocation2], %s4096_s11 }
  0x1f   : > { %4205 = vmatpush1.bf16.msra.mxu0 %v4204_v12  ;;  %4244 = vmatpush1.bf16.msra.mxu1 %v4204_v12  ;;  %v262_v34 = vld [vmem:[%s9316_s1 + $0xf0] sm:$0xff]  ;;  %v247_v38 = vld [vmem:[%s9316_s1 + $0x78] sm:$0xff]  ;;  %v248_v39 = vld [vmem:[%s9316_s1 + $0x80] sm:$0xff]  ;;  %s4030_s14 = sshll.u32 %s217_s12, 4  ;;  %s9270_s14 = int_to_ptr.vmem [resolvable:$true] %s4030_s14 }
  0x20   : > { %4207 = vmatprep.subr.bf16.mxu0 %v4206_v13  ;;  %353 = vperm.xlu1 %4290, %v275_v18   ;;  %v246_v37 = vld [vmem:[%s9316_s1 + $0x70] sm:$0xff]  ;;  %v249_v40 = vld [vmem:[%s9316_s1 + $0x88] sm:$0xff]  ;;  %v251_v42 = vld [vmem:[%s9316_s1 + $0x98] sm:$0xff]  ;;  %s4903_s23 = scalar_lea.vmem %s9270_s14, 1024  ;;  %p4910_p0 = scmp.lt.s32.totalorder %s9270_s14, %s4908_s26 }
  0x21   : > { %4243 = vmatprep.subr.bf16.mxu1 %v4206_v13  ;;  %348 = vperm.xlu0 %4289, %v274_v19   ;;  %v250_v41 = vld [vmem:[%s9316_s1 + $0x90] sm:$0xff]  ;;  %v252_v43 = vld [vmem:[%s9316_s1 + $0xa0] sm:$0xff]  ;;  %v253_v44 = vld [vmem:[%s9316_s1 + $0xa8] sm:$0xff]  ;;  %p4904_p11 = scmp.ne.s32.totalorder %s9270_s14, %s4903_s23  ;;  %p4911_p1 = scmp.lt.s32.totalorder %s4909_s30, %s4903_s23 }
  0x22   : > { %v254_v45 = vld [vmem:[%s9316_s1 + $0xb0] sm:$0xff]  ;;  %v255_v46 = vld [vmem:[%s9316_s1 + $0xb8] sm:$0xff]  ;;  %v256_v16 = vld [vmem:[%s9316_s1 + $0xc0] sm:$0xff] }
  0x23   : > { %4209 = vmatpush1.bf16.msra.mxu0 %v4208_v17  ;;  %4245 = vmatpush1.bf16.msra.mxu1 %v4208_v17  ;;  %p4905_p12 = pnand %p4904_p11, %p5040_p5  ;;  %p4912_p2 = por %p4911_p1, %p4910_p0 }
  0x24   : > { %308 = vperm.xlu1 %4290, %v266_v21  }
  0x25   : > { %p4906_p13 = pneg %p4905_p12 }
  0x26   : > { %4099 = vmatmul.mubr.msk.f32.vlgmr.msra.gmra.mrb[0].mxu0 %vm456_vm0, %v232_v20  ;;  %4129 = vmatmul.mubr.msk.f32.vlgmr.msra.gmra.mrb[0].mxu1 %vm456_vm0, %v262_v34  ;;  %v257_v20 = vld [vmem:[%s9316_s1 + $0xc8] sm:$0xff] }
  0x27   : > { %623 = vmatprep.mubr.f32.mxu0 %v9321_v0  ;;  %803 = vmatprep.mubr.f32.mxu1 %v9321_v0  ;;  %p4913_p3 = pnand %p4912_p2, %p4906_p13 }
  0x28   : > { %313 = vperm.xlu1 %4290, %v267_v23  }
  0x2a   : > { %4100 = vmatmul.mubr.msk.f32.gmra.mrb[2].mxu0 %vm456_vm0, %v233_v22 }
  0x2b   : > { %629 = vmatprep.mubr.f32.mxu0 %v9321_v0 }
  0x2e   : > { %4101 = vmatmul.mubr.msk.f32.gmra.mrb[4].mxu0 %vm456_vm0, %v234_v24 }
  0x2f   : > { %635 = vmatprep.mubr.f32.mxu0 %v9321_v0 }
  0x32   : > { %4102 = vmatmul.mubr.msk.f32.gmra.mrb[6].mxu0 %vm456_vm0, %v235_v25  ;;  %v263_v25 = vld [vmem:[%s9316_s1 + $0xf8] sm:$0xff] }
  0x33   : > { %641 = vmatprep.mubr.f32.mxu0 %v9321_v0  ;;  %4130 = vmatmul.mubr.msk.f32.gmra.mrb[2].mxu1 %vm456_vm0, %v263_v25 }
  0x34   : > { %995 = vmatprep.mubr.bf16.mxu1 %v9323_v1 }
  0x36   : > { %4103 = vmatmul.mubr.msk.f32.gmra.mrb[8].mxu0 %vm456_vm0, %v236_v26  ;;  %v258_v26 = vld [vmem:[%s9316_s1 + $0xd0] sm:$0xff] }
  0x37   : > { %647 = vmatprep.mubr.f32.mxu0 %v9321_v0 }
  0x3a   : > { %4104 = vmatmul.mubr.msk.f32.gmra.mrb[10].mxu0 %vm456_vm0, %v237_v27 }
  0x3b   : > { %653 = vmatprep.mubr.f32.mxu0 %v9321_v0 }
  0x3e   : > { %4105 = vmatmul.mubr.msk.f32.gmra.mrb[12].mxu0 %vm456_vm0, %v238_v28 }
  0x3f   : > { %659 = vmatprep.mubr.f32.mxu0 %v9321_v0 }
  0x42   : > { %4106 = vmatmul.mubr.msk.f32.gmra.mrb[14].mxu0 %vm456_vm0, %v239_v29 }
  0x43   : > { %665 = vmatprep.mubr.f32.mxu0 %v9321_v0 }
  0x46   : > { %4107 = vmatmul.mubr.msk.f32.gmra.mrb[16].mxu0 %vm456_vm0, %v240_v30 }
  0x47   : > { %671 = vmatprep.mubr.f32.mxu0 %v9321_v0 }
  0x4a   : > { %4108 = vmatmul.mubr.msk.f32.gmra.mrb[18].mxu0 %vm456_vm0, %v241_v31 }
  0x4b   : > { %677 = vmatprep.mubr.f32.mxu0 %v9321_v0 }
  0x4e   : > { %4109 = vmatmul.mubr.msk.f32.gmra.mrb[20].mxu0 %vm456_vm0, %v242_v32  ;;  %v259_v32 = vld [vmem:[%s9316_s1 + $0xd8] sm:$0xff] }
  0x4f   : > { %683 = vmatprep.mubr.f32.mxu0 %v9321_v0 }
  0x52   : > { %4110 = vmatmul.mubr.msk.f32.gmra.mrb[22].mxu0 %vm456_vm0, %v243_v33 }
  0x53   : > { %689 = vmatprep.mubr.f32.mxu0 %v9321_v0 }
  0x56   : > { %4111 = vmatmul.mubr.msk.f32.gmra.mrb[24].mxu0 %vm456_vm0, %v244_v35 }
  0x57   : > { %695 = vmatprep.mubr.f32.mxu0 %v9321_v0 }
  0x5a   : > { %4112 = vmatmul.mubr.msk.f32.gmra.mrb[26].mxu0 %vm456_vm0, %v245_v36 }
  0x5b   : > { %701 = vmatprep.mubr.f32.mxu0 %v9321_v0 }
  0x5e   : > { %4113 = vmatmul.mubr.msk.f32.gmra.mrb[28].mxu0 %vm456_vm0, %v246_v37 }
  0x5f   : > { %707 = vmatprep.mubr.f32.mxu0 %v9321_v0 }
  0x62   : > { %4114 = vmatmul.mubr.msk.f32.gmra.mrb[30].mxu0 %vm456_vm0, %v247_v38 }
  0x63   : > { %713 = vmatprep.mubr.f32.mxu0 %v9321_v0 }
  0x66   : > { %4115 = vmatmul.mubr.msk.f32.gmra.mrb[32].mxu0 %vm456_vm0, %v248_v39 }
  0x67   : > { %719 = vmatprep.mubr.f32.mxu0 %v9321_v0 }
  0x6a   : > { %4116 = vmatmul.mubr.msk.f32.gmra.mrb[34].mxu0 %vm456_vm0, %v249_v40 }
  0x6b   : > { %725 = vmatprep.mubr.f32.mxu0 %v9321_v0 }
  0x6e   : > { %4117 = vmatmul.mubr.msk.f32.gmra.mrb[36].mxu0 %vm456_vm0, %v250_v41  ;;  %v260_v41 = vld [vmem:[%s9316_s1 + $0xe0] sm:$0xff] }
  0x6f   : > { %731 = vmatprep.mubr.f32.mxu0 %v9321_v0 }
  0x72   : > { %4118 = vmatmul.mubr.msk.f32.gmra.mrb[38].mxu0 %vm456_vm0, %v251_v42 }
  0x73   : > { %737 = vmatprep.mubr.f32.mxu0 %v9321_v0 }
  0x76   : > { %4119 = vmatmul.mubr.msk.f32.gmra.mrb[40].mxu0 %vm456_vm0, %v252_v43  ;;  %v261_v43 = vld [vmem:[%s9316_s1 + $0xe8] sm:$0xff] }
  0x77   : > { %743 = vmatprep.mubr.f32.mxu0 %v9321_v0 }
  0x7a   : > { %4120 = vmatmul.mubr.msk.f32.gmra.mrb[42].mxu0 %vm456_vm0, %v253_v44 }
  0x7b   : > { %749 = vmatprep.mubr.f32.mxu0 %v9321_v0 }
  0x7e   : > { %4121 = vmatmul.mubr.msk.f32.gmra.mrb[44].mxu0 %vm456_vm0, %v254_v45 }
  0x7f   : > { %755 = vmatprep.mubr.f32.mxu0 %v9321_v0 }
  0x82   : > { %4122 = vmatmul.mubr.msk.f32.gmra.mrb[46].mxu0 %vm456_vm0, %v255_v46 }
  0x83   : > { %761 = vmatprep.mubr.f32.mxu0 %v9321_v0 }
  0x86   : > { %4123 = vmatmul.mubr.msk.f32.gmra.mrb[48].mxu0 %vm456_vm0, %v256_v16 }
  0x87   : > { %767 = vmatprep.mubr.f32.mxu0 %v9321_v0 }
  0x8a   : > { %4124 = vmatmul.mubr.msk.f32.gmra.mrb[50].mxu0 %vm456_vm0, %v257_v20 }
  0x8b   : > { %773 = vmatprep.mubr.f32.mxu0 %v9321_v0 }
  0x8e   : > { %4125 = vmatmul.mubr.msk.f32.gmra.mrb[52].mxu0 %vm456_vm0, %v258_v26 }
  0x8f   : > { %779 = vmatprep.mubr.f32.mxu0 %v9321_v0 }
  0x92   : > { %4126 = vmatmul.mubr.msk.f32.gmra.mrb[54].mxu0 %vm456_vm0, %v259_v32 }
  0x93   : > { %785 = vmatprep.mubr.f32.mxu0 %v9321_v0 }
  0x96   : > { %4127 = vmatmul.mubr.msk.f32.gmra.mrb[56].mxu0 %vm456_vm0, %v260_v41 }
  0x97   : > { %v299_v47 = vpop.permute.xlu1 %298  ;;  %v339_v17 = vpop.permute.xlu0 %338  ;;  %791 = vmatprep.mubr.f32.mxu0 %v9321_v0 }
  0x9a   : > { %4128 = vmatmul.mubr.msk.f32.gmra.mrb[58].mxu0 %vm456_vm0, %v261_v43 }
  0x9b   : > { %v304_v48 = vpop.permute.xlu1 %303  ;;  %v344_v24 = vpop.permute.xlu0 %343  ;;  %1759 = vmatprep.mubr.bf16.mxu0 %v9323_v1 }
  0x9f   : > { %v5208_v49 = vpop.permute.xlu1 %353 }
  0xa0   : > { %v349_v30 = vpop.permute.xlu0 %348 }
  0xa3   : > { %v309_v53 = vpop.permute.xlu1 %308 }
  0xa7   : > { %v314_v63 = vpop.permute.xlu1 %313 }
  0xf9   : > { %v619_v50 = vpop.f32.mrb[0].mxu0 }
  0xfa   : > { %v621_v51 = vpop.f32.mrb[1].mxu0  ;;  %v620_v54 = vadd.f32 %v619_v50, %v299_v47 }
  0xfb   : > { %v622_v57 = vadd.f32 %v621_v51, %v299_v47 }
  0xfd   : > { %v625_v52 = vpop.f32.mrb[2].mxu0 }
  0xfe   : > { %v626_v55 = vadd.f32 %v625_v52, %v304_v48  ;;  %v627_v56 = vpop.f32.mrb[3].mxu0 }
  0xff   : > { %v628_v58 = vadd.f32 %v627_v56, %v304_v48 }
 0x100   : > { %v810_v59 = vpack.c.bf16 %v626_v55, %v620_v54 }
 0x101   : > { %v811_v60 = vpack.c.bf16 %v628_v58, %v622_v57  ;;  %v631_v61 = vpop.f32.mrb[4].mxu0  ;;  %v276_v57 = vld [vmem:[%s9317_s2 + $0x60] sm:$0xff]  ;;  %v277_v58 = vld [vmem:[%s9317_s2 + $0x68] sm:$0xff] }
 0x102   : > { %v633_v62 = vpop.f32.mrb[5].mxu0  ;;  %v632_v3 = vadd.f32 %v631_v61, %v309_v53 }
 0x103   : > { %963 = vmatprep.subr.bf16.mxu1 %v811_v60  ;;  %v634_v6 = vadd.f32 %v633_v62, %v309_v53  ;;  %v282_v60 = vld [vmem:[%s9317_s2 + $0x90] sm:$0xff] }
 0x104   : > { %964 = vmatpush1.bf16.msra.mxu1 %v810_v59 }
 0x105   : > { %v637_v2 = vpop.f32.mrb[6].mxu0 }
 0x106   : > { %v638_v4 = vadd.f32 %v637_v2, %v314_v63  ;;  %v639_v5 = vpop.f32.mrb[7].mxu0 }
 0x107   : > { %v640_v7 = vadd.f32 %v639_v5, %v314_v63  ;;  %v284_v5 = vld [vmem:[%s9317_s2 + $0xa0] sm:$0xff] }
 0x108   : > { %v812_v8 = vpack.c.bf16 %v638_v4, %v632_v3  ;;  %v283_v3 = vld [vmem:[%s9317_s2 + $0x98] sm:$0xff] }
 0x109   : > { %v813_v9 = vpack.c.bf16 %v640_v7, %v634_v6  ;;  %v5210_v10 = vpop.f32.mrb[8].mxu0 }
 0x10a   : > { %v5212_v11 = vpop.f32.mrb[9].mxu0 }
 0x10b   : > { %1727 = vmatprep.subr.bf16.mxu0 %v813_v9  ;;  %v285_v9 = vld [vmem:[%s9317_s2 + $0xa8] sm:$0xff] }
 0x10c   : > { %1728 = vmatpush1.bf16.msra.mxu0 %v812_v8 }
 0x10d   : > { %v5214_v12 = vpop.f32.mrb[10].mxu0 }
 0x10e   : > { %v5216_v13 = vpop.f32.mrb[11].mxu0 }
 0x111   : > { %v5218_v14 = vpop.f32.mrb[12].mxu0 }
 0x112   : > { %v5220_v15 = vpop.f32.mrb[13].mxu0 }
 0x115   : > { %v5225_v18 = vpop.f32.mrb[14].mxu0 }
 0x116   : > { %v5228_v19 = vpop.f32.mrb[15].mxu0 }
 0x119   : > { %v667_v21 = vpop.f32.mrb[16].mxu0 }
 0x11a   : > { %v668_v22 = vadd.f32 %v667_v21, %v339_v17  ;;  %v669_v23 = vpop.f32.mrb[17].mxu0 }
 0x11b   : > { %v670_v33 = vadd.f32 %v669_v23, %v339_v17  ;;  %v286_v17 = vld [vmem:[%s9317_s2 + $0xb0] sm:$0xff] }
 0x11c   : > { %834 = vxpose.xlu0.b32.start [1/2] (short) %v668_v22, 128 }
 0x11d   : > { %v673_v27 = vpop.f32.mrb[18].mxu0 }
 0x11e   : > { %v674_v28 = vadd.f32 %v673_v27, %v344_v24  ;;  %v675_v29 = vpop.f32.mrb[19].mxu0 }
 0x11f   : > { %v676_v38 = vadd.f32 %v675_v29, %v344_v24  ;;  %v287_v24 = vld [vmem:[%s9317_s2 + $0xb8] sm:$0xff] }
 0x120   : > { %835 = vxpose.xlu0.b32.end [2/2] (short) %v674_v28, 128  ;;  %v268_v28 = vld [vmem:[%s9317_s2 + $0x20] sm:$0xff] }
 0x121   : > { %v679_v31 = vpop.f32.mrb[20].mxu0 }
 0x122   : > { %v680_v34 = vadd.f32 %v679_v31, %v349_v30  ;;  %v681_v35 = vpop.f32.mrb[21].mxu0 }
 0x123   : > { %v682_v44 = vadd.f32 %v681_v35, %v349_v30  ;;  %v269_v30 = vld [vmem:[%s9317_s2 + $0x28] sm:$0xff] }
 0x124   : > { %v4291_v36 = vpack.i.bf16 %v680_v34, %v670_v33 }
 0x125   : > { %v685_v37 = vpop.f32.mrb[22].mxu0 }
 0x126   : > { %v686_v39 = vadd.f32 %v685_v37, %v5208_v49  ;;  %4292 = vxpose.xlu1.b32.start [1/2] (short) %v4291_v36, 128  ;;  %v687_v40 = vpop.f32.mrb[23].mxu0 }
 0x127   : > { %v688_v45 = vadd.f32 %v687_v40, %v5208_v49  ;;  %v280_v49 = vld [vmem:[%s9317_s2 + $0x80] sm:$0xff] }
 0x128   : > { %v4293_v42 = vpack.i.bf16 %v686_v39, %v676_v38 }
 0x129   : > { %v5263_v46 = vpop.f32.mrb[24].mxu0 }
 0x12a   : > { %4294 = vxpose.xlu1.b32.end [2/2] (short) %v4293_v42, 128  ;;  %v5265_v47 = vpop.f32.mrb[25].mxu0 }
 0x12d   : > { %v5267_v48 = vpop.f32.mrb[26].mxu0 }
 0x12e   : > { %v5269_v50 = vpop.f32.mrb[27].mxu0 }
 0x131   : > { %v5271_v51 = vpop.f32.mrb[28].mxu0 }
 0x132   : > { %v5273_v52 = vpop.f32.mrb[29].mxu0 }
 0x135   : > { %v5275_v53 = vpop.f32.mrb[30].mxu0 }
 0x136   : > { %v5277_v54 = vpop.f32.mrb[31].mxu0 }
 0x139   : > { %v5282_v55 = vpop.f32.mrb[32].mxu0 }
 0x13a   : > { %v5284_v56 = vpop.f32.mrb[33].mxu0 }
 0x13d   : > { %v5292_v59 = vpop.f32.mrb[34].mxu0 }
 0x13e   : > { %v5297_v61 = vpop.f32.mrb[35].mxu0 }
 0x141   : > { %v5299_v62 = vpop.f32.mrb[36].mxu0 }
 0x142   : > { %v5301_v63 = vpop.f32.mrb[37].mxu0 }
 0x145   : > { %v5303_v2 = vpop.f32.mrb[38].mxu0 }
 0x146   : > { %v5308_v4 = vpop.f32.mrb[39].mxu0 }
 0x149   : > { %v5313_v6 = vpop.f32.mrb[40].mxu0 }
 0x14a   : > { %v5315_v7 = vpop.f32.mrb[41].mxu0 }
 0x14d   : > { %v5317_v8 = vpop.f32.mrb[42].mxu0 }
 0x14e   : > { %v5322_v16 = vpop.f32.mrb[43].mxu0 }
 0x151   : > { %v5327_v20 = vpop.f32.mrb[44].mxu0 }
 0x152   : > { %v5329_v21 = vpop.f32.mrb[45].mxu0 }
 0x155   : > { %v5331_v23 = vpop.f32.mrb[46].mxu0 }
 0x156   : > { %v5336_v25 = vpop.f32.mrb[47].mxu0 }
 0x159   : > { %1631 = vxpose.xlu0.b32.start [1/2] (short) %v682_v44, 128 }
 0x15d   : > { %1632 = vxpose.xlu0.b32.end [2/2] (short) %v688_v45, 128 }
 0x180   : > { %378 = vperm.xlu1 %4290, %v280_v49  }
 0x184   : > { %358 = vperm.xlu1 %4290, %v276_v57  }
 0x188   : > { %363 = vperm.xlu1 %4290, %v277_v58  }
 0x18c   : > { %388 = vperm.xlu1 %4290, %v282_v60  }
 0x190   : > { %393 = vperm.xlu1 %4290, %v283_v3  }
 0x194   : > { %398 = vperm.xlu1 %4290, %v284_v5  }
 0x198   : > { %403 = vperm.xlu1 %4290, %v285_v9  }
 0x19c   : > { %408 = vperm.xlu1 %4290, %v286_v17   ;;  %v850_v22 = vpop.trf.xlu0  ;;  %v281_v17 = vld [vmem:[%s9317_s2 + $0x88] sm:$0xff] }
 0x1a0   : > { %413 = vperm.xlu1 %4290, %v287_v24   ;;  %v851_v26 = vpop.trf.xlu0 }
 0x1a1   : > { %v898_v27 = vpack.c.bf16 %v851_v26, %v850_v22 }
 0x1a3   : > { %4131 = vmatmul.mubr.msk.bf16.vlgmr.msra.gmra.mrb[4].mxu1 %vm914_vm1, %v898_v27 }
 0x1a4   : > { %318 = vperm.xlu1 %4290, %v268_v28   ;;  %v852_v29 = vpop.trf.xlu0  ;;  %1005 = vmatprep.mubr.bf16.mxu1 %v9323_v1 }
 0x1a6   : > { %v5346_v31 = vpop.trf.xlu1 }
 0x1a7   : > { %v4299_v33 = vunpack.i.h.bf16 %v5346_v31 }
 0x1a8   : > { %323 = vperm.xlu1 %4290, %v269_v30   ;;  %v853_v32 = vpop.trf.xlu0 }
 0x1a9   : > { %v899_v34 = vpack.c.bf16 %v853_v32, %v852_v29 }
 0x1aa   : > { %v5349_v35 = vpop.trf.xlu1 }
 0x1ab   : > { %v4304_v36 = vunpack.i.h.bf16 %v5349_v35  ;;  %4132 = vmatmul.mubr.msk.bf16.gmra.mrb[8].mxu1 %vm914_vm1, %v899_v34 }
 0x1ac   : > { %v854_v37 = vpop.trf.xlu0  ;;  %1015 = vmatprep.mubr.bf16.mxu1 %v9323_v1 }
 0x1ad   : > { %v1663_v38 = vpack.c.bf16 %v4304_v36, %v4299_v33 }
 0x1ae   : > { %v5354_v39 = vpop.trf.xlu1 }
 0x1af   : > { %4147 = vmatmul.mubr.msk.bf16.vlgmr.msra.gmra.mrb[60].mxu0 %vm914_vm1, %v1663_v38  ;;  %v4309_v41 = vunpack.i.h.bf16 %v5354_v39 }
 0x1b0   : > { %v855_v40 = vpop.trf.xlu0  ;;  %1769 = vmatprep.mubr.bf16.mxu0 %v9323_v1 }
 0x1b1   : > { %v900_v42 = vpack.c.bf16 %v855_v40, %v854_v37 }
 0x1b2   : > { %v5359_v43 = vpop.trf.xlu1 }
 0x1b3   : > { %v4314_v44 = vunpack.i.h.bf16 %v5359_v43  ;;  %4133 = vmatmul.mubr.msk.bf16.gmra.mrb[12].mxu1 %vm914_vm1, %v900_v42 }
 0x1b4   : > { %v856_v45 = vpop.trf.xlu0  ;;  %1025 = vmatprep.mubr.bf16.mxu1 %v9323_v1 }
 0x1b5   : > { %v1664_v49 = vpack.c.bf16 %v4314_v44, %v4309_v41 }
 0x1b6   : > { %v5364_v57 = vpop.trf.xlu1 }
 0x1b7   : > { %4148 = vmatmul.mubr.msk.bf16.gmra.mrb[64].mxu0 %vm914_vm1, %v1664_v49  ;;  %v4319_v60 = vunpack.i.h.bf16 %v5364_v57 }
 0x1b8   : > { %v857_v58 = vpop.trf.xlu0  ;;  %1779 = vmatprep.mubr.bf16.mxu0 %v9323_v1 }
 0x1b9   : > { %v901_v3 = vpack.c.bf16 %v857_v58, %v856_v45 }
 0x1ba   : > { %v5369_v5 = vpop.trf.xlu1 }
 0x1bb   : > { %v4324_v9 = vunpack.i.h.bf16 %v5369_v5  ;;  %4134 = vmatmul.mubr.msk.bf16.gmra.mrb[16].mxu1 %vm914_vm1, %v901_v3 }
 0x1bc   : > { %v858_v22 = vpop.trf.xlu0  ;;  %1035 = vmatprep.mubr.bf16.mxu1 %v9323_v1 }
 0x1bd   : > { %v1665_v24 = vpack.c.bf16 %v4324_v9, %v4319_v60 }
 0x1be   : > { %v5377_v26 = vpop.trf.xlu1  ;;  %383 = vperm.xlu0 %4289, %v281_v17  }
 0x1bf   : > { %4149 = vmatmul.mubr.msk.bf16.gmra.mrb[68].mxu0 %vm914_vm1, %v1665_v24  ;;  %v4329_v28 = vunpack.i.h.bf16 %v5377_v26 }
 0x1c0   : > { %v859_v27 = vpop.trf.xlu0  ;;  %1789 = vmatprep.mubr.bf16.mxu0 %v9323_v1 }
 0x1c1   : > { %v902_v29 = vpack.c.bf16 %v859_v27, %v858_v22 }
 0x1c2   : > { %v5382_v30 = vpop.trf.xlu1 }
 0x1c3   : > { %v4334_v32 = vunpack.i.h.bf16 %v5382_v30  ;;  %4135 = vmatmul.mubr.msk.bf16.gmra.mrb[20].mxu1 %vm914_vm1, %v902_v29 }
 0x1c4   : > { %v860_v33 = vpop.trf.xlu0  ;;  %1045 = vmatprep.mubr.bf16.mxu1 %v9323_v1 }
 0x1c5   : > { %v1666_v34 = vpack.c.bf16 %v4334_v32, %v4329_v28 }
 0x1c6   : > { %v5387_v36 = vpop.trf.xlu1 }
 0x1c7   : > { %4150 = vmatmul.mubr.msk.bf16.gmra.mrb[72].mxu0 %vm914_vm1, %v1666_v34  ;;  %v4339_v38 = vunpack.i.h.bf16 %v5387_v36 }
 0x1c8   : > { %v861_v37 = vpop.trf.xlu0  ;;  %1799 = vmatprep.mubr.bf16.mxu0 %v9323_v1 }
 0x1c9   : > { %v903_v40 = vpack.c.bf16 %v861_v37, %v860_v33 }
 0x1ca   : > { %v5392_v41 = vpop.trf.xlu1 }
 0x1cb   : > { %v4344_v42 = vunpack.i.h.bf16 %v5392_v41  ;;  %4136 = vmatmul.mubr.msk.bf16.gmra.mrb[24].mxu1 %vm914_vm1, %v903_v40  ;;  %v4301_v40 = vunpack.i.l.bf16 %v5349_v35  ;;  %v4306_v35 = vunpack.i.l.bf16 %v5354_v39  ;;  %v4321_v39 = vunpack.i.l.bf16 %v5369_v5 }
 0x1cc   : > { %v862_v44 = vpop.trf.xlu0  ;;  %1055 = vmatprep.mubr.bf16.mxu1 %v9323_v1  ;;  %v4326_v5 = vunpack.i.l.bf16 %v5377_v26 }
 0x1cd   : > { %v1667_v45 = vpack.c.bf16 %v4344_v42, %v4339_v38  ;;  %v4296_v38 = vunpack.i.l.bf16 %v5346_v31 }
 0x1ce   : > { %v5397_v49 = vpop.trf.xlu1 }
 0x1cf   : > { %4151 = vmatmul.mubr.msk.bf16.gmra.mrb[76].mxu0 %vm914_vm1, %v1667_v45  ;;  %v4349_v60 = vunpack.i.h.bf16 %v5397_v49 }
 0x1d0   : > { %v863_v58 = vpop.trf.xlu0  ;;  %1809 = vmatprep.mubr.bf16.mxu0 %v9323_v1 }
 0x1d1   : > { %v904_v3 = vpack.c.bf16 %v863_v58, %v862_v44 }
 0x1d2   : > { %v5402_v9 = vpop.trf.xlu1 }
 0x1d3   : > { %v4354_v17 = vunpack.i.h.bf16 %v5402_v9  ;;  %4137 = vmatmul.mubr.msk.bf16.gmra.mrb[28].mxu1 %vm914_vm1, %v904_v3 }
 0x1d4   : > { %v864_v22 = vpop.trf.xlu0  ;;  %1065 = vmatprep.mubr.bf16.mxu1 %v9323_v1 }
 0x1d5   : > { %v1668_v24 = vpack.c.bf16 %v4354_v17, %v4349_v60  ;;  %v906_v60 = vpack.c.bf16 %v4301_v40, %v4296_v38  ;;  %v5435_v38 = vpop.f32.mrb[0].mxu1  ;;  %v4316_v40 = vunpack.i.l.bf16 %v5364_v57 }
 0x1d6   : > { %v5407_v27 = vpop.trf.xlu1  ;;  %9824 = vst [vmem:[#allocation5_spill] sm:$0xff] %v5435_v38 }
 0x1d7   : > { %4152 = vmatmul.mubr.msk.bf16.gmra.mrb[80].mxu0 %vm914_vm1, %v1668_v24  ;;  %v4359_v29 = vunpack.i.h.bf16 %v5407_v27 }
 0x1d8   : > { %v865_v28 = vpop.trf.xlu0  ;;  %1819 = vmatprep.mubr.bf16.mxu0 %v9323_v1 }
 0x1d9   : > { %v905_v32 = vpack.c.bf16 %v865_v28, %v864_v22  ;;  %v4311_v22 = vunpack.i.l.bf16 %v5359_v43  ;;  %v5439_v43 = vpop.f32.mrb[1].mxu1 }
 0x1da   : > { %v5412_v33 = vpop.trf.xlu1  ;;  %9825 = vst [vmem:[#allocation6_spill] sm:$0xff] %v5439_v43 }
 0x1db   : > { %v4364_v34 = vunpack.i.h.bf16 %v5412_v33  ;;  %4138 = vmatmul.mubr.msk.bf16.gmra.mrb[32].mxu1 %vm914_vm1, %v905_v32 }
 0x1dc   : > { %1075 = vmatprep.mubr.bf16.mxu1 %v9323_v1  ;;  %v1647_v37 = vpop.trf.xlu0 }
 0x1dd   : > { %v1669_v42 = vpack.c.bf16 %v4364_v34, %v4359_v29  ;;  %v907_v29 = vpack.c.bf16 %v4311_v22, %v4306_v35 }
 0x1de   : > { %v5419_v44 = vpop.trf.xlu1 }
 0x1df   : > { %4153 = vmatmul.mubr.msk.bf16.gmra.mrb[84].mxu0 %vm914_vm1, %v1669_v42  ;;  %v4369_v58 = vunpack.i.h.bf16 %v5419_v44 }
 0x1e0   : > { %1829 = vmatprep.mubr.bf16.mxu0 %v9323_v1  ;;  %v1648_v45 = vpop.trf.xlu0 }
 0x1e1   : > { %v1671_v32 = vpack.c.bf16 %v1648_v45, %v1647_v37 }
 0x1e2   : > { %v5424_v3 = vpop.trf.xlu1 }
 0x1e3   : > { %v4374_v17 = vunpack.i.h.bf16 %v5424_v3  ;;  %4139 = vmatmul.mubr.msk.bf16.gmra.mrb[36].mxu1 %vm914_vm1, %v906_v60  ;;  %v908_v60 = vpack.c.bf16 %v4321_v39, %v4316_v40 }
 0x1e4   : > { %1085 = vmatprep.mubr.bf16.mxu1 %v9323_v1  ;;  %v1649_v31 = vpop.trf.xlu0 }
 0x1e5   : > { %v1670_v24 = vpack.c.bf16 %v4374_v17, %v4369_v58  ;;  %v5443_v58 = vpop.f32.mrb[2].mxu1  ;;  %v4331_v17 = vunpack.i.l.bf16 %v5382_v30 }
 0x1e6   : > { %9826 = vst [vmem:[#allocation7_spill] sm:$0xff] %v5443_v58  ;;  %v5445_v37 = vpop.f32.mrb[3].mxu1 }
 0x1e7   : > { %4154 = vmatmul.mubr.msk.bf16.gmra.mrb[88].mxu0 %vm914_vm1, %v1670_v24  ;;  %9827 = vst [vmem:[#allocation8_spill] sm:$0xff] %v5445_v37  ;;  %v909_v22 = vpack.c.bf16 %v4331_v17, %v4326_v5 }
 0x1e8   : > { %1839 = vmatprep.mubr.bf16.mxu0 %v9323_v1  ;;  %v1650_v28 = vpop.trf.xlu0 }
 0x1e9   : > { %v1672_v45 = vpack.c.bf16 %v1650_v28, %v1649_v31  ;;  %v4336_v31 = vunpack.i.l.bf16 %v5387_v36  ;;  %v4341_v28 = vunpack.i.l.bf16 %v5392_v41  ;;  %v4346_v41 = vunpack.i.l.bf16 %v5397_v49 }
 0x1eb   : > { %4140 = vmatmul.mubr.msk.bf16.gmra.mrb[40].mxu1 %vm914_vm1, %v907_v29  ;;  %v910_v30 = vpack.c.bf16 %v4341_v28, %v4336_v31 }
 0x1ec   : > { %1095 = vmatprep.mubr.bf16.mxu1 %v9323_v1  ;;  %v1651_v34 = vpop.trf.xlu0 }
 0x1ef   : > { %4155 = vmatmul.mubr.msk.bf16.gmra.mrb[92].mxu0 %vm914_vm1, %v1671_v32 }
 0x1f0   : > { %1849 = vmatprep.mubr.bf16.mxu0 %v9323_v1  ;;  %v1652_v42 = vpop.trf.xlu0 }
 0x1f1   : > { %v1673_v24 = vpack.c.bf16 %v1652_v42, %v1651_v34 }
 0x1f3   : > { %4141 = vmatmul.mubr.msk.bf16.gmra.mrb[44].mxu1 %vm914_vm1, %v908_v60  ;;  %v4351_v60 = vunpack.i.l.bf16 %v5402_v9  ;;  %v4356_v9 = vunpack.i.l.bf16 %v5407_v27 }
 0x1f4   : > { %1105 = vmatprep.mubr.bf16.mxu1 %v9323_v1  ;;  %v1653_v57 = vpop.trf.xlu0 }
 0x1f7   : > { %4156 = vmatmul.mubr.msk.bf16.gmra.mrb[96].mxu0 %vm914_vm1, %v1672_v45 }
 0x1f8   : > { %1859 = vmatprep.mubr.bf16.mxu0 %v9323_v1  ;;  %v1654_v35 = vpop.trf.xlu0 }
 0x1f9   : > { %v1674_v39 = vpack.c.bf16 %v1654_v35, %v1653_v57  ;;  %v4361_v35 = vunpack.i.l.bf16 %v5412_v33 }
 0x1fb   : > { %4142 = vmatmul.mubr.msk.bf16.gmra.mrb[48].mxu1 %vm914_vm1, %v909_v22  ;;  %v912_v27 = vpack.c.bf16 %v4361_v35, %v4356_v9 }
 0x1fc   : > { %1115 = vmatprep.mubr.bf16.mxu1 %v9323_v1  ;;  %v1655_v29 = vpop.trf.xlu0 }
 0x1ff   : > { %v5457_v32 = vpop.permute.xlu1 %378  ;;  %4157 = vmatmul.mubr.msk.bf16.gmra.mrb[100].mxu0 %vm914_vm1, %v1673_v24 }
 0x200   : > { %1869 = vmatprep.mubr.bf16.mxu0 %v9323_v1  ;;  %v1656_v26 = vpop.trf.xlu0 }
 0x201   : > { %v1675_v49 = vpack.c.bf16 %v1656_v26, %v1655_v29 }
 0x203   : > { %v359_v40 = vpop.permute.xlu1 %358  ;;  %4143 = vmatmul.mubr.msk.bf16.gmra.mrb[52].mxu1 %vm914_vm1, %v910_v30 }
 0x204   : > { %v692_v34 = vadd.f32 %v5263_v46, %v359_v40  ;;  %v694_v42 = vadd.f32 %v5265_v47, %v359_v40  ;;  %1125 = vmatprep.mubr.bf16.mxu1 %v9323_v1  ;;  %v1657_v36 = vpop.trf.xlu0  ;;  %v911_v47 = vpack.c.bf16 %v4351_v60, %v4346_v41 }
 0x206   : > { %2363 = vxpose.xlu1.b32.start [1/2] (short) %v692_v34, 128  ;;  %2395 = vxpose.xlu0.b32.start [1/2] (short) %v694_v42, 128  ;;  %v4366_v34 = vunpack.i.l.bf16 %v5419_v44  ;;  %v4371_v42 = vunpack.i.l.bf16 %v5424_v3 }
 0x207   : > { %v364_v45 = vpop.permute.xlu1 %363  ;;  %4158 = vmatmul.mubr.msk.bf16.gmra.mrb[104].mxu0 %vm914_vm1, %v1674_v39 }
 0x208   : > { %v698_v5 = vadd.f32 %v5267_v48, %v364_v45  ;;  %v700_v57 = vadd.f32 %v5269_v50, %v364_v45  ;;  %1879 = vmatprep.mubr.bf16.mxu0 %v9323_v1  ;;  %v1658_v46 = vpop.trf.xlu0  ;;  %v913_v44 = vpack.c.bf16 %v4371_v42, %v4366_v34 }
 0x20a   : > { %2364 = vxpose.xlu1.b32.end [2/2] (short) %v698_v5, 128  ;;  %2396 = vxpose.xlu0.b32.end [2/2] (short) %v700_v57, 128 }
 0x20b   : > { %v389_v17 = vpop.permute.xlu1 %388  ;;  %4144 = vmatmul.mubr.msk.bf16.gmra.mrb[56].mxu1 %vm914_vm1, %v911_v47 }
 0x20c   : > { %1135 = vmatprep.mubr.bf16.mxu1 %v9323_v1  ;;  %v1659_v22 = vpop.trf.xlu0  ;;  %v5477_v50 = vadd.f32 %v5299_v62, %v389_v17  ;;  %v5480_v24 = vadd.f32 %v5301_v63, %v389_v17  ;;  %v5493_v62 = vpop.f32.mrb[48].mxu0  ;;  %v1676_v63 = vpack.c.bf16 %v1658_v46, %v1657_v36 }
 0x20e   : > { %9828 = vst [vmem:[#allocation9_spill] sm:$0xff] %v5477_v50  ;;  %9829 = vst [vmem:[#allocation10_spill] sm:$0xff] %v5480_v24 }
 0x20f   : > { %v394_v48 = vpop.permute.xlu1 %393  ;;  %4159 = vmatmul.mubr.msk.bf16.gmra.mrb[108].mxu0 %vm914_vm1, %v1675_v49 }
 0x210   : > { %v5483_v31 = vadd.f32 %v5303_v2, %v394_v48  ;;  %v5486_v29 = vadd.f32 %v5308_v4, %v394_v48  ;;  %1889 = vmatprep.mubr.bf16.mxu0 %v9323_v1  ;;  %v5496_v2 = vpop.f32.mrb[49].mxu0  ;;  %v1660_v40 = vpop.trf.xlu0 }
 0x211   : > { %v5505_v39 = vpop.f32.mrb[50].mxu0 }
 0x212   : > { %9830 = vst [vmem:[#allocation11_spill] sm:$0xff] %v5483_v31  ;;  %9831 = vst [vmem:[#allocation12_spill] sm:$0xff] %v5486_v29  ;;  %v5509_v41 = vpop.f32.mrb[51].mxu0 }
 0x213   : > { %v399_v26 = vpop.permute.xlu1 %398  ;;  %4145 = vmatmul.mubr.msk.bf16.gmra.mrb[60].mxu1 %vm914_vm1, %v912_v27  ;;  %v5512_v60 = vpop.f32.mrb[52].mxu0 }
 0x214   : > { %v5499_v4 = vadd.f32 %v5313_v6, %v399_v26  ;;  %v5502_v30 = vadd.f32 %v5315_v7, %v399_v26  ;;  %1145 = vmatprep.mubr.bf16.mxu1 %v9323_v1  ;;  %v5521_v45 = vpop.f32.mrb[53].mxu0  ;;  %v1661_v46 = vpop.trf.xlu0 }
 0x215   : > { %v5523_v5 = vpop.f32.mrb[54].mxu0 }
 0x216   : > { %9832 = vst [vmem:[#allocation13_spill] sm:$0xff] %v5499_v4  ;;  %9833 = vst [vmem:[#allocation14_spill] sm:$0xff] %v5502_v30  ;;  %v5529_v47 = vpop.f32.mrb[55].mxu0 }
 0x217   : > { %v404_v36 = vpop.permute.xlu1 %403  ;;  %4160 = vmatmul.mubr.msk.bf16.gmra.mrb[112].mxu0 %vm914_vm1, %v1676_v63  ;;  %v5532_v17 = vpop.f32.mrb[56].mxu0 }
 0x218   : > { %v5515_v6 = vadd.f32 %v5317_v8, %v404_v36  ;;  %v5518_v7 = vadd.f32 %v5322_v16, %v404_v36  ;;  %1899 = vmatprep.mubr.bf16.mxu0 %v9323_v1  ;;  %v1677_v16 = vpack.c.bf16 %v1660_v40, %v1659_v22  ;;  %9836 = vst [vmem:[#allocation17_spill] sm:$0xff] %v5532_v17  ;;  %v5540_v35 = vpop.f32.mrb[57].mxu0 }
 0x219   : > { %9839 = vst [vmem:[#allocation20_spill] sm:$0xff] %v5540_v35  ;;  %v5542_v48 = vpop.f32.mrb[58].mxu0 }
 0x21a   : > { %9834 = vst [vmem:[#allocation15_spill] sm:$0xff] %v5515_v6  ;;  %9835 = vst [vmem:[#allocation16_spill] sm:$0xff] %v5518_v7  ;;  %v5544_v27 = vpop.f32.mrb[59].mxu0 }
 0x21b   : > { %v409_v8 = vpop.permute.xlu1 %408  ;;  %4146 = vmatmul.mubr.msk.bf16.gmra.mrb[64].mxu1 %vm914_vm1, %v913_v44  ;;  %9840 = vst [vmem:[#allocation21_spill] sm:$0xff] %v5542_v48  ;;  %9841 = vst [vmem:[#allocation22_spill] sm:$0xff] %v5544_v27 }
 0x21c   : > { %v5535_v49 = vadd.f32 %v5327_v20, %v409_v8  ;;  %v5538_v9 = vadd.f32 %v5329_v21, %v409_v8  ;;  %v1662_v20 = vpop.trf.xlu0 }
 0x21d   : > { %v1678_v42 = vpack.c.bf16 %v1662_v20, %v1661_v46 }
 0x21e   : > { %9837 = vst [vmem:[#allocation18_spill] sm:$0xff] %v5535_v49  ;;  %9838 = vst [vmem:[#allocation19_spill] sm:$0xff] %v5538_v9 }
 0x21f   : > { %v414_v26 = vpop.permute.xlu1 %413  ;;  %4161 = vmatmul.mubr.msk.bf16.gmra.mrb[116].mxu0 %vm914_vm1, %v1677_v16 }
 0x220   : > { %v5548_v63 = vadd.f32 %v5331_v23, %v414_v26  ;;  %v5551_v22 = vadd.f32 %v5336_v25, %v414_v26  ;;  %1909 = vmatprep.mubr.bf16.mxu0 %v9323_v1  ;;  %v718_v26 = vadd.f32 %v5284_v56, %v5457_v32  ;;  %v289_v56 = vld [vmem:[%s9317_s2 + $0xc8] sm:$0xff] }
 0x222   : > { %9842 = vst [vmem:[#allocation23_spill] sm:$0xff] %v5548_v63  ;;  %9843 = vst [vmem:[#allocation24_spill] sm:$0xff] %v5551_v22 }
 0x223   : > { %v319_v34 = vpop.permute.xlu1 %318 }
 0x224   : > { %v5559_v36 = vadd.f32 %v5210_v10, %v319_v34  ;;  %v5562_v23 = vadd.f32 %v5212_v11, %v319_v34  ;;  %v5577_v11 = vadd.f32 %v5282_v55, %v5457_v32  ;;  %v288_v55 = vld [vmem:[%s9317_s2 + $0xc0] sm:$0xff]  ;;  %v270_v32 = vld [vmem:[%s9317_s2 + $0x30] sm:$0xff] }
 0x226   : > { %9844 = vst [vmem:[#allocation25_spill] sm:$0xff] %v5559_v36  ;;  %9845 = vst [vmem:[#allocation26_spill] sm:$0xff] %v5562_v23 }
 0x227   : > { %v324_v44 = vpop.permute.xlu1 %323  ;;  %4162 = vmatmul.mubr.msk.bf16.gmra.mrb[120].mxu0 %vm914_vm1, %v1678_v42  ;;  %9848 = vst [vmem:[#allocation29_spill] sm:$0xff] %v5577_v11  ;;  %v278_v42 = vld [vmem:[%s9317_s2 + $0x70] sm:$0xff] }
 0x228   : > { %v5566_v25 = vadd.f32 %v5214_v12, %v324_v44  ;;  %v5569_v8 = vadd.f32 %v5216_v13, %v324_v44  ;;  %v291_v44 = vld [vmem:[%s9317_s2 + $0xd8] sm:$0xff] }
 0x22a   : > { %9846 = vst [vmem:[#allocation27_spill] sm:$0xff] %v5566_v25  ;;  %9847 = vst [vmem:[#allocation28_spill] sm:$0xff] %v5569_v8 }
 0x23d   : > { %v384_v10 = vpop.permute.xlu0 %383 }
 0x23e   : > { %v5582_v12 = vadd.f32 %v5292_v59, %v384_v10  ;;  %v724_v13 = vadd.f32 %v5297_v61, %v384_v10  ;;  %v279_v59 = vld [vmem:[%s9317_s2 + $0x78] sm:$0xff]  ;;  %v290_v61 = vld [vmem:[%s9317_s2 + $0xd0] sm:$0xff] }
 0x23f   : > { %v271_v10 = vld [vmem:[%s9317_s2 + $0x38] sm:$0xff] }
 0x240   : > { %9849 = vst [vmem:[#allocation30_spill] sm:$0xff] %v5582_v12  ;;  %v819_v34 = vpack.c.bf16 %v724_v13, %v718_v26 }
 0x242   : > { %1560 = vmatprep.mubr.bf16.mxu1 %v819_v34 }
 0x260   : > { %368 = vperm.xlu1 %4290, %v278_v42  }
 0x264   : > { %418 = vperm.xlu1 %4290, %v288_v55  }
 0x268   : > { %423 = vperm.xlu1 %4290, %v289_v56  }
 0x26b   : > { %373 = vperm.xlu0 %4289, %v279_v59  }
 0x26c   : > { %428 = vperm.xlu1 %4290, %v290_v61  }
 0x26f   : > { %328 = vperm.xlu0 %4289, %v270_v32  }
 0x270   : > { %433 = vperm.xlu1 %4290, %v291_v44  }
 0x274   : > { %333 = vperm.xlu1 %4290, %v271_v10  }
 0x276   : > { %v5611_v26 = vpop.f32.mrb[4].mxu1 }
 0x277   : > { %v5613_v13 = vpop.f32.mrb[5].mxu1 }
 0x278   : > { %9850 = vst [vmem:[#allocation31_spill] sm:$0xff] %v5613_v13  ;;  %v5615_v34 = vpop.f32.mrb[6].mxu1 }
 0x279   : > { %v5617_v42 = vpop.f32.mrb[7].mxu1 }
 0x27a   : > { %9851 = vst [vmem:[#allocation32_spill] sm:$0xff] %v5617_v42 }
 0x27e   : > { %v5619_v55 = vpop.f32.mrb[8].mxu1 }
 0x27f   : > { %v1156_v56 = vmax.f32 %v5611_v26, %v5619_v55  ;;  %v5623_v59 = vpop.f32.mrb[9].mxu1 }
 0x280   : > { %9852 = vst [vmem:[#allocation33_spill] sm:$0xff] %v5623_v59  ;;  %v1193_v61 = vmax.f32 %v5613_v13, %v5623_v59  ;;  %v5627_v32 = vpop.f32.mrb[10].mxu1 }
 0x281   : > { %v1157_v44 = vmax.f32 %v5615_v34, %v5627_v32  ;;  %v5631_v10 = vpop.f32.mrb[11].mxu1 }
 0x282   : > { %9853 = vst [vmem:[#allocation34_spill] sm:$0xff] %v5631_v10  ;;  %v1194_v0 = vmax.f32 %v5617_v42, %v5631_v10  ;;  %v5635_v1 = vpop.f32.mrb[60].mxu0 }
 0x283   : > { %9854 = vst [vmem:[#allocation35_spill] sm:$0xff] %v5635_v1  ;;  %v5637_v21 = vpop.f32.mrb[61].mxu0 }
 0x284   : > { %9855 = vst [vmem:[#allocation36_spill] sm:$0xff] %v5637_v21  ;;  %v5639_v16 = vpop.f32.mrb[62].mxu0 }
 0x285   : > { %9856 = vst [vmem:[#allocation37_spill] sm:$0xff] %v5639_v16  ;;  %v5641_v40 = vpop.f32.mrb[63].mxu0 }
 0x286   : > { %9857 = vst [vmem:[#allocation38_spill] sm:$0xff] %v5641_v40  ;;  %v5643_v3 = vpop.f32.mrb[12].mxu1  ;;  %v5645_v46 = vpop.trf.xlu1 }
 0x287   : > { %9858 = vst [vmem:[#allocation39_spill] sm:$0xff] %v5645_v46  ;;  %v1158_v57 = vmax.f32 %v1156_v56, %v5643_v3  ;;  %v5648_v33 = vpop.f32.mrb[13].mxu1  ;;  %v5650_v28 = vpop.trf.xlu0 }
 0x288   : > { %9859 = vst [vmem:[#allocation40_spill] sm:$0xff] %v5648_v33  ;;  %9860 = vst [vmem:[#allocation41_spill] sm:$0xff] %v5650_v28  ;;  %v1195_v20 = vmax.f32 %v1193_v61, %v5648_v33  ;;  %v5653_v49 = vpop.f32.mrb[14].mxu1 }
 0x289   : > { %v1159_v63 = vmax.f32 %v1157_v44, %v5653_v49  ;;  %v5656_v36 = vpop.f32.mrb[15].mxu1 }
 0x28a   : > { %9861 = vst [vmem:[#allocation42_spill] sm:$0xff] %v5656_v36  ;;  %v1196_v25 = vmax.f32 %v1194_v0, %v5656_v36  ;;  %v5659_v9 = vpop.trf.xlu1  ;;  %v5661_v22 = vpop.f32.mrb[64].mxu0 }
 0x28b   : > { %9862 = vst [vmem:[#allocation43_spill] sm:$0xff] %v5659_v9  ;;  %9863 = vst [vmem:[#allocation44_spill] sm:$0xff] %v5661_v22  ;;  %v1920_v4 = vmax.f32 %v5635_v1, %v5661_v22  ;;  %v5667_v6 = vpop.f32.mrb[65].mxu0  ;;  %v5669_v61 = vpop.trf.xlu0 }
 0x28c   : > { %9864 = vst [vmem:[#allocation45_spill] sm:$0xff] %v5667_v6  ;;  %9865 = vst [vmem:[#allocation46_spill] sm:$0xff] %v5669_v61  ;;  %v1957_v44 = vmax.f32 %v5637_v21, %v5667_v6  ;;  %v5673_v23 = vpop.f32.mrb[66].mxu0 }
 0x28d   : > { %9866 = vst [vmem:[#allocation47_spill] sm:$0xff] %v5673_v23  ;;  %v1921_v8 = vmax.f32 %v5639_v16, %v5673_v23  ;;  %v5679_v43 = vpop.f32.mrb[67].mxu0 }
 0x28e   : > { %9867 = vst [vmem:[#allocation48_spill] sm:$0xff] %v5679_v43  ;;  %v5681_v56 = vpop.f32.mrb[16].mxu1  ;;  %v1958_v46 = vmax.f32 %v5641_v40, %v5679_v43  ;;  %v5685_v9 = vpop.trf.xlu1 }
 0x28f   : > { %9868 = vst [vmem:[#allocation49_spill] sm:$0xff] %v5685_v9  ;;  %v1160_v38 = vmax.f32 %v1158_v57, %v5681_v56  ;;  %v5688_v37 = vpop.f32.mrb[17].mxu1  ;;  %v5690_v58 = vpop.trf.xlu0 }
 0x290   : > { %9869 = vst [vmem:[#allocation50_spill] sm:$0xff] %v5688_v37  ;;  %9870 = vst [vmem:[#allocation51_spill] sm:$0xff] %v5690_v58  ;;  %v1197_v0 = vmax.f32 %v1195_v20, %v5688_v37  ;;  %v5693_v28 = vpop.f32.mrb[18].mxu1 }
 0x291   : > { %v1161_v61 = vmax.f32 %v1159_v63, %v5693_v28  ;;  %v5696_v35 = vpop.f32.mrb[19].mxu1 }
 0x292   : > { %9871 = vst [vmem:[#allocation52_spill] sm:$0xff] %v5696_v35  ;;  %v1198_v17 = vmax.f32 %v1196_v25, %v5696_v35  ;;  %v5699_v27 = vpop.f32.mrb[68].mxu0  ;;  %v5701_v48 = vpop.trf.xlu1 }
 0x293   : > { %9872 = vst [vmem:[#allocation53_spill] sm:$0xff] %v5699_v27  ;;  %9873 = vst [vmem:[#allocation54_spill] sm:$0xff] %v5701_v48  ;;  %v1922_v57 = vmax.f32 %v1920_v4, %v5699_v27  ;;  %v5704_v30 = vpop.f32.mrb[69].mxu0  ;;  %v5708_v20 = vpop.trf.xlu0 }
 0x294   : > { %9874 = vst [vmem:[#allocation55_spill] sm:$0xff] %v5704_v30  ;;  %9875 = vst [vmem:[#allocation56_spill] sm:$0xff] %v5708_v20  ;;  %v1959_v50 = vmax.f32 %v1957_v44, %v5704_v30  ;;  %v5711_v63 = vpop.f32.mrb[70].mxu0 }
 0x295   : > { %9876 = vst [vmem:[#allocation57_spill] sm:$0xff] %v5711_v63  ;;  %v1923_v31 = vmax.f32 %v1921_v8, %v5711_v63  ;;  %v5716_v24 = vpop.f32.mrb[71].mxu0 }
 0x296   : > { %9877 = vst [vmem:[#allocation58_spill] sm:$0xff] %v5716_v24  ;;  %v5718_v29 = vpop.f32.mrb[20].mxu1  ;;  %v1960_v4 = vmax.f32 %v1958_v46, %v5716_v24  ;;  %v5721_v11 = vpop.trf.xlu1 }
 0x297   : > { %9878 = vst [vmem:[#allocation59_spill] sm:$0xff] %v5721_v11  ;;  %v1162_v7 = vmax.f32 %v1160_v38, %v5718_v29  ;;  %v5724_v9 = vpop.f32.mrb[21].mxu1  ;;  %v5726_v44 = vpop.trf.xlu0 }
 0x298   : > { %9879 = vst [vmem:[#allocation60_spill] sm:$0xff] %v5724_v9  ;;  %9880 = vst [vmem:[#allocation61_spill] sm:$0xff] %v5726_v44  ;;  %v1199_v48 = vmax.f32 %v1197_v0, %v5724_v9  ;;  %v5729_v12 = vpop.f32.mrb[22].mxu1 }
 0x299   : > { %v1163_v8 = vmax.f32 %v1161_v61, %v5729_v12  ;;  %v5732_v25 = vpop.f32.mrb[23].mxu1 }
 0x29a   : > { %9881 = vst [vmem:[#allocation62_spill] sm:$0xff] %v5732_v25  ;;  %v1200_v58 = vmax.f32 %v1198_v17, %v5732_v25  ;;  %v5735_v20 = vpop.f32.mrb[72].mxu0  ;;  %v5737_v46 = vpop.trf.xlu1 }
 0x29b   : > { %9882 = vst [vmem:[#allocation63_spill] sm:$0xff] %v5735_v20  ;;  %9883 = vst [vmem:[#allocation64_spill] sm:$0xff] %v5737_v46  ;;  %v1924_v38 = vmax.f32 %v1922_v57, %v5735_v20  ;;  %v5740_v24 = vpop.f32.mrb[73].mxu0  ;;  %v5744_v0 = vpop.trf.xlu0 }
 0x29c   : > { %9884 = vst [vmem:[#allocation65_spill] sm:$0xff] %v5740_v24  ;;  %9885 = vst [vmem:[#allocation66_spill] sm:$0xff] %v5744_v0  ;;  %v1961_v43 = vmax.f32 %v1959_v50, %v5740_v24  ;;  %v5747_v61 = vpop.f32.mrb[74].mxu0 }
 0x29d   : > { %9886 = vst [vmem:[#allocation67_spill] sm:$0xff] %v5747_v61  ;;  %v1925_v6 = vmax.f32 %v1923_v31, %v5747_v61  ;;  %v5752_v40 = vpop.f32.mrb[75].mxu0 }
 0x29e   : > { %9887 = vst [vmem:[#allocation68_spill] sm:$0xff] %v5752_v40  ;;  %v5754_v21 = vpop.f32.mrb[24].mxu1  ;;  %v1962_v57 = vmax.f32 %v1960_v4, %v5752_v40  ;;  %v5757_v20 = vpop.trf.xlu1 }
 0x29f   : > { %9888 = vst [vmem:[#allocation69_spill] sm:$0xff] %v5757_v20  ;;  %v1164_v30 = vmax.f32 %v1162_v7, %v5754_v21  ;;  %v5760_v11 = vpop.f32.mrb[25].mxu1  ;;  %v5762_v50 = vpop.trf.xlu0 }
 0x2a0   : > { %9889 = vst [vmem:[#allocation70_spill] sm:$0xff] %v5760_v11  ;;  %9890 = vst [vmem:[#allocation71_spill] sm:$0xff] %v5762_v50  ;;  %v1201_v46 = vmax.f32 %v1199_v48, %v5760_v11  ;;  %v5765_v24 = vpop.f32.mrb[26].mxu1 }
 0x2a1   : > { %v1165_v31 = vmax.f32 %v1163_v8, %v5765_v24  ;;  %v5768_v17 = vpop.f32.mrb[27].mxu1 }
 0x2a2   : > { %9891 = vst [vmem:[#allocation72_spill] sm:$0xff] %v5768_v17  ;;  %v1202_v44 = vmax.f32 %v1200_v58, %v5768_v17  ;;  %v5771_v0 = vpop.f32.mrb[76].mxu0  ;;  %v5773_v4 = vpop.trf.xlu1 }
 0x2a3   : > { %9892 = vst [vmem:[#allocation73_spill] sm:$0xff] %v5771_v0  ;;  %9893 = vst [vmem:[#allocation74_spill] sm:$0xff] %v5773_v4  ;;  %v1926_v7 = vmax.f32 %v1924_v38, %v5771_v0  ;;  %v5776_v40 = vpop.f32.mrb[77].mxu0  ;;  %v5780_v48 = vpop.trf.xlu0 }
 0x2a4   : > { %9894 = vst [vmem:[#allocation75_spill] sm:$0xff] %v5776_v40  ;;  %9895 = vst [vmem:[#allocation76_spill] sm:$0xff] %v5780_v48  ;;  %v1963_v63 = vmax.f32 %v1961_v43, %v5776_v40  ;;  %v5783_v8 = vpop.f32.mrb[78].mxu0 }
 0x2a5   : > { %9896 = vst [vmem:[#allocation77_spill] sm:$0xff] %v5783_v8  ;;  %v1927_v27 = vmax.f32 %v1925_v6, %v5783_v8  ;;  %v5788_v23 = vpop.f32.mrb[79].mxu0 }
 0x2a6   : > { %9897 = vst [vmem:[#allocation78_spill] sm:$0xff] %v5788_v23  ;;  %v5790_v22 = vpop.f32.mrb[28].mxu1  ;;  %v1964_v38 = vmax.f32 %v1962_v57, %v5788_v23  ;;  %v5793_v0 = vpop.trf.xlu1 }
 0x2a7   : > { %9898 = vst [vmem:[#allocation79_spill] sm:$0xff] %v5793_v0  ;;  %v1166_v61 = vmax.f32 %v1164_v30, %v5790_v22  ;;  %v5796_v20 = vpop.f32.mrb[29].mxu1  ;;  %v5798_v43 = vpop.trf.xlu0 }
 0x2a8   : > { %9899 = vst [vmem:[#allocation80_spill] sm:$0xff] %v5796_v20  ;;  %9900 = vst [vmem:[#allocation81_spill] sm:$0xff] %v5798_v43  ;;  %v1203_v4 = vmax.f32 %v1201_v46, %v5796_v20  ;;  %v5801_v40 = vpop.f32.mrb[30].mxu1 }
 0x2a9   : > { %v1167_v6 = vmax.f32 %v1165_v31, %v5801_v40  ;;  %v5804_v58 = vpop.f32.mrb[31].mxu1 }
 0x2aa   : > { %9901 = vst [vmem:[#allocation82_spill] sm:$0xff] %v5804_v58  ;;  %v1204_v50 = vmax.f32 %v1202_v44, %v5804_v58  ;;  %v5807_v48 = vpop.f32.mrb[80].mxu0  ;;  %v5809_v57 = vpop.trf.xlu1 }
 0x2ab   : > { %9902 = vst [vmem:[#allocation83_spill] sm:$0xff] %v5807_v48  ;;  %9903 = vst [vmem:[#allocation84_spill] sm:$0xff] %v5809_v57  ;;  %v1928_v30 = vmax.f32 %v1926_v7, %v5807_v48  ;;  %v5812_v23 = vpop.f32.mrb[81].mxu0  ;;  %v5816_v46 = vpop.trf.xlu0 }
 0x2ac   : > { %9904 = vst [vmem:[#allocation85_spill] sm:$0xff] %v5812_v23  ;;  %9905 = vst [vmem:[#allocation86_spill] sm:$0xff] %v5816_v46  ;;  %v1965_v16 = vmax.f32 %v1963_v63, %v5812_v23  ;;  %v5819_v31 = vpop.f32.mrb[82].mxu0 }
 0x2ad   : > { %9906 = vst [vmem:[#allocation87_spill] sm:$0xff] %v5819_v31  ;;  %v1929_v1 = vmax.f32 %v1927_v27, %v5819_v31  ;;  %v5824_v58 = vpop.f32.mrb[83].mxu0 }
 0x2ae   : > { %9907 = vst [vmem:[#allocation88_spill] sm:$0xff] %v5824_v58  ;;  %v5826_v20 = vpop.f32.mrb[32].mxu1  ;;  %v1966_v7 = vmax.f32 %v1964_v38, %v5824_v58  ;;  %v5829_v48 = vpop.trf.xlu1 }
 0x2af   : > { %9908 = vst [vmem:[#allocation89_spill] sm:$0xff] %v5829_v48  ;;  %v1168_v8 = vmax.f32 %v1166_v61, %v5826_v20  ;;  %v5832_v0 = vpop.f32.mrb[33].mxu1  ;;  %v5834_v63 = vpop.trf.xlu0 }
 0x2b0   : > { %9909 = vst [vmem:[#allocation90_spill] sm:$0xff] %v5832_v0  ;;  %9910 = vst [vmem:[#allocation91_spill] sm:$0xff] %v5834_v63  ;;  %v1205_v57 = vmax.f32 %v1203_v4, %v5832_v0  ;;  %v5837_v23 = vpop.f32.mrb[34].mxu1 }
 0x2b1   : > { %v1169_v27 = vmax.f32 %v1167_v6, %v5837_v23  ;;  %v5840_v44 = vpop.f32.mrb[35].mxu1 }
 0x2b2   : > { %9911 = vst [vmem:[#allocation92_spill] sm:$0xff] %v5840_v44  ;;  %v1206_v43 = vmax.f32 %v1204_v50, %v5840_v44  ;;  %v5843_v46 = vpop.f32.mrb[84].mxu0  ;;  %v5845_v38 = vpop.trf.xlu1 }
 0x2b3   : > { %9912 = vst [vmem:[#allocation93_spill] sm:$0xff] %v5843_v46  ;;  %9913 = vst [vmem:[#allocation94_spill] sm:$0xff] %v5845_v38  ;;  %v1930_v61 = vmax.f32 %v1928_v30, %v5843_v46  ;;  %v5848_v58 = vpop.f32.mrb[85].mxu0  ;;  %v5852_v4 = vpop.trf.xlu0 }
 0x2b4   : > { %9914 = vst [vmem:[#allocation95_spill] sm:$0xff] %v5848_v58  ;;  %9915 = vst [vmem:[#allocation96_spill] sm:$0xff] %v5852_v4  ;;  %v1967_v0 = vmax.f32 %v1965_v16, %v5848_v58  ;;  %v5855_v6 = vpop.f32.mrb[86].mxu0 }
 0x2b5   : > { %9916 = vst [vmem:[#allocation97_spill] sm:$0xff] %v5855_v6  ;;  %v1931_v44 = vmax.f32 %v1929_v1, %v5855_v6  ;;  %v5860_v17 = vpop.f32.mrb[87].mxu0 }
 0x2b6   : > { %9917 = vst [vmem:[#allocation98_spill] sm:$0xff] %v5860_v17  ;;  %v5862_v11 = vpop.f32.mrb[36].mxu1  ;;  %v1968_v30 = vmax.f32 %v1966_v7, %v5860_v17  ;;  %v5865_v46 = vpop.trf.xlu1 }
 0x2b7   : > { %9918 = vst [vmem:[#allocation99_spill] sm:$0xff] %v5865_v46  ;;  %v1170_v31 = vmax.f32 %v1168_v8, %v5862_v11  ;;  %v5868_v48 = vpop.f32.mrb[37].mxu1  ;;  %v5870_v16 = vpop.trf.xlu0 }
 0x2b8   : > { %9919 = vst [vmem:[#allocation100_spill] sm:$0xff] %v5868_v48  ;;  %9920 = vst [vmem:[#allocation101_spill] sm:$0xff] %v5870_v16  ;;  %v1207_v38 = vmax.f32 %v1205_v57, %v5868_v48  ;;  %v5873_v58 = vpop.f32.mrb[38].mxu1 }
 0x2b9   : > { %v1171_v1 = vmax.f32 %v1169_v27, %v5873_v58  ;;  %v5876_v50 = vpop.f32.mrb[39].mxu1 }
 0x2ba   : > { %9921 = vst [vmem:[#allocation102_spill] sm:$0xff] %v5876_v50  ;;  %v1208_v63 = vmax.f32 %v1206_v43, %v5876_v50  ;;  %v5879_v4 = vpop.f32.mrb[88].mxu0  ;;  %v5881_v7 = vpop.trf.xlu1 }
 0x2bb   : > { %9922 = vst [vmem:[#allocation103_spill] sm:$0xff] %v5879_v4  ;;  %9923 = vst [vmem:[#allocation104_spill] sm:$0xff] %v5881_v7  ;;  %v1932_v8 = vmax.f32 %v1930_v61, %v5879_v4  ;;  %v5884_v17 = vpop.f32.mrb[89].mxu0  ;;  %v5888_v57 = vpop.trf.xlu0 }
 0x2bc   : > { %9924 = vst [vmem:[#allocation105_spill] sm:$0xff] %v5884_v17  ;;  %9925 = vst [vmem:[#allocation106_spill] sm:$0xff] %v5888_v57  ;;  %v1969_v48 = vmax.f32 %v1967_v0, %v5884_v17  ;;  %v5891_v27 = vpop.f32.mrb[90].mxu0 }
 0x2bd   : > { %9926 = vst [vmem:[#allocation107_spill] sm:$0xff] %v5891_v27  ;;  %v1933_v50 = vmax.f32 %v1931_v44, %v5891_v27  ;;  %v5896_v25 = vpop.f32.mrb[91].mxu0 }
 0x2be   : > { %9927 = vst [vmem:[#allocation108_spill] sm:$0xff] %v5896_v25  ;;  %v5898_v9 = vpop.f32.mrb[40].mxu1  ;;  %v1970_v61 = vmax.f32 %v1968_v30, %v5896_v25  ;;  %v5901_v4 = vpop.trf.xlu1 }
 0x2bf   : > { %9928 = vst [vmem:[#allocation109_spill] sm:$0xff] %v5901_v4  ;;  %v1172_v6 = vmax.f32 %v1170_v31, %v5898_v9  ;;  %v5904_v46 = vpop.f32.mrb[41].mxu1  ;;  %v5906_v0 = vpop.trf.xlu0 }
 0x2c0   : > { %9929 = vst [vmem:[#allocation110_spill] sm:$0xff] %v5904_v46  ;;  %9930 = vst [vmem:[#allocation111_spill] sm:$0xff] %v5906_v0  ;;  %v1209_v7 = vmax.f32 %v1207_v38, %v5904_v46  ;;  %v5909_v17 = vpop.f32.mrb[42].mxu1 }
 0x2c1   : > { %v1173_v44 = vmax.f32 %v1171_v1, %v5909_v17  ;;  %v5912_v43 = vpop.f32.mrb[43].mxu1 }
 0x2c2   : > { %9931 = vst [vmem:[#allocation112_spill] sm:$0xff] %v5912_v43  ;;  %v1210_v16 = vmax.f32 %v1208_v63, %v5912_v43  ;;  %v5915_v57 = vpop.f32.mrb[92].mxu0  ;;  %v5917_v30 = vpop.trf.xlu1 }
 0x2c3   : > { %9932 = vst [vmem:[#allocation113_spill] sm:$0xff] %v5915_v57  ;;  %9933 = vst [vmem:[#allocation114_spill] sm:$0xff] %v5917_v30  ;;  %v1934_v31 = vmax.f32 %v1932_v8, %v5915_v57  ;;  %v5920_v25 = vpop.f32.mrb[93].mxu0  ;;  %v5924_v38 = vpop.trf.xlu0 }
 0x2c4   : > { %9934 = vst [vmem:[#allocation115_spill] sm:$0xff] %v5920_v25  ;;  %9935 = vst [vmem:[#allocation116_spill] sm:$0xff] %v5924_v38  ;;  %v1971_v46 = vmax.f32 %v1969_v48, %v5920_v25  ;;  %v5927_v1 = vpop.f32.mrb[94].mxu0 }
 0x2c5   : > { %9936 = vst [vmem:[#allocation117_spill] sm:$0xff] %v5927_v1  ;;  %v1935_v43 = vmax.f32 %v1933_v50, %v5927_v1  ;;  %v5932_v35 = vpop.f32.mrb[95].mxu0 }
 0x2c6   : > { %9937 = vst [vmem:[#allocation118_spill] sm:$0xff] %v5932_v35  ;;  %v1972_v8 = vmax.f32 %v1970_v61, %v5932_v35  ;;  %v5935_v57 = vpop.f32.mrb[44].mxu1 }
 0x2c7   : > { %v1174_v37 = vmax.f32 %v1172_v6, %v5935_v57  ;;  %v5938_v27 = vpop.f32.mrb[45].mxu1 }
 0x2c8   : > { %9938 = vst [vmem:[#allocation119_spill] sm:$0xff] %v5938_v27  ;;  %v1211_v4 = vmax.f32 %v1209_v7, %v5938_v27  ;;  %v5941_v48 = vpop.f32.mrb[46].mxu1 }
 0x2c9   : > { %v1175_v30 = vmax.f32 %v1173_v44, %v5941_v48  ;;  %v5944_v25 = vpop.f32.mrb[47].mxu1 }
 0x2ca   : > { %9939 = vst [vmem:[#allocation120_spill] sm:$0xff] %v5944_v25  ;;  %v1212_v50 = vmax.f32 %v1210_v16, %v5944_v25  ;;  %v5947_v63 = vpop.f32.mrb[96].mxu0 }
 0x2cb   : > { %9940 = vst [vmem:[#allocation121_spill] sm:$0xff] %v5947_v63  ;;  %v1936_v61 = vmax.f32 %v1934_v31, %v5947_v63  ;;  %v5950_v0 = vpop.f32.mrb[97].mxu0 }
 0x2cc   : > { %9941 = vst [vmem:[#allocation122_spill] sm:$0xff] %v5950_v0  ;;  %v1973_v6 = vmax.f32 %v1971_v46, %v5950_v0  ;;  %v5953_v38 = vpop.f32.mrb[98].mxu0 }
 0x2cd   : > { %9942 = vst [vmem:[#allocation123_spill] sm:$0xff] %v5953_v38  ;;  %v1937_v7 = vmax.f32 %v1935_v43, %v5953_v38  ;;  %v5956_v35 = vpop.f32.mrb[99].mxu0 }
 0x2ce   : > { %9943 = vst [vmem:[#allocation124_spill] sm:$0xff] %v5956_v35  ;;  %v1974_v44 = vmax.f32 %v1972_v8, %v5956_v35  ;;  %v5959_v1 = vpop.f32.mrb[48].mxu1 }
 0x2cf   : > { %v1176_v16 = vmax.f32 %v1174_v37, %v5959_v1  ;;  %v5962_v25 = vpop.f32.mrb[49].mxu1 }
 0x2d0   : > { %9944 = vst [vmem:[#allocation125_spill] sm:$0xff] %v5962_v25  ;;  %v1213_v31 = vmax.f32 %v1211_v4, %v5962_v25  ;;  %v5965_v63 = vpop.f32.mrb[50].mxu1 }
 0x2d1   : > { %v1177_v46 = vmax.f32 %v1175_v30, %v5965_v63  ;;  %v5968_v0 = vpop.f32.mrb[51].mxu1 }
 0x2d2   : > { %9945 = vst [vmem:[#allocation126_spill] sm:$0xff] %v5968_v0  ;;  %v1214_v43 = vmax.f32 %v1212_v50, %v5968_v0  ;;  %v5971_v38 = vpop.f32.mrb[100].mxu0 }
 0x2d3   : > { %9946 = vst [vmem:[#allocation127_spill] sm:$0xff] %v5971_v38  ;;  %v1938_v8 = vmax.f32 %v1936_v61, %v5971_v38  ;;  %v5974_v35 = vpop.f32.mrb[101].mxu0 }
 0x2d4   : > { %9947 = vst [vmem:[#allocation128_spill] sm:$0xff] %v5974_v35  ;;  %v1975_v37 = vmax.f32 %v1973_v6, %v5974_v35  ;;  %v5977_v27 = vpop.f32.mrb[102].mxu0 }
 0x2d5   : > { %9948 = vst [vmem:[#allocation129_spill] sm:$0xff] %v5977_v27  ;;  %v1939_v4 = vmax.f32 %v1937_v7, %v5977_v27  ;;  %v5980_v25 = vpop.f32.mrb[103].mxu0 }
 0x2d6   : > { %9949 = vst [vmem:[#allocation130_spill] sm:$0xff] %v5980_v25  ;;  %v1976_v30 = vmax.f32 %v1974_v44, %v5980_v25  ;;  %v5983_v36 = vpop.f32.mrb[52].mxu1 }
 0x2d7   : > { %v1178_v50 = vmax.f32 %v1176_v16, %v5983_v36  ;;  %v5986_v0 = vpop.f32.mrb[53].mxu1 }
 0x2d8   : > { %9950 = vst [vmem:[#allocation131_spill] sm:$0xff] %v5986_v0  ;;  %v1215_v61 = vmax.f32 %v1213_v31, %v5986_v0  ;;  %v5989_v38 = vpop.f32.mrb[54].mxu1 }
 0x2d9   : > { %v1179_v6 = vmax.f32 %v1177_v46, %v5989_v38  ;;  %v5992_v35 = vpop.f32.mrb[55].mxu1 }
 0x2da   : > { %9951 = vst [vmem:[#allocation132_spill] sm:$0xff] %v5992_v35  ;;  %v1216_v7 = vmax.f32 %v1214_v43, %v5992_v35  ;;  %v5995_v27 = vpop.f32.mrb[104].mxu0 }
 0x2db   : > { %9952 = vst [vmem:[#allocation133_spill] sm:$0xff] %v5995_v27  ;;  %v1940_v44 = vmax.f32 %v1938_v8, %v5995_v27  ;;  %v5998_v25 = vpop.f32.mrb[105].mxu0 }
 0x2dc   : > { %9953 = vst [vmem:[#allocation134_spill] sm:$0xff] %v5998_v25  ;;  %v1977_v16 = vmax.f32 %v1975_v37, %v5998_v25  ;;  %v6001_v33 = vpop.f32.mrb[106].mxu0 }
 0x2dd   : > { %9954 = vst [vmem:[#allocation135_spill] sm:$0xff] %v6001_v33  ;;  %v1941_v31 = vmax.f32 %v1939_v4, %v6001_v33  ;;  %v6004_v0 = vpop.f32.mrb[107].mxu0 }
 0x2de   : > { %9955 = vst [vmem:[#allocation136_spill] sm:$0xff] %v6004_v0  ;;  %v1978_v46 = vmax.f32 %v1976_v30, %v6004_v0  ;;  %v6007_v10 = vpop.f32.mrb[56].mxu1 }
 0x2df   : > { %v1180_v43 = vmax.f32 %v1178_v50, %v6007_v10  ;;  %v369_v35 = vpop.permute.xlu1 %368  ;;  %v6010_v59 = vpop.f32.mrb[57].mxu1 }
 0x2e0   : > { %9956 = vst [vmem:[#allocation137_spill] sm:$0xff] %v6010_v59  ;;  %v704_v8 = vadd.f32 %v5271_v51, %v369_v35  ;;  %v706_v27 = vadd.f32 %v5273_v52, %v369_v35  ;;  %v1217_v37 = vmax.f32 %v1215_v61, %v6010_v59  ;;  %v6015_v25 = vpop.f32.mrb[58].mxu1 }
 0x2e1   : > { %v1181_v4 = vmax.f32 %v1179_v6, %v6015_v25  ;;  %v6018_v33 = vpop.f32.mrb[59].mxu1 }
 0x2e2   : > { %9957 = vst [vmem:[#allocation138_spill] sm:$0xff] %v6018_v33  ;;  %v1218_v30 = vmax.f32 %v1216_v7, %v6018_v33  ;;  %3159 = vxpose.xlu1.b32.start [1/2] (short) %v706_v27, 128  ;;  %3127 = vxpose.xlu0.b32.start [1/2] (short) %v704_v8, 128  ;;  %v6021_v50 = vpop.f32.mrb[108].mxu0 }
 0x2e3   : > { %9958 = vst [vmem:[#allocation139_spill] sm:$0xff] %v6021_v50  ;;  %v1942_v0 = vmax.f32 %v1940_v44, %v6021_v50  ;;  %v419_v42 = vpop.permute.xlu1 %418  ;;  %v6024_v51 = vpop.f32.mrb[109].mxu0 }
 0x2e4   : > { %9959 = vst [vmem:[#allocation140_spill] sm:$0xff] %v6024_v51  ;;  %v6027_v52 = vadd.f32 %v5493_v62, %v419_v42  ;;  %v1979_v35 = vmax.f32 %v1977_v16, %v6024_v51  ;;  %v6030_v61 = vpop.f32.mrb[110].mxu0  ;;  %v766_v62 = vadd.f32 %v5496_v2, %v419_v42 }
 0x2e5   : > { %9961 = vst [vmem:[#allocation142_spill] sm:$0xff] %v6030_v61  ;;  %v1943_v6 = vmax.f32 %v1941_v31, %v6030_v61  ;;  %v6033_v59 = vpop.f32.mrb[111].mxu0 }
 0x2e6   : > { %9960 = vst [vmem:[#allocation141_spill] sm:$0xff] %v6027_v52  ;;  %9962 = vst [vmem:[#allocation143_spill] sm:$0xff] %v6033_v59  ;;  %v6036_v27 = vmax.f32 %v1978_v46, %v6033_v59  ;;  %v6038_v7 = vpop.f32.mrb[60].mxu1 }
 0x2e7   : > { %v1182_v44 = vmax.f32 %v1180_v43, %v6038_v7  ;;  %v424_v8 = vpop.permute.xlu1 %423  ;;  %v6041_v50 = vpop.f32.mrb[61].mxu1 }
 0x2e8   : > { %9963 = vst [vmem:[#allocation144_spill] sm:$0xff] %v6041_v50  ;;  %v6045_v16 = vadd.f32 %v5505_v39, %v424_v8  ;;  %v772_v51 = vadd.f32 %v5509_v41, %v424_v8  ;;  %v1219_v31 = vmax.f32 %v1217_v37, %v6041_v50  ;;  %v6049_v61 = vpop.f32.mrb[62].mxu1 }
 0x2e9   : > { %v1183_v46 = vmax.f32 %v1181_v4, %v6049_v61  ;;  %v6052_v59 = vpop.f32.mrb[63].mxu1 }
 0x2ea   : > { %9964 = vst [vmem:[#allocation145_spill] sm:$0xff] %v6045_v16  ;;  %9965 = vst [vmem:[#allocation146_spill] sm:$0xff] %v6052_v59  ;;  %v827_v33 = vpack.c.bf16 %v772_v51, %v766_v62  ;;  %v1220_v13 = vmax.f32 %v1218_v30, %v6052_v59  ;;  %v374_v2 = vpop.permute.xlu0 %373  ;;  %v6057_v42 = vpop.f32.mrb[112].mxu0 }
 0x2eb   : > { %9966 = vst [vmem:[#allocation147_spill] sm:$0xff] %v6057_v42  ;;  %v710_v39 = vadd.f32 %v5275_v53, %v374_v2  ;;  %v712_v41 = vadd.f32 %v5277_v54, %v374_v2  ;;  %v1944_v37 = vmax.f32 %v1942_v0, %v6057_v42  ;;  %v429_v8 = vpop.permute.xlu1 %428  ;;  %v6062_v50 = vpop.f32.mrb[113].mxu0  ;;  %v10020_v42 = vld [vmem:[#allocation137_spill] sm:$0xff] }
 0x2ec   : > { %9967 = vst [vmem:[#allocation148_spill] sm:$0xff] %v6062_v50  ;;  %v6065_v4 = vadd.f32 %v5512_v60, %v429_v8  ;;  %v6068_v43 = vadd.f32 %v5521_v45, %v429_v8  ;;  %v1981_v30 = vmax.f32 %v1979_v35, %v6062_v50  ;;  %v6071_v51 = vpop.f32.mrb[114].mxu0  ;;  %3088 = vmatprep.mubr.bf16.mxu0 %v827_v33 }
 0x2ed   : > { %9970 = vst [vmem:[#allocation151_spill] sm:$0xff] %v6071_v51  ;;  %v1945_v53 = vmax.f32 %v1943_v6, %v6071_v51  ;;  %3160 = vxpose.xlu1.b32.end [2/2] (short) %v712_v41, 128  ;;  %3128 = vxpose.xlu0.b32.end [2/2] (short) %v710_v39, 128  ;;  %v6074_v54 = vpop.f32.mrb[115].mxu0  ;;  %v10019_v51 = vld [vmem:[#allocation132_spill] sm:$0xff] }
 0x2ee   : > { %9968 = vst [vmem:[#allocation149_spill] sm:$0xff] %v6065_v4  ;;  %9969 = vst [vmem:[#allocation150_spill] sm:$0xff] %v6068_v43  ;;  %v1982_v0 = vmax.f32 %v6036_v27, %v6074_v54  ;;  %v6078_v62 = vpop.f32.mrb[64].mxu1  ;;  %v329_v35 = vpop.permute.xlu0 %328 }
 0x2ef   : > { %9971 = vst [vmem:[#allocation152_spill] sm:$0xff] %v6074_v54  ;;  %v1184_v60 = vmax.f32 %v1182_v44, %v6078_v62  ;;  %v434_v45 = vpop.permute.xlu1 %433  ;;  %v6081_v2 = vpop.f32.mrb[65].mxu1 }
 0x2f0   : > { %v6084_v8 = vadd.f32 %v5523_v5, %v434_v45  ;;  %v6087_v33 = vadd.f32 %v5529_v47, %v434_v45  ;;  %v1221_v6 = vmax.f32 %v1219_v31, %v6081_v2  ;;  %v6090_v39 = vpop.f32.mrb[66].mxu1  ;;  %v6103_v47 = vadd.f32 %v5218_v14, %v329_v35 }
 0x2f1   : > { %v1185_v27 = vmax.f32 %v1183_v46, %v6090_v39  ;;  %v6093_v41 = vpop.f32.mrb[67].mxu1  ;;  %v6106_v31 = vadd.f32 %v5220_v15, %v329_v35 }
 0x2f2   : > { %9972 = vst [vmem:[#allocation153_spill] sm:$0xff] %v6084_v8  ;;  %9973 = vst [vmem:[#allocation154_spill] sm:$0xff] %v6087_v33  ;;  %v1222_v5 = vmax.f32 %v1220_v13, %v6093_v41  ;;  %v6100_v16 = vpop.f32.mrb[116].mxu0 }
 0x2f3   : > { %9974 = vst [vmem:[#allocation155_spill] sm:$0xff] %v6093_v41  ;;  %9975 = vst [vmem:[#allocation156_spill] sm:$0xff] %v6100_v16  ;;  %v1186_v45 = vmax.f32 %v1184_v60, %v1185_v27  ;;  %v1946_v46 = vmax.f32 %v1944_v37, %v6100_v16  ;;  %v334_v54 = vpop.permute.xlu1 %333  ;;  %v6109_v50 = vpop.f32.mrb[117].mxu0 }
 0x2f4   : > { %9976 = vst [vmem:[#allocation157_spill] sm:$0xff] %v6103_v47  ;;  %9977 = vst [vmem:[#allocation158_spill] sm:$0xff] %v6106_v31  ;;  %v1223_v44 = vmax.f32 %v1221_v6, %v1222_v5  ;;  %v6112_v4 = vadd.f32 %v5225_v18, %v334_v54  ;;  %v6115_v13 = vadd.f32 %v5228_v19, %v334_v54  ;;  %v6118_v14 = vpop.f32.mrb[118].mxu0 }
 0x2f5   : > { %9978 = vst [vmem:[#allocation159_spill] sm:$0xff] %v6109_v50  ;;  %v1983_v52 = vmax.f32 %v1981_v30, %v6109_v50  ;;  %9981 = vst [vmem:[#allocation162_spill] sm:$0xff] %v6118_v14  ;;  %v1187_v8 = vrot.slane %v1186_v45, 4  ;;  %v1947_v15 = vmax.f32 %v1945_v53, %v6118_v14  ;;  %v6121_v60 = vpop.f32.mrb[119].mxu0 }
 0x2f6   : > { %9979 = vst [vmem:[#allocation160_spill] sm:$0xff] %v6112_v4  ;;  %9980 = vst [vmem:[#allocation161_spill] sm:$0xff] %v6115_v13  ;;  %v1224_v37 = vrot.slane %v1223_v44, 4  ;;  %v1984_v6 = vmax.f32 %v1982_v0, %v6121_v60  ;;  %v10009_v13 = vld [vmem:[#allocation110_spill] sm:$0xff] }
 0x2f7   : > { %9982 = vst [vmem:[#allocation163_spill] sm:$0xff] %v6121_v60  ;;  %v1188_v19 = vmax.f32 %v1186_v45, %v1187_v8  ;;  %v10013_v60 = vld [vmem:[#allocation120_spill] sm:$0xff] }
 0x2f8   : > { %v1225_v54 = vmax.f32 %v1223_v44, %v1224_v37 }
 0x2f9   : > { %v1189_v27 = vrot.slane %v1188_v19, 2 }
 0x2fa   : > { %v1226_v30 = vrot.slane %v1225_v54, 2  ;;  %v6128_v5 = vpop.f32.mrb[120].mxu0 }
 0x2fb   : > { %9983 = vst [vmem:[#allocation164_spill] sm:$0xff] %v6128_v5  ;;  %v1190_v43 = vmax.f32 %v1188_v19, %v1189_v27  ;;  %v1948_v53 = vmax.f32 %v1946_v46, %v6128_v5  ;;  %v6131_v33 = vpop.f32.mrb[121].mxu0  ;;  %v10016_v5 = vld [vmem:[#allocation126_spill] sm:$0xff] }
 0x2fc   : > { %9984 = vst [vmem:[#allocation165_spill] sm:$0xff] %v6131_v33  ;;  %v1227_v50 = vmax.f32 %v1225_v54, %v1226_v30  ;;  %v1985_v14 = vmax.f32 %v1983_v52, %v6131_v33  ;;  %v6134_v35 = vpop.f32.mrb[122].mxu0  ;;  %v10012_v33 = vld [vmem:[#allocation119_spill] sm:$0xff] }
 0x2fd   : > { %9985 = vst [vmem:[#allocation166_spill] sm:$0xff] %v6134_v35  ;;  %v1191_v47 = vrot.slane %v1190_v43, 1  ;;  %v1949_v18 = vmax.f32 %v1947_v15, %v6134_v35  ;;  %v6137_v0 = vpop.f32.mrb[123].mxu0 }
 0x2fe   : > { %9986 = vst [vmem:[#allocation167_spill] sm:$0xff] %v6137_v0  ;;  %v1228_v8 = vrot.slane %v1227_v50, 1  ;;  %v1986_v44 = vmax.f32 %v1984_v6, %v6137_v0 }
 0x2ff   : > { %v6140_v45 = vmax.f32 %v1190_v43, %v1191_v47  ;;  %v6142_v37 = vmax.f32 %v1948_v53, %v1949_v18 }
 0x300   : > { %v6144_v46 = vmax.f32 %v1227_v50, %v1228_v8  ;;  %v6146_v19 = vmax.f32 %v1985_v14, %v1986_v44 }
 0x301   : > { %v1230_v52 = vsub.f32 %v5611_v26, %v6140_v45  ;;  %v1232_v54 = vsub.f32 %v5615_v34, %v6140_v45  ;;  %v1234_v15 = vsub.f32 %v5619_v55, %v6140_v45  ;;  %v1236_v6 = vsub.f32 %v5627_v32, %v6140_v45 }
 0x302   : > { %v1238_v43 = vsub.f32 %v5643_v3, %v6140_v45  ;;  %v1240_v50 = vsub.f32 %v5653_v49, %v6140_v45  ;;  %v1242_v47 = vsub.f32 %v5681_v56, %v6140_v45  ;;  %v1244_v26 = vsub.f32 %v5693_v28, %v6140_v45 }
 0x303   : > { %v1246_v34 = vsub.f32 %v5718_v29, %v6140_v45  ;;  %v1248_v55 = vsub.f32 %v5729_v12, %v6140_v45  ;;  %v1250_v32 = vsub.f32 %v5754_v21, %v6140_v45  ;;  %v1252_v3 = vsub.f32 %v5765_v24, %v6140_v45 }
 0x304   : > { %v1254_v49 = vsub.f32 %v5790_v22, %v6140_v45  ;;  %v1256_v56 = vsub.f32 %v5801_v40, %v6140_v45  ;;  %v1258_v28 = vsub.f32 %v5826_v20, %v6140_v45  ;;  %v1260_v29 = vsub.f32 %v5837_v23, %v6140_v45 }
 0x305   : > { %v1262_v12 = vsub.f32 %v5862_v11, %v6140_v45  ;;  %v1264_v21 = vsub.f32 %v5873_v58, %v6140_v45  ;;  %v1266_v24 = vsub.f32 %v5898_v9, %v6140_v45  ;;  %v1268_v22 = vsub.f32 %v5909_v17, %v6140_v45 }
 0x306   : > { %v1270_v40 = vsub.f32 %v5935_v57, %v6140_v45  ;;  %v1272_v20 = vsub.f32 %v5941_v48, %v6140_v45  ;;  %v1274_v23 = vsub.f32 %v5959_v1, %v6140_v45  ;;  %v1276_v11 = vsub.f32 %v5965_v63, %v6140_v45 }
 0x307   : > { %v1278_v58 = vsub.f32 %v5983_v36, %v6140_v45  ;;  %v1280_v9 = vsub.f32 %v5989_v38, %v6140_v45  ;;  %v1282_v17 = vsub.f32 %v6007_v10, %v6140_v45  ;;  %v1284_v57 = vsub.f32 %v6015_v25, %v6140_v45  ;;  %v9987_v10 = vld [vmem:[#allocation31_spill] sm:$0xff]  ;;  %v9988_v25 = vld [vmem:[#allocation32_spill] sm:$0xff] }
 0x308   : > { %v1294_v14 = vmul.f32 1.442695, %v1230_v52  ;;  %v1298_v38 = vmul.f32 1.442695, %v1232_v54  ;;  %v1302_v18 = vmul.f32 1.442695, %v1234_v15 }
 0x309   : > { %v1306_v30 = vmul.f32 1.442695, %v1236_v6  ;;  %v1310_v8 = vmul.f32 1.442695, %v1238_v43  ;;  %v1314_v44 = vmul.f32 1.442695, %v1240_v50 }
 0x30a   : > { %4375 = vpow2.f32 %v1294_v14  ;;  %v1318_v1 = vmul.f32 1.442695, %v1242_v47  ;;  %v1322_v48 = vmul.f32 1.442695, %v1244_v26  ;;  %v1326_v63 = vmul.f32 1.442695, %v1246_v34 }
 0x30b   : > { %4377 = vpow2.f32 %v1298_v38  ;;  %v1330_v4 = vmul.f32 1.442695, %v1248_v55  ;;  %v1334_v36 = vmul.f32 1.442695, %v1250_v32  ;;  %v1338_v52 = vmul.f32 1.442695, %v1252_v3 }
 0x30c   : > { %4379 = vpow2.f32 %v1302_v18  ;;  %v1342_v54 = vmul.f32 1.442695, %v1254_v49  ;;  %v1346_v15 = vmul.f32 1.442695, %v1256_v56  ;;  %v1350_v27 = vmul.f32 1.442695, %v1258_v28 }
 0x30d   : > { %4381 = vpow2.f32 %v1306_v30  ;;  %v1354_v6 = vmul.f32 1.442695, %v1260_v29  ;;  %v1358_v31 = vmul.f32 1.442695, %v1262_v12  ;;  %v1362_v53 = vmul.f32 1.442695, %v1264_v21 }
 0x30e   : > { %4383 = vpow2.f32 %v1310_v8  ;;  %v1366_v14 = vmul.f32 1.442695, %v1266_v24  ;;  %v1370_v43 = vmul.f32 1.442695, %v1268_v22  ;;  %v6216_v50 = vmul.f32 1.442695, %v1270_v40 }
 0x30f   : > { %4385 = vpow2.f32 %v1314_v44  ;;  %v6218_v47 = vmul.f32 1.442695, %v1272_v20  ;;  %v6220_v26 = vmul.f32 1.442695, %v1274_v23  ;;  %v6222_v34 = vmul.f32 1.442695, %v1276_v11 }
 0x310   : > { %4387 = vpow2.f32 %v1318_v1  ;;  %v6224_v55 = vmul.f32 1.442695, %v1278_v58  ;;  %v6226_v32 = vmul.f32 1.442695, %v1280_v9  ;;  %v6228_v3 = vmul.f32 1.442695, %v1282_v17 }
 0x311   : > { %4389 = vpow2.f32 %v1322_v48  ;;  %v6230_v49 = vmul.f32 1.442695, %v1284_v57  ;;  %v9989_v56 = vld [vmem:[#allocation33_spill] sm:$0xff]  ;;  %v9990_v29 = vld [vmem:[#allocation34_spill] sm:$0xff]  ;;  %v9991_v21 = vld [vmem:[#allocation40_spill] sm:$0xff] }
 0x312   : > { %4391 = vpow2.f32 %v1326_v63  ;;  %v9992_v22 = vld [vmem:[#allocation42_spill] sm:$0xff]  ;;  %v9994_v58 = vld [vmem:[#allocation52_spill] sm:$0xff]  ;;  %v10015_v9 = vld [vmem:[#allocation125_spill] sm:$0xff] }
 0x313   : > { %4393 = vpow2.f32 %v1330_v4  ;;  %v9993_v23 = vld [vmem:[#allocation50_spill] sm:$0xff]  ;;  %v9995_v4 = vld [vmem:[#allocation60_spill] sm:$0xff]  ;;  %v10018_v40 = vld [vmem:[#allocation131_spill] sm:$0xff] }
 0x314   : > { %v6240_v20 = vpop.eup %4375  ;;  %4395 = vpow2.f32 %v1334_v36  ;;  %v9997_v48 = vld [vmem:[#allocation62_spill] sm:$0xff]  ;;  %v9999_v36 = vld [vmem:[#allocation72_spill] sm:$0xff] }
 0x315   : > { %v6248_v57 = vpop.eup %4377  ;;  %4397 = vpow2.f32 %v1338_v52  ;;  %v9998_v63 = vld [vmem:[#allocation70_spill] sm:$0xff]  ;;  %v10001_v44 = vld [vmem:[#allocation80_spill] sm:$0xff] }
 0x316   : > { %9996 = vst [vmem:[#allocation31_spill] sm:$0xff] %v6248_v57  ;;  %v6256_v30 = vpop.eup %4379  ;;  %4399 = vpow2.f32 %v1342_v54  ;;  %v1422_v8 = vadd.f32 %v6248_v57, %v6240_v20  ;;  %v10002_v52 = vld [vmem:[#allocation82_spill] sm:$0xff]  ;;  %v10005_v18 = vld [vmem:[#allocation92_spill] sm:$0xff] }
 0x317   : > { %10000 = vst [vmem:[#allocation32_spill] sm:$0xff] %v6256_v30  ;;  %v6264_v11 = vpop.eup %4381  ;;  %4401 = vpow2.f32 %v1346_v15  ;;  %v10004_v38 = vld [vmem:[#allocation90_spill] sm:$0xff]  ;;  %v10006_v54 = vld [vmem:[#allocation100_spill] sm:$0xff] }
 0x318   : > { %10003 = vst [vmem:[#allocation33_spill] sm:$0xff] %v6264_v11  ;;  %v6272_v12 = vpop.eup %4383  ;;  %4403 = vpow2.f32 %v1350_v27  ;;  %v1423_v17 = vadd.f32 %v6256_v30, %v1422_v8  ;;  %v10008_v28 = vld [vmem:[#allocation102_spill] sm:$0xff]  ;;  %v10011_v1 = vld [vmem:[#allocation112_spill] sm:$0xff] }
 0x319   : > { %10007 = vst [vmem:[#allocation34_spill] sm:$0xff] %v6272_v12  ;;  %v6279_v0 = vpop.eup %4385  ;;  %4405 = vpow2.f32 %v1354_v6  ;;  %v10022_v15 = vld [vmem:[#allocation138_spill] sm:$0xff] }
 0x31a   : > { %10010 = vst [vmem:[#allocation40_spill] sm:$0xff] %v6279_v0  ;;  %v6287_v35 = vpop.eup %4387  ;;  %4407 = vpow2.f32 %v1358_v31  ;;  %v1424_v8 = vadd.f32 %v6264_v11, %v1423_v17  ;;  %v10023_v11 = vld [vmem:[#allocation144_spill] sm:$0xff] }
 0x31b   : > { %10014 = vst [vmem:[#allocation42_spill] sm:$0xff] %v6287_v35  ;;  %v6294_v16 = vpop.eup %4389  ;;  %4409 = vpow2.f32 %v1362_v53 }
 0x31c   : > { %10017 = vst [vmem:[#allocation50_spill] sm:$0xff] %v6294_v16  ;;  %v6302_v30 = vpop.eup %4391  ;;  %4411 = vpow2.f32 %v1366_v14  ;;  %v1425_v17 = vadd.f32 %v6272_v12, %v1424_v8  ;;  %v10026_v8 = vsub.f32 %v6038_v7, %v6140_v45  ;;  %v10029_v14 = vsub.f32 %v6078_v62, %v6140_v45  ;;  %v10122_v12 = vld [vmem:[#allocation133_spill] sm:$0xff] }
 0x31d   : > { %10021 = vst [vmem:[#allocation52_spill] sm:$0xff] %v6302_v30  ;;  %v6309_v57 = vpop.eup %4393  ;;  %4413 = vpow2.f32 %v1370_v43  ;;  %v10027_v43 = vsub.f32 %v6049_v61, %v6140_v45  ;;  %v10031_v7 = vsub.f32 %v9987_v10, %v6144_v46  ;;  %v10034_v62 = vsub.f32 %v9989_v56, %v6144_v46 }
 0x31e   : > { %10024 = vst [vmem:[#allocation60_spill] sm:$0xff] %v6309_v57  ;;  %v6317_v24 = vpop.eup %4395  ;;  %4415 = vpow2.f32 %v6216_v50  ;;  %v1406_v53 = vmul.f32 1.442695, %v10026_v8  ;;  %v1426_v27 = vadd.f32 %v6279_v0, %v1425_v17  ;;  %v1414_v31 = vmul.f32 1.442695, %v10029_v14 }
 0x31f   : > { %10025 = vst [vmem:[#allocation62_spill] sm:$0xff] %v6317_v24  ;;  %v1410_v6 = vmul.f32 1.442695, %v10027_v43  ;;  %v6327_v59 = vpop.eup %4397  ;;  %4417 = vpow2.f32 %v6218_v47  ;;  %v10030_v50 = vsub.f32 %v6090_v39, %v6140_v45  ;;  %v1296_v8 = vmul.f32 1.442695, %v10031_v7 }
 0x320   : > { %10028 = vst [vmem:[#allocation70_spill] sm:$0xff] %v6327_v59  ;;  %v6339_v61 = vpop.eup %4399  ;;  %4419 = vpow2.f32 %v6220_v26  ;;  %v1427_v17 = vadd.f32 %v6287_v35, %v1426_v27  ;;  %v10033_v47 = vsub.f32 %v9988_v25, %v6144_v46  ;;  %v1304_v14 = vmul.f32 1.442695, %v10034_v62  ;;  %v10121_v35 = vld [vmem:[#allocation129_spill] sm:$0xff] }
 0x321   : > { %v1418_v41 = vmul.f32 1.442695, %v10030_v50  ;;  %10032 = vst [vmem:[#allocation72_spill] sm:$0xff] %v6339_v61  ;;  %v6349_v39 = vpop.eup %4401  ;;  %4421 = vpow2.f32 %v6222_v34  ;;  %v10036_v45 = vsub.f32 %v9990_v29, %v6144_v46  ;;  %v10037_v26 = vsub.f32 %v9991_v21, %v6144_v46 }
 0x322   : > { %v1300_v43 = vmul.f32 1.442695, %v10033_v47  ;;  %10035 = vst [vmem:[#allocation80_spill] sm:$0xff] %v6349_v39  ;;  %v10038_v25 = vsub.f32 %v9992_v22, %v6144_v46  ;;  %v6367_v56 = vpop.eup %4403  ;;  %4423 = vpow2.f32 %v6224_v55  ;;  %v1428_v34 = vadd.f32 %v6294_v16, %v1427_v17  ;;  %v10127_v16 = vld [vmem:[#allocation139_spill] sm:$0xff] }
 0x323   : > { %v6355_v10 = vmul.f32 1.442695, %v10036_v45  ;;  %v6360_v27 = vmul.f32 1.442695, %v10037_v26  ;;  %10039 = vst [vmem:[#allocation82_spill] sm:$0xff] %v6367_v56  ;;  %v10040_v29 = vsub.f32 %v9993_v23, %v6144_v46  ;;  %v10041_v21 = vsub.f32 %v9994_v58, %v6144_v46  ;;  %v6381_v62 = vpop.eup %4405 }
 0x324   : > { %v6365_v50 = vmul.f32 1.442695, %v10038_v25  ;;  %10042 = vst [vmem:[#allocation90_spill] sm:$0xff] %v6381_v62  ;;  %4425 = vpow2.f32 %v6226_v32  ;;  %v10043_v22 = vsub.f32 %v9995_v4, %v6144_v46  ;;  %v10044_v17 = vsub.f32 %v9997_v48, %v6144_v46  ;;  %v6399_v26 = vpop.eup %4407 }
 0x325   : > { %v6374_v7 = vmul.f32 1.442695, %v10040_v29  ;;  %v6379_v47 = vmul.f32 1.442695, %v10041_v21  ;;  %v10045_v45 = vsub.f32 %v9998_v63, %v6144_v46  ;;  %10046 = vst [vmem:[#allocation92_spill] sm:$0xff] %v6399_v26  ;;  %4427 = vpow2.f32 %v6228_v3  ;;  %v6413_v21 = vpop.eup %4409 }
 0x326   : > { %v6387_v55 = vmul.f32 1.442695, %v10043_v22  ;;  %v6392_v23 = vmul.f32 1.442695, %v10044_v17  ;;  %v1429_v32 = vadd.f32 %v6302_v30, %v1428_v34  ;;  %v10047_v4 = vsub.f32 %v9999_v36, %v6144_v46  ;;  %10049 = vst [vmem:[#allocation100_spill] sm:$0xff] %v6413_v21  ;;  %v6431_v17 = vpop.eup %4411  ;;  %v10117_v30 = vld [vmem:[#allocation121_spill] sm:$0xff] }
 0x327   : > { %v6397_v58 = vmul.f32 1.442695, %v10045_v45  ;;  %v10048_v48 = vsub.f32 %v10001_v44, %v6144_v46  ;;  %4429 = vpow2.f32 %v6230_v49  ;;  %v10050_v63 = vsub.f32 %v10002_v52, %v6144_v46  ;;  %10053 = vst [vmem:[#allocation102_spill] sm:$0xff] %v6431_v17 }
 0x328   : > { %v6406_v25 = vmul.f32 1.442695, %v10047_v4  ;;  %v10051_v34 = vsub.f32 %v10004_v38, %v6144_v46  ;;  %v10052_v22 = vsub.f32 %v10005_v18, %v6144_v46  ;;  %4431 = vpow2.f32 %v1406_v53 }
 0x329   : > { %v6411_v29 = vmul.f32 1.442695, %v10048_v48  ;;  %v6419_v3 = vmul.f32 1.442695, %v10050_v63  ;;  %v1430_v49 = vadd.f32 %v6309_v57, %v1429_v32  ;;  %v10054_v52 = vsub.f32 %v10006_v54, %v6144_v46  ;;  %v6444_v48 = vpop.eup %4413 }
 0x32a   : > { %v6424_v36 = vmul.f32 1.442695, %v10051_v34  ;;  %v6429_v44 = vmul.f32 1.442695, %v10052_v22  ;;  %v10055_v38 = vsub.f32 %v10008_v28, %v6144_v46  ;;  %10056 = vst [vmem:[#allocation110_spill] sm:$0xff] %v6444_v48  ;;  %4433 = vpow2.f32 %v1410_v6  ;;  %v6461_v28 = vpop.eup %4415 }
 0x32b   : > { %v6437_v45 = vmul.f32 1.442695, %v10054_v52  ;;  %v10057_v18 = vsub.f32 %v10009_v13, %v6144_v46  ;;  %v10058_v53 = vsub.f32 %v10011_v1, %v6144_v46  ;;  %v10059_v54 = vsub.f32 %v10012_v33, %v6144_v46  ;;  %10060 = vst [vmem:[#allocation112_spill] sm:$0xff] %v6461_v28 }
 0x32c   : > { %v6442_v4 = vmul.f32 1.442695, %v10055_v38  ;;  %4435 = vpow2.f32 %v1414_v31  ;;  %v1431_v6 = vadd.f32 %v6317_v24, %v1430_v49  ;;  %v10061_v13 = vsub.f32 %v10013_v60, %v6144_v46  ;;  %v6474_v38 = vpop.eup %4417 }
 0x32d   : > { %v6449_v63 = vmul.f32 1.442695, %v10057_v18  ;;  %v6454_v32 = vmul.f32 1.442695, %v10058_v53  ;;  %v6459_v34 = vmul.f32 1.442695, %v10059_v54  ;;  %v10062_v1 = vsub.f32 %v10015_v9, %v6144_v46  ;;  %v6491_v9 = vpop.eup %4419 }
 0x32e   : > { %v6467_v22 = vmul.f32 1.442695, %v10061_v13  ;;  %10063 = vst [vmem:[#allocation119_spill] sm:$0xff] %v6474_v38  ;;  %4437 = vpow2.f32 %v1418_v41  ;;  %v10064_v33 = vsub.f32 %v10016_v5, %v6144_v46  ;;  %v10065_v31 = vsub.f32 %v10018_v40, %v6144_v46  ;;  %10069 = vst [vmem:[#allocation126_spill] sm:$0xff] %v6491_v9 }
 0x32f   : > { %v6472_v52 = vmul.f32 1.442695, %v10062_v1  ;;  %v10067_v60 = vsub.f32 %v10019_v51, %v6144_v46  ;;  %v1432_v54 = vadd.f32 %v6327_v59, %v1431_v6  ;;  %4439 = vpow2.f32 %v1296_v8  ;;  %v6504_v1 = vpop.eup %4421  ;;  %v10075_v6 = vld [vmem:[#allocation31_spill] sm:$0xff] }
 0x330   : > { %v6479_v18 = vmul.f32 1.442695, %v10064_v33  ;;  %v6484_v49 = vmul.f32 1.442695, %v10065_v31  ;;  %v10070_v41 = vsub.f32 %v10020_v42, %v6144_v46  ;;  %v10072_v40 = vsub.f32 %v10022_v15, %v6144_v46  ;;  %10074 = vst [vmem:[#allocation137_spill] sm:$0xff] %v6504_v1  ;;  %v6510_v31 = vpop.eup %4423 }
 0x331   : > { %v6489_v53 = vmul.f32 1.442695, %v10067_v60  ;;  %4441 = vpow2.f32 %v1300_v43  ;;  %v1951_v51 = vrot.slane %v6142_v37, 4  ;;  %v1988_v33 = vrot.slane %v6146_v19, 4  ;;  %10076 = vst [vmem:[#allocation138_spill] sm:$0xff] %v6510_v31 }
 0x332   : > { %10066 = vst [vmem:[#allocation120_spill] sm:$0xff] %v6484_v49  ;;  %v6497_v5 = vmul.f32 1.442695, %v10070_v41  ;;  %v6502_v13 = vmul.f32 1.442695, %v10072_v40  ;;  %v1433_v42 = vadd.f32 %v6339_v61, %v1432_v54  ;;  %v10077_v60 = vsub.f32 %v10023_v11, %v6144_v46  ;;  %v10115_v61 = vld [vmem:[#allocation113_spill] sm:$0xff] }
 0x333   : > { %10068 = vst [vmem:[#allocation125_spill] sm:$0xff] %v6489_v53  ;;  %4443 = vpow2.f32 %v1304_v14  ;;  %v1952_v8 = vmax.f32 %v6142_v37, %v1951_v51  ;;  %v1989_v53 = vmax.f32 %v6146_v19, %v1988_v33  ;;  %v10083_v37 = vld [vmem:[#allocation146_spill] sm:$0xff] }
 0x334   : > { %10071 = vst [vmem:[#allocation131_spill] sm:$0xff] %v6497_v5  ;;  %10073 = vst [vmem:[#allocation132_spill] sm:$0xff] %v6502_v13  ;;  %v6516_v15 = vmul.f32 1.442695, %v10077_v60  ;;  %v6522_v5 = vpop.eup %4425  ;;  %v1434_v11 = vadd.f32 %v6349_v39, %v1433_v42  ;;  %4445 = vpow2.f32 %v6355_v10  ;;  %v10084_v19 = vsub.f32 %v10083_v37, %v6144_v46  ;;  %v10112_v39 = vld [vmem:[#allocation103_spill] sm:$0xff] }
 0x335   : > { %10080 = vst [vmem:[#allocation144_spill] sm:$0xff] %v6522_v5  ;;  %v6528_v49 = vpop.eup %4427  ;;  %4447 = vpow2.f32 %v6360_v27  ;;  %v1953_v33 = vrot.slane %v1952_v8, 2 }
 0x336   : > { %10081 = vst [vmem:[#allocation31_spill] sm:$0xff] %v6528_v49  ;;  %v6536_v14 = vpop.eup %4429  ;;  %v6542_v51 = vmul.f32 1.442695, %v10084_v19  ;;  %v1435_v60 = vadd.f32 %v6367_v56, %v1434_v11  ;;  %4449 = vpow2.f32 %v6365_v50  ;;  %v1990_v19 = vrot.slane %v1989_v53, 2 }
 0x337   : > { %10082 = vst [vmem:[#allocation168_spill] sm:$0xff] %v6536_v14  ;;  %v6546_v10 = vpop.eup %4431  ;;  %4451 = vpow2.f32 %v6374_v7  ;;  %v1954_v37 = vmax.f32 %v1952_v8, %v1953_v33  ;;  %v10089_v7 = vsub.f32 %v6081_v2, %v6144_v46 }
 0x338   : > { %10085 = vst [vmem:[#allocation146_spill] sm:$0xff] %v6546_v10  ;;  %v6554_v54 = vpop.eup %4433  ;;  %v1436_v11 = vadd.f32 %v6381_v62, %v1435_v60  ;;  %4453 = vpow2.f32 %v6379_v47 }
 0x339   : > { %10086 = vst [vmem:[#allocation169_spill] sm:$0xff] %v6554_v54  ;;  %v6559_v13 = vpop.eup %4435  ;;  %4455 = vpow2.f32 %v6387_v55  ;;  %v6573_v8 = vmul.f32 1.442695, %v10089_v7  ;;  %v1955_v33 = vrot.slane %v1954_v37, 1  ;;  %v6586_v7 = vmax.f32 %v1989_v53, %v1990_v19  ;;  %v10091_v55 = vld [vmem:[#allocation35_spill] sm:$0xff]  ;;  %v10093_v19 = vld [vmem:[#allocation44_spill] sm:$0xff] }
 0x33a   : > { %10087 = vst [vmem:[#allocation170_spill] sm:$0xff] %v6559_v13  ;;  %v6567_v43 = vpop.eup %4437  ;;  %v1437_v42 = vadd.f32 %v6399_v26, %v1436_v11  ;;  %4457 = vpow2.f32 %v6392_v23  ;;  %v10097_v53 = vld [vmem:[#allocation53_spill] sm:$0xff]  ;;  %v10126_v59 = vld [vmem:[#allocation120_spill] sm:$0xff] }
 0x33b   : > { %10088 = vst [vmem:[#allocation171_spill] sm:$0xff] %v6567_v43  ;;  %v4440_v47 = vpop.eup %4439  ;;  %4459 = vpow2.f32 %v6397_v58  ;;  %v6584_v2 = vmax.f32 %v1954_v37, %v1955_v33  ;;  %v10092_v37 = vld [vmem:[#allocation37_spill] sm:$0xff]  ;;  %v10102_v58 = vld [vmem:[#allocation67_spill] sm:$0xff] }
 0x33c   : > { %v4442_v50 = vpop.eup %4441  ;;  %v1438_v11 = vadd.f32 %v6413_v21, %v1437_v42  ;;  %4461 = vpow2.f32 %v6406_v25  ;;  %v10098_v33 = vld [vmem:[#allocation57_spill] sm:$0xff]  ;;  %v10118_v21 = vld [vmem:[#allocation123_spill] sm:$0xff] }
 0x33d   : > { %v1459_v23 = vadd.f32 %v4442_v50, %v4440_v47  ;;  %v1497_v26 = vpack.c.bf16 %v4442_v50, %v4440_v47  ;;  %v6592_v27 = vpop.eup %4443  ;;  %4463 = vpow2.f32 %v6411_v29  ;;  %v10095_v50 = vld [vmem:[#allocation47_spill] sm:$0xff] }
 0x33e   : > { %10090 = vst [vmem:[#allocation172_spill] sm:$0xff] %v6592_v27  ;;  %v6601_v60 = vpop.eup %4445  ;;  %v1439_v42 = vadd.f32 %v6431_v17, %v1438_v11  ;;  %4465 = vpow2.f32 %v6419_v3  ;;  %v10099_v11 = vld [vmem:[#allocation63_spill] sm:$0xff]  ;;  %v10100_v3 = vpack.c.bf16 %v10075_v6, %v6240_v20  ;;  %v10104_v17 = vld [vmem:[#allocation73_spill] sm:$0xff] }
 0x33f   : > { %10094 = vst [vmem:[#allocation35_spill] sm:$0xff] %v6601_v60  ;;  %v1460_v25 = vadd.f32 %v6592_v27, %v1459_v23  ;;  %1528 = vmatprep.subr.bf16.mxu1 %v1497_v26  ;;  %v6608_v47 = vpop.eup %4447  ;;  %4467 = vpow2.f32 %v6424_v36  ;;  %v10105_v20 = vld [vmem:[#allocation77_spill] sm:$0xff]  ;;  %v10108_v29 = vld [vmem:[#allocation87_spill] sm:$0xff]  ;;  %v10137_v27 = vld [vmem:[#allocation164_spill] sm:$0xff] }
 0x340   : > { %10096 = vst [vmem:[#allocation37_spill] sm:$0xff] %v6608_v47  ;;  %1529 = vmatpush1.bf16.msra.mxu1 %v10100_v3  ;;  %v6620_v23 = vpop.eup %4449  ;;  %v1440_v26 = vadd.f32 %v6444_v48, %v1439_v42  ;;  %4469 = vpow2.f32 %v6429_v44  ;;  %v10106_v3 = vld [vmem:[#allocation83_spill] sm:$0xff]  ;;  %v10110_v6 = vld [vmem:[#allocation93_spill] sm:$0xff] }
 0x341   : > { %10101 = vst [vmem:[#allocation44_spill] sm:$0xff] %v6620_v23  ;;  %v1461_v36 = vadd.f32 %v6601_v60, %v1460_v25  ;;  %v6627_v56 = vpop.eup %4451  ;;  %4471 = vpow2.f32 %v6437_v45  ;;  %v10111_v42 = vld [vmem:[#allocation97_spill] sm:$0xff]  ;;  %v10114_v45 = vld [vmem:[#allocation107_spill] sm:$0xff]  ;;  %v10142_v60 = vsub.f32 %v10091_v55, %v6584_v2 }
 0x342   : > { %10103 = vst [vmem:[#allocation47_spill] sm:$0xff] %v6627_v56  ;;  %v6636_v48 = vpop.eup %4453  ;;  %v1441_v44 = vadd.f32 %v6461_v28, %v1440_v26  ;;  %4473 = vpow2.f32 %v6442_v4  ;;  %v10116_v26 = vld [vmem:[#allocation117_spill] sm:$0xff]  ;;  %v10134_v40 = vld [vmem:[#allocation131_spill] sm:$0xff] }
 0x343   : > { %10107 = vst [vmem:[#allocation53_spill] sm:$0xff] %v6636_v48  ;;  %v1462_v25 = vadd.f32 %v6608_v47, %v1461_v36  ;;  %v6643_v62 = vpop.eup %4455  ;;  %4475 = vpow2.f32 %v6449_v63  ;;  %v10136_v47 = vld [vmem:[#allocation162_spill] sm:$0xff] }
 0x344   : > { %10109 = vst [vmem:[#allocation57_spill] sm:$0xff] %v6643_v62  ;;  %v6652_v28 = vpop.eup %4457  ;;  %v1442_v4 = vadd.f32 %v6474_v38, %v1441_v44  ;;  %4477 = vpow2.f32 %v6454_v32  ;;  %v293_v32 = vld [vmem:[%s9317_s2 + $0xe8] sm:$0xff]  ;;  %v10120_v44 = vld [vmem:[#allocation127_spill] sm:$0xff] }
 0x345   : > { %10113 = vst [vmem:[#allocation63_spill] sm:$0xff] %v6652_v28  ;;  %v1463_v36 = vadd.f32 %v6620_v23, %v1462_v25  ;;  %v6659_v24 = vpop.eup %4459  ;;  %4479 = vpow2.f32 %v6459_v34  ;;  %v10124_v38 = vld [vmem:[#allocation135_spill] sm:$0xff]  ;;  %443 = vperm.xlu1 %4290, %v293_v32   ;;  %v10143_v23 = vsub.f32 %v10092_v37, %v6584_v2 }
 0x346   : > { %v6671_v25 = vpop.eup %4461  ;;  %v1443_v63 = vadd.f32 %v6491_v9, %v1442_v4  ;;  %4481 = vpow2.f32 %v6467_v22  ;;  %v10128_v4 = vld [vmem:[#allocation142_spill] sm:$0xff] }
 0x347   : > { %v1464_v34 = vadd.f32 %v6627_v56, %v1463_v36  ;;  %v6678_v57 = vpop.eup %4463  ;;  %4483 = vpow2.f32 %v6472_v52  ;;  %v10131_v52 = vld [vmem:[#allocation125_spill] sm:$0xff] }
 0x348   : > { %10119 = vst [vmem:[#allocation67_spill] sm:$0xff] %v6678_v57  ;;  %v6687_v9 = vpop.eup %4465  ;;  %v1444_v22 = vadd.f32 %v6504_v1, %v1443_v63  ;;  %4485 = vpow2.f32 %v6479_v18  ;;  %v10129_v63 = vld [vmem:[#allocation147_spill] sm:$0xff]  ;;  %v295_v18 = vld [vmem:[%s9317_s2 + $0xf8] sm:$0xff] }
 0x349   : > { %10123 = vst [vmem:[#allocation73_spill] sm:$0xff] %v6687_v9  ;;  %v1465_v36 = vadd.f32 %v6636_v48, %v1464_v34  ;;  %v6694_v0 = vpop.eup %4467  ;;  %4487 = vpow2.f32 %v10126_v59  ;;  %v10135_v1 = vld [vmem:[#allocation156_spill] sm:$0xff]  ;;  %453 = vperm.xlu1 %4290, %v295_v18  }
 0x34a   : > { %10125 = vst [vmem:[#allocation77_spill] sm:$0xff] %v6694_v0  ;;  %v6706_v34 = vpop.eup %4469  ;;  %v1445_v32 = vadd.f32 %v6510_v31, %v1444_v22  ;;  %4489 = vpow2.f32 %v10131_v52  ;;  %v10139_v52 = vld [vmem:[#allocation132_spill] sm:$0xff]  ;;  %v2058_v22 = vmul.f32 1.442695, %v10142_v60 }
 0x34b   : > { %10130 = vst [vmem:[#allocation83_spill] sm:$0xff] %v6706_v34  ;;  %v1466_v59 = vadd.f32 %v6643_v62, %v1465_v36  ;;  %v6713_v56 = vpop.eup %4471  ;;  %4491 = vpow2.f32 %v10134_v40 }
 0x34c   : > { %10133 = vst [vmem:[#allocation87_spill] sm:$0xff] %v6713_v56  ;;  %v6722_v31 = vpop.eup %4473  ;;  %v1446_v36 = vadd.f32 %v6522_v5, %v1445_v32  ;;  %4493 = vpow2.f32 %v10139_v52  ;;  %v2062_v32 = vmul.f32 1.442695, %v10143_v23  ;;  %v1992_v52 = vrot.slane %v6586_v7, 1 }
 0x34d   : > { %10138 = vst [vmem:[#allocation93_spill] sm:$0xff] %v6722_v31  ;;  %v1467_v48 = vadd.f32 %v6652_v28, %v1466_v59  ;;  %v6729_v41 = vpop.eup %4475  ;;  %4495 = vpow2.f32 %v6516_v15  ;;  %v3896_v59 = vld [vmem:[%s9319_s4 + $0x8] sm:$0xff]  ;;  %v10145_v15 = vld [vmem:[#allocation155_spill] sm:$0xff]  ;;  %v10148_v23 = vsub.f32 %v10093_v19, %v6584_v2  ;;  %v10152_v19 = vsub.f32 %v10097_v53, %v6584_v2 }
 0x34e   : > { %10141 = vst [vmem:[#allocation97_spill] sm:$0xff] %v6729_v41  ;;  %v6742_v40 = vpop.eup %4477  ;;  %v1447_v18 = vadd.f32 %v6528_v49, %v1446_v36  ;;  %4497 = vpow2.f32 %v6542_v51  ;;  %v10146_v55 = vsub.f32 %v10145_v15, %v6144_v46  ;;  %v10150_v46 = vsub.f32 %v10095_v50, %v6584_v2  ;;  %3906 = vperm.xlu1 %4290, %v3896_v59   ;;  %v10199_v49 = vld [vmem:[#allocation68_spill] sm:$0xff] }
 0x34f   : > { %10144 = vst [vmem:[#allocation103_spill] sm:$0xff] %v6742_v40  ;;  %v1468_v5 = vadd.f32 %v6659_v24, %v1467_v48  ;;  %v6750_v37 = vpop.eup %4479  ;;  %4499 = vpow2.f32 %v6573_v8  ;;  %v2066_v28 = vmul.f32 1.442695, %v10148_v23  ;;  %v292_v48 = vld [vmem:[%s9317_s2 + $0xe0] sm:$0xff] }
 0x350   : > { %v1420_v60 = vmul.f32 1.442695, %v10146_v55  ;;  %10147 = vst [vmem:[#allocation107_spill] sm:$0xff] %v6750_v37  ;;  %v6756_v62 = vpop.eup %4481  ;;  %v1448_v36 = vadd.f32 %v6536_v14, %v1447_v18  ;;  %4501 = vpow2.f32 %v2058_v22  ;;  %v2070_v15 = vmul.f32 1.442695, %v10150_v46  ;;  %438 = vperm.xlu0 %4289, %v292_v48  }
 0x351   : > { %10149 = vst [vmem:[#allocation113_spill] sm:$0xff] %v6756_v62  ;;  %v1469_v51 = vadd.f32 %v6671_v25, %v1468_v5  ;;  %v6766_v8 = vpop.eup %4483  ;;  %4503 = vpow2.f32 %v2062_v32  ;;  %v2074_v55 = vmul.f32 1.442695, %v10152_v19  ;;  %v6772_v18 = vmax.f32 %v6586_v7, %v1992_v52  ;;  %v3898_v5 = vld [vmem:[%s9319_s4 + $0x18] sm:$0xff] }
 0x352   : > { %10151 = vst [vmem:[#allocation117_spill] sm:$0xff] %v6766_v8  ;;  %v6777_v50 = vpop.eup %4485  ;;  %v1449_v22 = vadd.f32 %v6546_v10, %v1448_v36  ;;  %4505 = vpow2.f32 %v1420_v60  ;;  %v10154_v32 = vsub.f32 %v10098_v33, %v6584_v2  ;;  %v10156_v7 = vsub.f32 %v10099_v11, %v6584_v2  ;;  %3916 = vperm.xlu1 %4290, %v3898_v5   ;;  %v10193_v10 = vld [vmem:[#allocation55_spill] sm:$0xff] }
 0x353   : > { %10153 = vst [vmem:[#allocation121_spill] sm:$0xff] %v6777_v50  ;;  %v1470_v59 = vadd.f32 %v6678_v57, %v1469_v51  ;;  %v6784_v53 = vpop.eup %4487  ;;  %4507 = vpow2.f32 %v2066_v28  ;;  %v10157_v46 = vsub.f32 %v10102_v58, %v6584_v2  ;;  %v10158_v60 = vsub.f32 %v10104_v17, %v6584_v2  ;;  %v294_v58 = vld [vmem:[%s9317_s2 + $0xf0] sm:$0xff] }
 0x354   : > { %v2078_v23 = vmul.f32 1.442695, %v10154_v32  ;;  %10155 = vst [vmem:[#allocation123_spill] sm:$0xff] %v6784_v53  ;;  %v2082_v52 = vmul.f32 1.442695, %v10156_v7  ;;  %v6795_v51 = vpop.eup %4489  ;;  %v1450_v33 = vadd.f32 %v6554_v54, %v1449_v22  ;;  %4509 = vpow2.f32 %v2070_v15  ;;  %448 = vperm.xlu0 %4289, %v294_v58  }
 0x355   : > { %v2086_v19 = vmul.f32 1.442695, %v10157_v46  ;;  %v2090_v36 = vmul.f32 1.442695, %v10158_v60  ;;  %10159 = vst [vmem:[#allocation127_spill] sm:$0xff] %v6795_v51  ;;  %v1471_v32 = vadd.f32 %v6687_v9, %v1470_v59  ;;  %v10160_v28 = vsub.f32 %v10105_v20, %v6584_v2  ;;  %v6805_v7 = vpop.eup %4491  ;;  %v10238_v9 = vld [vmem:[#allocation167_spill] sm:$0xff] }
 0x356   : > { %10161 = vst [vmem:[#allocation129_spill] sm:$0xff] %v6805_v7  ;;  %4511 = vpow2.f32 %v2074_v55  ;;  %v10162_v17 = vsub.f32 %v10106_v3, %v6584_v2  ;;  %v10163_v22 = vsub.f32 %v10108_v29, %v6584_v2  ;;  %v10164_v20 = vsub.f32 %v10110_v6, %v6584_v2  ;;  %v6816_v5 = vpop.eup %4493 }
 0x357   : > { %v2094_v11 = vmul.f32 1.442695, %v10160_v28  ;;  %v1451_v46 = vadd.f32 %v6559_v13, %v1450_v33  ;;  %v1472_v60 = vadd.f32 %v6694_v0, %v1471_v32  ;;  %4513 = vpow2.f32 %v2078_v23  ;;  %v6823_v28 = vpop.eup %4495 }
 0x358   : > { %v2098_v48 = vmul.f32 1.442695, %v10162_v17  ;;  %v2102_v15 = vmul.f32 1.442695, %v10163_v22  ;;  %v2106_v59 = vmul.f32 1.442695, %v10164_v20  ;;  %v10165_v55 = vsub.f32 %v10111_v42, %v6584_v2  ;;  %v6834_v23 = vpop.eup %4497 }
 0x359   : > { %4515 = vpow2.f32 %v2082_v52  ;;  %v10166_v29 = vsub.f32 %v10112_v39, %v6584_v2  ;;  %v10167_v6 = vsub.f32 %v10114_v45, %v6584_v2  ;;  %v10168_v33 = vsub.f32 %v10115_v61, %v6584_v2  ;;  %v3895_v45 = vld [vmem:[%s9319_s4] sm:$0xff] }
 0x35a   : > { %v2110_v3 = vmul.f32 1.442695, %v10165_v55  ;;  %v6837_v42 = vadd.f32 %v6567_v43, %v1451_v46  ;;  %v1473_v52 = vadd.f32 %v6706_v34, %v1472_v60  ;;  %4517 = vpow2.f32 %v2086_v19  ;;  %v6846_v55 = vpop.eup %4499  ;;  %3901 = vperm.xlu0 %4289, %v3895_v45   ;;  %v10232_v34 = vld [vmem:[#allocation152_spill] sm:$0xff] }
 0x35b   : > { %v2114_v17 = vmul.f32 1.442695, %v10166_v29  ;;  %v2118_v22 = vmul.f32 1.442695, %v10167_v6  ;;  %v2122_v32 = vmul.f32 1.442695, %v10168_v33  ;;  %v10170_v39 = vsub.f32 %v10116_v26, %v6584_v2  ;;  %v6857_v29 = vpop.eup %4501 }
 0x35c   : > { %10169 = vst [vmem:[#allocation133_spill] sm:$0xff] %v6837_v42  ;;  %10171 = vst [vmem:[#allocation135_spill] sm:$0xff] %v6846_v55  ;;  %4519 = vpow2.f32 %v2090_v36  ;;  %v10172_v61 = vsub.f32 %v10117_v30, %v6584_v2  ;;  %v10173_v46 = vsub.f32 %v10118_v21, %v6584_v2  ;;  %v10174_v19 = vsub.f32 %v10120_v44, %v6584_v2  ;;  %v6868_v21 = vpop.eup %4503 }
 0x35d   : > { %v2126_v20 = vmul.f32 1.442695, %v10170_v39  ;;  %10175 = vst [vmem:[#allocation120_spill] sm:$0xff] %v6857_v29  ;;  %v1474_v6 = vadd.f32 %v6713_v56, %v1473_v52  ;;  %4521 = vpow2.f32 %v2094_v11  ;;  %v10176_v36 = vsub.f32 %v10121_v35, %v6584_v2  ;;  %10178 = vst [vmem:[#allocation139_spill] sm:$0xff] %v6868_v21 }
 0x35e   : > { %v2130_v58 = vmul.f32 1.442695, %v10172_v61  ;;  %v2134_v60 = vmul.f32 1.442695, %v10173_v46  ;;  %v2138_v26 = vmul.f32 1.442695, %v10174_v19  ;;  %v10177_v30 = vsub.f32 %v10122_v12, %v6584_v2  ;;  %v6885_v12 = vpop.eup %4505 }
 0x35f   : > { %v2142_v33 = vmul.f32 1.442695, %v10176_v36  ;;  %4523 = vpow2.f32 %v2098_v48  ;;  %v10179_v44 = vsub.f32 %v10124_v38, %v6584_v2  ;;  %v10180_v11 = vsub.f32 %v10127_v16, %v6584_v2  ;;  %v10183_v36 = vld [vmem:[#allocation151_spill] sm:$0xff]  ;;  %v6901_v45 = vpop.eup %4507 }
 0x360   : > { %v6866_v39 = vmul.f32 1.442695, %v10177_v30  ;;  %v10181_v35 = vsub.f32 %v10128_v4, %v6584_v2  ;;  %v1475_v48 = vadd.f32 %v6722_v31, %v1474_v6  ;;  %4525 = vpow2.f32 %v2102_v15  ;;  %v3897_v4 = vld [vmem:[%s9319_s4 + $0x10] sm:$0xff]  ;;  %10185 = vst [vmem:[#allocation142_spill] sm:$0xff] %v6901_v45  ;;  %v10186_v6 = vld [vmem:[#allocation36_spill] sm:$0xff] }
 0x361   : > { %v6873_v61 = vmul.f32 1.442695, %v10179_v44  ;;  %v6878_v52 = vmul.f32 1.442695, %v10180_v11  ;;  %v10182_v38 = vsub.f32 %v10129_v63, %v6584_v2  ;;  %v10184_v16 = vsub.f32 %v10183_v36, %v6584_v2  ;;  %v10187_v44 = vld [vmem:[#allocation38_spill] sm:$0xff]  ;;  %v10192_v11 = vld [vmem:[#allocation48_spill] sm:$0xff]  ;;  %3911 = vperm.xlu0 %4289, %v3897_v4  }
 0x362   : > { %v6883_v46 = vmul.f32 1.442695, %v10181_v35  ;;  %4527 = vpow2.f32 %v2106_v59  ;;  %v2186_v15 = vadd.f32 %v6868_v21, %v6857_v29  ;;  %v6909_v35 = vpop.eup %4509  ;;  %v10189_v36 = vsub.f32 %v10135_v1, %v6584_v2  ;;  %v10190_v59 = vld [vmem:[#allocation45_spill] sm:$0xff]  ;;  %v10209_v29 = vld [vmem:[#allocation88_spill] sm:$0xff] }
 0x363   : > { %v6891_v19 = vmul.f32 1.442695, %v10182_v38  ;;  %v6896_v30 = vmul.f32 1.442695, %v10184_v16  ;;  %10188 = vst [vmem:[#allocation147_spill] sm:$0xff] %v6909_v35  ;;  %v1476_v38 = vadd.f32 %v6729_v41, %v1475_v48  ;;  %4529 = vpow2.f32 %v2110_v3  ;;  %v6919_v13 = vpop.eup %4511  ;;  %v10198_v4 = vld [vmem:[#allocation65_spill] sm:$0xff] }
 0x364   : > { %v6915_v16 = vmul.f32 1.442695, %v10189_v36  ;;  %10191 = vst [vmem:[#allocation125_spill] sm:$0xff] %v6919_v13  ;;  %4531 = vpow2.f32 %v2114_v17  ;;  %v2187_v63 = vadd.f32 %v6901_v45, %v2186_v15  ;;  %v6926_v3 = vpop.eup %4513  ;;  %v10195_v36 = vsub.f32 %v10136_v47, %v6584_v2  ;;  %v10196_v17 = vld [vmem:[#allocation58_spill] sm:$0xff]  ;;  %v10205_v45 = vld [vmem:[#allocation85_spill] sm:$0xff]  ;;  %v10226_v31 = vld [vmem:[#allocation136_spill] sm:$0xff] }
 0x365   : > { %10194 = vst [vmem:[#allocation131_spill] sm:$0xff] %v6926_v3  ;;  %v1477_v1 = vadd.f32 %v6742_v40, %v1476_v38  ;;  %4533 = vpow2.f32 %v2118_v22  ;;  %v6936_v54 = vpop.eup %4515  ;;  %v10204_v38 = vld [vmem:[#allocation78_spill] sm:$0xff]  ;;  %v10241_v40 = vsub.f32 %v10186_v6, %v6772_v18  ;;  %v10247_v6 = vsub.f32 %v10193_v10, %v6772_v18 }
 0x366   : > { %v6932_v42 = vmul.f32 1.442695, %v10195_v36  ;;  %10197 = vst [vmem:[#allocation156_spill] sm:$0xff] %v6936_v54  ;;  %4535 = vpow2.f32 %v2122_v32  ;;  %v2188_v43 = vadd.f32 %v6909_v35, %v2187_v63  ;;  %v6943_v22 = vpop.eup %4517  ;;  %v10201_v36 = vsub.f32 %v10137_v27, %v6584_v2  ;;  %v10202_v32 = vld [vmem:[#allocation75_spill] sm:$0xff] }
 0x367   : > { %10200 = vst [vmem:[#allocation162_spill] sm:$0xff] %v6943_v22  ;;  %v1478_v47 = vadd.f32 %v6750_v37, %v1477_v1  ;;  %4537 = vpow2.f32 %v2126_v20  ;;  %v6953_v63 = vpop.eup %4519  ;;  %v10211_v35 = vld [vmem:[#allocation95_spill] sm:$0xff]  ;;  %v10252_v10 = vsub.f32 %v10198_v4, %v6772_v18 }
 0x368   : > { %v6949_v15 = vmul.f32 1.442695, %v10201_v36  ;;  %10203 = vst [vmem:[#allocation164_spill] sm:$0xff] %v6953_v63  ;;  %4539 = vpow2.f32 %v2130_v58  ;;  %v2189_v48 = vadd.f32 %v6919_v13, %v2188_v43  ;;  %v6960_v20 = vpop.eup %4521  ;;  %v10207_v36 = vld [vmem:[#allocation166_spill] sm:$0xff]  ;;  %v10216_v1 = vld [vmem:[#allocation115_spill] sm:$0xff] }
 0x369   : > { %10206 = vst [vmem:[#allocation132_spill] sm:$0xff] %v6960_v20  ;;  %v1479_v27 = vadd.f32 %v6756_v62, %v1478_v47  ;;  %4541 = vpow2.f32 %v2134_v60  ;;  %v10208_v21 = vsub.f32 %v10207_v36, %v6584_v2  ;;  %v6968_v37 = vpop.eup %4523  ;;  %v10212_v13 = vld [vmem:[#allocation98_spill] sm:$0xff]  ;;  %v10213_v2 = vld [vmem:[#allocation105_spill] sm:$0xff]  ;;  %v10214_v36 = vld [vmem:[#allocation108_spill] sm:$0xff]  ;;  %v7046_v57 = vpop.trf.xlu1 }
 0x36a   : > { %10210 = vst [vmem:[#allocation155_spill] sm:$0xff] %v6968_v37  ;;  %4543 = vpow2.f32 %v2138_v26  ;;  %v2190_v43 = vadd.f32 %v6926_v3, %v2189_v48  ;;  %v6975_v47 = vpop.eup %4525  ;;  %v10217_v3 = vld [vmem:[#allocation118_spill] sm:$0xff]  ;;  %v10222_v62 = vld [vmem:[#allocation128_spill] sm:$0xff]  ;;  %10239 = vst [vmem:[#allocation68_spill] sm:$0xff] %v7046_v57  ;;  %v10244_v57 = vsub.f32 %v10190_v59, %v6772_v18 }
 0x36b   : > { %v2182_v14 = vmul.f32 1.442695, %v10208_v21  ;;  %v1480_v60 = vadd.f32 %v6766_v8, %v1479_v27  ;;  %4545 = vpow2.f32 %v2142_v33  ;;  %v10219_v58 = vld [vmem:[#allocation122_spill] sm:$0xff]  ;;  %v10220_v8 = vld [vmem:[#allocation124_spill] sm:$0xff] }
 0x36c   : > { %v6982_v26 = vpop.eup %4527  ;;  %4547 = vpow2.f32 %v6866_v39  ;;  %v2191_v48 = vadd.f32 %v6936_v54, %v2190_v43  ;;  %v10223_v54 = vld [vmem:[#allocation130_spill] sm:$0xff] }
 0x36d   : > { %10215 = vst [vmem:[#allocation151_spill] sm:$0xff] %v6982_v26  ;;  %v6990_v27 = vpop.eup %4529  ;;  %v1481_v33 = vadd.f32 %v6777_v50, %v1480_v60  ;;  %4549 = vpow2.f32 %v6873_v61  ;;  %v10225_v39 = vld [vmem:[#allocation134_spill] sm:$0xff]  ;;  %v10228_v60 = vld [vmem:[#allocation140_spill] sm:$0xff] }
 0x36e   : > { %10218 = vst [vmem:[#allocation36_spill] sm:$0xff] %v6990_v27  ;;  %v6998_v41 = vpop.eup %4531  ;;  %4551 = vpow2.f32 %v6878_v52  ;;  %v2192_v43 = vadd.f32 %v6943_v22, %v2191_v48  ;;  %v10229_v22 = vld [vmem:[#allocation143_spill] sm:$0xff]  ;;  %v10231_v52 = vld [vmem:[#allocation148_spill] sm:$0xff] }
 0x36f   : > { %10221 = vst [vmem:[#allocation38_spill] sm:$0xff] %v6998_v41  ;;  %v7006_v50 = vpop.eup %4533  ;;  %v1482_v61 = vadd.f32 %v6784_v53, %v1481_v33  ;;  %4553 = vpow2.f32 %v6883_v46  ;;  %v10234_v33 = vld [vmem:[#allocation159_spill] sm:$0xff] }
 0x370   : > { %10224 = vst [vmem:[#allocation45_spill] sm:$0xff] %v7006_v50  ;;  %v7014_v56 = vpop.eup %4535  ;;  %4555 = vpow2.f32 %v6891_v19  ;;  %v2193_v48 = vadd.f32 %v6953_v63, %v2192_v43  ;;  %v10235_v63 = vld [vmem:[#allocation163_spill] sm:$0xff]  ;;  %v10237_v19 = vld [vmem:[#allocation165_spill] sm:$0xff] }
 0x371   : > { %10227 = vst [vmem:[#allocation48_spill] sm:$0xff] %v7014_v56  ;;  %v7022_v53 = vpop.eup %4537  ;;  %v1483_v46 = vadd.f32 %v6795_v51, %v1482_v61  ;;  %4557 = vpow2.f32 %v6896_v30 }
 0x372   : > { %10230 = vst [vmem:[#allocation55_spill] sm:$0xff] %v7022_v53  ;;  %v7030_v0 = vpop.eup %4539  ;;  %4559 = vpow2.f32 %v6915_v16  ;;  %v2194_v43 = vadd.f32 %v6960_v20, %v2193_v48 }
 0x373   : > { %10233 = vst [vmem:[#allocation58_spill] sm:$0xff] %v7030_v0  ;;  %v7038_v51 = vpop.eup %4541  ;;  %v1484_v30 = vadd.f32 %v6805_v7, %v1483_v46  ;;  %4561 = vpow2.f32 %v6932_v42  ;;  %v2060_v46 = vmul.f32 1.442695, %v10241_v40  ;;  %v10242_v42 = vsub.f32 %v10187_v44, %v6772_v18 }
 0x374   : > { %10236 = vst [vmem:[#allocation65_spill] sm:$0xff] %v7038_v51  ;;  %v7048_v48 = vpop.eup %4543  ;;  %4563 = vpow2.f32 %v6949_v15  ;;  %v2195_v61 = vadd.f32 %v6968_v37, %v2194_v43  ;;  %v2068_v7 = vmul.f32 1.442695, %v10244_v57  ;;  %v10245_v15 = vsub.f32 %v10192_v11, %v6772_v18  ;;  %v7079_v11 = vpop.trf.xlu1 }
 0x375   : > { %10240 = vst [vmem:[#allocation75_spill] sm:$0xff] %v7048_v48  ;;  %v2064_v20 = vmul.f32 1.442695, %v10242_v42  ;;  %v7058_v21 = vpop.eup %4545  ;;  %v1485_v16 = vadd.f32 %v6816_v5, %v1484_v30  ;;  %4565 = vpow2.f32 %v2182_v14  ;;  %v2076_v44 = vmul.f32 1.442695, %v10247_v6  ;;  %10250 = vst [vmem:[#allocation88_spill] sm:$0xff] %v7079_v11 }
 0x376   : > { %10243 = vst [vmem:[#allocation78_spill] sm:$0xff] %v7058_v21  ;;  %v2072_v43 = vmul.f32 1.442695, %v10245_v15  ;;  %v7067_v37 = vpop.eup %4547  ;;  %v2196_v40 = vadd.f32 %v6975_v47, %v2195_v61  ;;  %4567 = vpow2.f32 %v2060_v46  ;;  %v10249_v57 = vsub.f32 %v10196_v17, %v6772_v18 }
 0x377   : > { %10246 = vst [vmem:[#allocation85_spill] sm:$0xff] %v7067_v37  ;;  %v7073_v42 = vpop.eup %4549  ;;  %v1486_v14 = vadd.f32 %v6823_v28, %v1485_v16  ;;  %4569 = vpow2.f32 %v2064_v20  ;;  %v2084_v46 = vmul.f32 1.442695, %v10252_v10  ;;  %v10254_v17 = vsub.f32 %v10199_v49, %v6772_v18 }
 0x378   : > { %10248 = vst [vmem:[#allocation166_spill] sm:$0xff] %v7073_v42  ;;  %v2080_v59 = vmul.f32 1.442695, %v10249_v57  ;;  %v7081_v30 = vpop.eup %4551  ;;  %v2197_v61 = vadd.f32 %v6982_v26, %v2196_v40  ;;  %4571 = vpow2.f32 %v2068_v7  ;;  %v10256_v7 = vsub.f32 %v10202_v32, %v6772_v18  ;;  %v7105_v49 = vpop.trf.xlu1 }
 0x379   : > { %10251 = vst [vmem:[#allocation95_spill] sm:$0xff] %v7081_v30  ;;  %v7087_v15 = vpop.eup %4553  ;;  %v1487_v16 = vadd.f32 %v6834_v23, %v1486_v14  ;;  %4573 = vpow2.f32 %v2072_v43  ;;  %v2088_v20 = vmul.f32 1.442695, %v10254_v17  ;;  %v10258_v43 = vsub.f32 %v10204_v38, %v6772_v18  ;;  %10259 = vst [vmem:[#allocation115_spill] sm:$0xff] %v7105_v49  ;;  %v7107_v17 = vpop.trf.xlu0 }
 0x37a   : > { %10253 = vst [vmem:[#allocation98_spill] sm:$0xff] %v7087_v15  ;;  %v7093_v6 = vpop.eup %4555  ;;  %v2198_v57 = vadd.f32 %v6990_v27, %v2197_v61  ;;  %4575 = vpow2.f32 %v2076_v44  ;;  %v2092_v40 = vmul.f32 1.442695, %v10256_v7  ;;  %10260 = vst [vmem:[#allocation118_spill] sm:$0xff] %v7107_v17  ;;  %v10262_v32 = vsub.f32 %v10205_v45, %v6772_v18 }
 0x37b   : > { %10255 = vst [vmem:[#allocation105_spill] sm:$0xff] %v7093_v6  ;;  %v7099_v4 = vpop.eup %4557  ;;  %v1488_v10 = vadd.f32 %v6846_v55, %v1487_v16  ;;  %4577 = vpow2.f32 %v2080_v59  ;;  %v2096_v14 = vmul.f32 1.442695, %v10258_v43  ;;  %v10265_v38 = vsub.f32 %v10209_v29, %v6772_v18 }
 0x37c   : > { %10257 = vst [vmem:[#allocation108_spill] sm:$0xff] %v7099_v4  ;;  %v7109_v11 = vpop.eup %4559  ;;  %v2199_v44 = vadd.f32 %v6998_v41, %v2198_v57  ;;  %4579 = vpow2.f32 %v2084_v46  ;;  %v2100_v61 = vmul.f32 1.442695, %v10262_v32  ;;  %v10266_v43 = vsub.f32 %v10211_v35, %v6772_v18 }
 0x37d   : > { %10261 = vst [vmem:[#allocation122_spill] sm:$0xff] %v7109_v11  ;;  %v7115_v7 = vpop.eup %4561  ;;  %v7118_v59 = vadd.f32 %v6885_v12, %v1488_v10  ;;  %4581 = vpow2.f32 %v2088_v20  ;;  %v2104_v16 = vmul.f32 1.442695, %v10265_v38  ;;  %v10268_v45 = vsub.f32 %v10212_v13, %v6772_v18 }
 0x37e   : > { %10263 = vst [vmem:[#allocation124_spill] sm:$0xff] %v7115_v7  ;;  %v2108_v17 = vmul.f32 1.442695, %v10266_v43  ;;  %v7126_v57 = vpop.eup %4563  ;;  %v2200_v46 = vadd.f32 %v7006_v50, %v2199_v44  ;;  %4583 = vpow2.f32 %v2092_v40  ;;  %v10269_v20 = vsub.f32 %v10213_v2, %v6772_v18  ;;  %v7146_v43 = vpop.trf.xlu1  ;;  %v10389_v50 = vld [vmem:[#allocation93_spill] sm:$0xff] }
 0x37f   : > { %10264 = vst [vmem:[#allocation128_spill] sm:$0xff] %v7118_v59  ;;  %10267 = vst [vmem:[#allocation130_spill] sm:$0xff] %v7126_v57  ;;  %v2112_v32 = vmul.f32 1.442695, %v10268_v45  ;;  %v7135_v59 = vpop.eup %4565  ;;  %4585 = vpow2.f32 %v2096_v14  ;;  %v10271_v29 = vsub.f32 %v10214_v36, %v6772_v18  ;;  %v10272_v38 = vsub.f32 %v10216_v1, %v6772_v18  ;;  %v7148_v45 = vpop.trf.xlu0 }
 0x380   : > { %v2116_v10 = vmul.f32 1.442695, %v10269_v20  ;;  %10270 = vst [vmem:[#allocation134_spill] sm:$0xff] %v7135_v59  ;;  %v10273_v40 = vsub.f32 %v10217_v3, %v6772_v18  ;;  %10274 = vst [vmem:[#allocation136_spill] sm:$0xff] %v7146_v43  ;;  %v7150_v2 = vpop.eup %4567  ;;  %v2201_v14 = vadd.f32 %v7014_v56, %v2200_v46  ;;  %4587 = vpow2.f32 %v2100_v61  ;;  %v10297_v43 = vld [vmem:[#allocation47_spill] sm:$0xff] }
 0x381   : > { %v2120_v35 = vmul.f32 1.442695, %v10271_v29  ;;  %v2124_v44 = vmul.f32 1.442695, %v10272_v38  ;;  %10275 = vst [vmem:[#allocation140_spill] sm:$0xff] %v7148_v45  ;;  %10276 = vst [vmem:[#allocation143_spill] sm:$0xff] %v7150_v2  ;;  %v10277_v36 = vsub.f32 %v10219_v58, %v6772_v18  ;;  %v10278_v1 = vsub.f32 %v10220_v8, %v6772_v18  ;;  %v7159_v38 = vpop.eup %4569 }
 0x382   : > { %v2128_v13 = vmul.f32 1.442695, %v10273_v40  ;;  %10279 = vst [vmem:[#allocation148_spill] sm:$0xff] %v7159_v38  ;;  %4589 = vpow2.f32 %v2104_v16  ;;  %v10280_v3 = vsub.f32 %v10222_v62, %v6772_v18  ;;  %v10281_v45 = vsub.f32 %v10223_v54, %v6772_v18 }
 0x383   : > { %v2132_v20 = vmul.f32 1.442695, %v10277_v36  ;;  %v2136_v29 = vmul.f32 1.442695, %v10278_v1  ;;  %v10282_v58 = vsub.f32 %v10225_v39, %v6772_v18  ;;  %v7174_v36 = vpop.eup %4571  ;;  %v2202_v8 = vadd.f32 %v7022_v53, %v2201_v14 }
 0x384   : > { %v2140_v40 = vmul.f32 1.442695, %v10280_v3  ;;  %v7167_v46 = vmul.f32 1.442695, %v10281_v45  ;;  %10283 = vst [vmem:[#allocation152_spill] sm:$0xff] %v7174_v36  ;;  %4591 = vpow2.f32 %v2108_v17  ;;  %v10284_v16 = vsub.f32 %v10226_v31, %v6772_v18  ;;  %v7187_v1 = vpop.eup %4573 }
 0x385   : > { %v7172_v61 = vmul.f32 1.442695, %v10282_v58  ;;  %v10285_v54 = vsub.f32 %v10228_v60, %v6772_v18  ;;  %4593 = vpow2.f32 %v2112_v32  ;;  %v10286_v39 = vsub.f32 %v10229_v22, %v6772_v18  ;;  %v7204_v60 = vpop.trf.xlu1  ;;  %v7208_v32 = vpop.eup %4575 }
 0x386   : > { %v7180_v62 = vmul.f32 1.442695, %v10284_v16  ;;  %v10287_v17 = vsub.f32 %v10231_v52, %v6772_v18  ;;  %v10288_v31 = vsub.f32 %v10232_v34, %v6772_v18  ;;  %10289 = vst [vmem:[#allocation159_spill] sm:$0xff] %v7204_v60  ;;  %v7206_v16 = vpop.trf.xlu0  ;;  %10291 = vst [vmem:[#allocation165_spill] sm:$0xff] %v7208_v32  ;;  %v2203_v22 = vadd.f32 %v7030_v0, %v2202_v8  ;;  %v10292_v52 = vld [vmem:[#allocation172_spill] sm:$0xff]  ;;  %v7215_v59 = vpop.eup %4577  ;;  %v10298_v8 = vld [vmem:[#allocation53_spill] sm:$0xff] }
 0x387   : > { %v7185_v45 = vmul.f32 1.442695, %v10285_v54  ;;  %v7192_v3 = vmul.f32 1.442695, %v10286_v39  ;;  %10290 = vst [vmem:[#allocation163_spill] sm:$0xff] %v7206_v16  ;;  %4595 = vpow2.f32 %v2116_v10  ;;  %v2223_v54 = vadd.f32 %v7159_v38, %v7150_v2  ;;  %v10293_v39 = vld [vmem:[#allocation35_spill] sm:$0xff]  ;;  %v7226_v49 = vpop.eup %4579 }
 0x388   : > { %v7197_v14 = vmul.f32 1.442695, %v10287_v17  ;;  %v7202_v58 = vmul.f32 1.442695, %v10288_v31  ;;  %v1499_v17 = vpack.c.bf16 %v10293_v39, %v10292_v52  ;;  %4597 = vpow2.f32 %v2120_v35  ;;  %v10295_v16 = vld [vmem:[#allocation37_spill] sm:$0xff]  ;;  %v10296_v60 = vld [vmem:[#allocation44_spill] sm:$0xff] }
 0x389   : > { %v10294_v34 = vsub.f32 %v10234_v33, %v6772_v18  ;;  %v1501_v57 = vpack.c.bf16 %v10296_v60, %v10295_v16  ;;  %v1503_v10 = vpack.c.bf16 %v10298_v8, %v10297_v43  ;;  %v2204_v7 = vadd.f32 %v7038_v51, %v2203_v22  ;;  %v10299_v35 = vld [vmem:[#allocation57_spill] sm:$0xff]  ;;  %v10300_v39 = vld [vmem:[#allocation63_spill] sm:$0xff]  ;;  %v7232_v33 = vpop.eup %4581  ;;  %v7246_v51 = vpop.trf.xlu1  ;;  %v10319_v22 = vld [vmem:[#allocation40_spill] sm:$0xff] }
 0x38a   : > { %4599 = vpow2.f32 %v2124_v44  ;;  %v2224_v52 = vadd.f32 %v7174_v36, %v2223_v54  ;;  %1530 = vmatprep.subr.bf16.mxu1 %v1499_v17  ;;  %v1505_v11 = vpack.c.bf16 %v10300_v39, %v10299_v35  ;;  %v10301_v60 = vsub.f32 %v10235_v63, %v6772_v18  ;;  %v10302_v43 = vld [vmem:[#allocation33_spill] sm:$0xff]  ;;  %10307 = vst [vmem:[#allocation167_spill] sm:$0xff] %v7246_v51  ;;  %v7248_v35 = vpop.trf.xlu0  ;;  %v10325_v51 = vld [vmem:[#allocation127_spill] sm:$0xff]  ;;  %v10368_v38 = vld [vmem:[#allocation130_spill] sm:$0xff] }
 0x38b   : > { %v7220_v31 = vmul.f32 1.442695, %v10294_v34  ;;  %4601 = vpow2.f32 %v2128_v13  ;;  %v10303_v34 = vld [vmem:[#allocation32_spill] sm:$0xff]  ;;  %10308 = vst [vmem:[#allocation172_spill] sm:$0xff] %v7248_v35  ;;  %v7250_v13 = vpop.eup %4583  ;;  %v2205_v63 = vadd.f32 %v7048_v48, %v2204_v7  ;;  %v10311_v17 = vsub.f32 %v10237_v19, %v6772_v18  ;;  %v10320_v35 = vld [vmem:[#allocation34_spill] sm:$0xff]  ;;  %v10322_v54 = vld [vmem:[#allocation117_spill] sm:$0xff] }
 0x38c   : > { %v7237_v16 = vmul.f32 1.442695, %v10301_v60  ;;  %v10304_v8 = vpack.c.bf16 %v10302_v43, %v10303_v34  ;;  %4603 = vpow2.f32 %v2132_v20  ;;  %v2225_v39 = vadd.f32 %v7187_v1, %v2224_v52  ;;  %v10323_v7 = vld [vmem:[#allocation121_spill] sm:$0xff]  ;;  %v10332_v60 = vld [vmem:[#allocation42_spill] sm:$0xff]  ;;  %v10361_v0 = vld [vmem:[#allocation67_spill] sm:$0xff] }
 0x38d   : > { %4605 = vpow2.f32 %v2136_v29  ;;  %v7261_v44 = vmul.f32 1.442695, %v10311_v17  ;;  %v10318_v19 = vsub.f32 %v10238_v9, %v6772_v18  ;;  %v10321_v20 = vpack.c.bf16 %v10319_v22, %v10320_v35  ;;  %v7289_v34 = vpop.trf.xlu1 }
 0x38e   : > { %1531 = vmatpush1.bf16.msra.mxu1 %v10304_v8  ;;  %v7256_v8 = vpop.eup %4585  ;;  %4607 = vpow2.f32 %v2140_v40  ;;  %v2226_v52 = vadd.f32 %v7208_v32, %v2225_v39  ;;  %v10324_v40 = vld [vmem:[#allocation123_spill] sm:$0xff]  ;;  %10327 = vst [vmem:[#allocation35_spill] sm:$0xff] %v7289_v34  ;;  %v7291_v29 = vpop.trf.xlu0 }
 0x38f   : > { %1532 = vmatprep.subr.bf16.mxu1 %v1501_v57  ;;  %v7267_v48 = vpop.eup %4587  ;;  %v2206_v57 = vadd.f32 %v7058_v21, %v2205_v63  ;;  %v7278_v17 = vmul.f32 1.442695, %v10318_v19  ;;  %v10326_v21 = vld [vmem:[#allocation129_spill] sm:$0xff]  ;;  %10328 = vst [vmem:[#allocation37_spill] sm:$0xff] %v7291_v29  ;;  %4609 = vpow2.f32 %v7167_v46  ;;  %v10331_v19 = vld [vmem:[#allocation50_spill] sm:$0xff]  ;;  %v10335_v39 = vld [vmem:[#allocation147_spill] sm:$0xff] }
 0x390   : > { %v7273_v43 = vpop.eup %4589  ;;  %v2227_v22 = vadd.f32 %v7215_v59, %v2226_v52  ;;  %4611 = vpow2.f32 %v7172_v61  ;;  %v10333_v2 = vpack.c.bf16 %v10331_v19, %v10332_v60  ;;  %v10334_v63 = vld [vmem:[#allocation142_spill] sm:$0xff]  ;;  %v10347_v32 = vld [vmem:[#allocation155_spill] sm:$0xff] }
 0x391   : > { %v7293_v9 = vpop.eup %4591  ;;  %v2207_v18 = vadd.f32 %v7067_v37, %v2206_v57  ;;  %4613 = vpow2.f32 %v7180_v62  ;;  %v7328_v55 = vpop.trf.xlu1  ;;  %v10344_v57 = vld [vmem:[#allocation60_spill] sm:$0xff] }
 0x392   : > { %1533 = vmatpush1.bf16.msra.mxu1 %v10321_v20  ;;  %v7300_v20 = vpop.eup %4593  ;;  %v2228_v52 = vadd.f32 %v7226_v49, %v2227_v22  ;;  %4615 = vpow2.f32 %v7185_v45  ;;  %10338 = vst [vmem:[#allocation44_spill] sm:$0xff] %v7328_v55  ;;  %v7330_v61 = vpop.trf.xlu0  ;;  %v10345_v62 = vld [vmem:[#allocation52_spill] sm:$0xff] }
 0x393   : > { %1534 = vmatprep.subr.bf16.mxu1 %v1503_v10  ;;  %v7309_v46 = vpop.eup %4595  ;;  %v2208_v10 = vadd.f32 %v7073_v42, %v2207_v18  ;;  %10339 = vst [vmem:[#allocation47_spill] sm:$0xff] %v7330_v61  ;;  %4617 = vpow2.f32 %v7192_v3  ;;  %v10341_v18 = vld [vmem:[#allocation162_spill] sm:$0xff]  ;;  %v10346_v22 = vpack.c.bf16 %v10344_v57, %v10345_v62  ;;  %v10350_v62 = vpack.c.bf16 %v6671_v25, %v6659_v24 }
 0x394   : > { %v7316_v35 = vpop.eup %4597  ;;  %4619 = vpow2.f32 %v7197_v14 }
 0x395   : > { %v7332_v36 = vpop.eup %4599  ;;  %v2209_v45 = vadd.f32 %v7081_v30, %v2208_v10  ;;  %4621 = vpow2.f32 %v7202_v58  ;;  %v10352_v58 = vld [vmem:[#allocation62_spill] sm:$0xff] }
 0x396   : > { %1535 = vmatpush1.bf16.msra.mxu1 %v10333_v2  ;;  %v2229_v2 = vadd.f32 %v7232_v33, %v2228_v52  ;;  %v7339_v19 = vpop.eup %4601  ;;  %4623 = vpow2.f32 %v7220_v31  ;;  %v7369_v14 = vpop.trf.xlu0 }
 0x397   : > { %1536 = vmatprep.subr.bf16.mxu1 %v1505_v11  ;;  %v7348_v3 = vpop.eup %4603  ;;  %v2210_v11 = vadd.f32 %v7087_v15, %v2209_v45  ;;  %10349 = vst [vmem:[#allocation57_spill] sm:$0xff] %v7369_v14  ;;  %4625 = vpow2.f32 %v7237_v16  ;;  %v10360_v16 = vld [vmem:[#allocation73_spill] sm:$0xff] }
 0x398   : > { %v2230_v52 = vadd.f32 %v7250_v13, %v2229_v2  ;;  %v7355_v60 = vpop.eup %4605  ;;  %v7367_v2 = vpop.trf.xlu1  ;;  %4627 = vpow2.f32 %v7261_v44  ;;  %v10362_v45 = vpack.c.bf16 %v10360_v16, %v10361_v0  ;;  %v10390_v0 = vld [vmem:[#allocation87_spill] sm:$0xff] }
 0x399   : > { %10348 = vst [vmem:[#allocation53_spill] sm:$0xff] %v7367_v2  ;;  %v7371_v10 = vpop.eup %4607  ;;  %v2211_v31 = vadd.f32 %v7093_v6, %v2210_v11  ;;  %4629 = vpow2.f32 %v7278_v17  ;;  %v10373_v6 = vld [vmem:[#allocation72_spill] sm:$0xff] }
 0x39a   : > { %1537 = vmatpush1.bf16.msra.mxu1 %v10346_v22  ;;  %v2231_v57 = vadd.f32 %v7256_v8, %v2230_v52  ;;  %v7388_v11 = vpop.eup %4609  ;;  %v7410_v25 = vpop.trf.xlu0  ;;  %v10392_v2 = vld [vmem:[#allocation100_spill] sm:$0xff] }
 0x39b   : > { %1538 = vmatprep.subr.bf16.mxu1 %v10350_v62  ;;  %v2212_v52 = vadd.f32 %v7099_v4, %v2211_v31  ;;  %v7395_v44 = vpop.eup %4611  ;;  %v10351_v62 = vld [vmem:[#allocation70_spill] sm:$0xff]  ;;  %10358 = vst [vmem:[#allocation33_spill] sm:$0xff] %v7410_v25  ;;  %v10393_v25 = vld [vmem:[#allocation92_spill] sm:$0xff] }
 0x39c   : > { %v2232_v24 = vadd.f32 %v7267_v48, %v2231_v57  ;;  %v10353_v22 = vpack.c.bf16 %v10351_v62, %v10352_v58  ;;  %v7408_v53 = vpop.trf.xlu1  ;;  %v7412_v41 = vpop.eup %4613  ;;  %v10359_v58 = vld [vmem:[#allocation122_spill] sm:$0xff]  ;;  %v10394_v29 = vpack.c.bf16 %v10392_v2, %v10393_v25  ;;  %v10405_v25 = vld [vmem:[#allocation113_spill] sm:$0xff] }
 0x39d   : > { %10357 = vst [vmem:[#allocation63_spill] sm:$0xff] %v7408_v53  ;;  %v7423_v37 = vpop.eup %4615  ;;  %v10369_v31 = vld [vmem:[#allocation134_spill] sm:$0xff] }
 0x39e   : > { %1539 = vmatpush1.bf16.msra.mxu1 %v10353_v22  ;;  %v2213_v22 = vadd.f32 %v10359_v58, %v2212_v52  ;;  %v2233_v62 = vadd.f32 %v7273_v43, %v2232_v24  ;;  %v10365_v24 = vld [vmem:[#allocation124_spill] sm:$0xff]  ;;  %v7433_v16 = vpop.eup %4617  ;;  %v7456_v26 = vpop.trf.xlu0 }
 0x39f   : > { %1540 = vmatprep.subr.bf16.mxu1 %v10362_v45  ;;  %v7441_v27 = vpop.eup %4619  ;;  %v10372_v52 = vld [vmem:[#allocation80_spill] sm:$0xff]  ;;  %10380 = vst [vmem:[#allocation40_spill] sm:$0xff] %v7456_v26  ;;  %v10382_v45 = vld [vmem:[#allocation77_spill] sm:$0xff]  ;;  %v10406_v26 = vld [vmem:[#allocation107_spill] sm:$0xff] }
 0x3a0   : > { %v2214_v17 = vadd.f32 %v10365_v24, %v2213_v22  ;;  %v2234_v57 = vadd.f32 %v7293_v9, %v2233_v62  ;;  %v10374_v56 = vpack.c.bf16 %v10372_v52, %v10373_v6  ;;  %v7454_v4 = vpop.trf.xlu1  ;;  %v7458_v15 = vpop.eup %4621  ;;  %v10381_v52 = vld [vmem:[#allocation83_spill] sm:$0xff]  ;;  %v10385_v22 = vld [vmem:[#allocation82_spill] sm:$0xff] }
 0x3a1   : > { %10379 = vst [vmem:[#allocation32_spill] sm:$0xff] %v7454_v4  ;;  %v10383_v42 = vpack.c.bf16 %v10381_v52, %v10382_v45  ;;  %v7469_v24 = vpop.eup %4623  ;;  %v10384_v52 = vld [vmem:[#allocation90_spill] sm:$0xff] }
 0x3a2   : > { %1541 = vmatpush1.bf16.msra.mxu1 %v10374_v56  ;;  %v2215_v56 = vadd.f32 %v10368_v38, %v2214_v17  ;;  %v2235_v6 = vadd.f32 %v7300_v20, %v2234_v57  ;;  %v7475_v55 = vpop.eup %4625  ;;  %v10386_v30 = vpack.c.bf16 %v10384_v52, %v10385_v22  ;;  %v7490_v53 = vpop.trf.xlu0  ;;  %v10400_v4 = vld [vmem:[#allocation110_spill] sm:$0xff] }
 0x3a3   : > { %1542 = vmatprep.subr.bf16.mxu1 %v10383_v42  ;;  %v7481_v45 = vpop.eup %4627  ;;  %10388 = vst [vmem:[#allocation117_spill] sm:$0xff] %v7490_v53  ;;  %v10401_v22 = vld [vmem:[#allocation102_spill] sm:$0xff]  ;;  %v10407_v53 = vpack.c.bf16 %v10405_v25, %v10406_v26  ;;  %v10414_v25 = vld [vmem:[#allocation137_spill] sm:$0xff] }
 0x3a4   : > { %v7478_v57 = vadd.f32 %v10369_v31, %v2215_v56  ;;  %v2236_v42 = vadd.f32 %v7309_v46, %v2235_v6  ;;  %v7488_v34 = vpop.trf.xlu1  ;;  %v7492_v17 = vpop.eup %4629  ;;  %v10391_v6 = vpack.c.bf16 %v10389_v50, %v10390_v0  ;;  %v10397_v0 = vld [vmem:[#allocation103_spill] sm:$0xff] }
 0x3a5   : > { %10387 = vst [vmem:[#allocation34_spill] sm:$0xff] %v7488_v34  ;;  %v10402_v34 = vpack.c.bf16 %v10400_v4, %v10401_v22  ;;  %v10408_v4 = vld [vmem:[#allocation119_spill] sm:$0xff] }
 0x3a6   : > { %1543 = vmatpush1.bf16.msra.mxu1 %v10386_v30  ;;  %v2237_v56 = vadd.f32 %v7316_v35, %v2236_v42  ;;  %v7510_v61 = vpop.trf.xlu0 }
 0x3a7   : > { %1544 = vmatprep.subr.bf16.mxu1 %v10391_v6  ;;  %10396 = vst [vmem:[#allocation123_spill] sm:$0xff] %v7510_v61  ;;  %v10398_v6 = vld [vmem:[#allocation97_spill] sm:$0xff] }
 0x3a8   : > { %v2238_v52 = vadd.f32 %v7332_v36, %v2237_v56  ;;  %v7508_v42 = vpop.trf.xlu1  ;;  %v10399_v14 = vpack.c.bf16 %v10397_v0, %v10398_v6 }
 0x3a9   : > { %10395 = vst [vmem:[#allocation121_spill] sm:$0xff] %v7508_v42 }
 0x3aa   : > { %1545 = vmatpush1.bf16.msra.mxu1 %v10394_v29  ;;  %v2239_v50 = vadd.f32 %v7339_v19, %v2238_v52  ;;  %v7522_v2 = vpop.trf.xlu0  ;;  %v10415_v52 = vld [vmem:[#allocation126_spill] sm:$0xff] }
 0x3ab   : > { %1546 = vmatprep.subr.bf16.mxu1 %v10399_v14  ;;  %10404 = vst [vmem:[#allocation129_spill] sm:$0xff] %v7522_v2  ;;  %v10416_v14 = vpack.c.bf16 %v10414_v25, %v10415_v52  ;;  %v10420_v52 = vld [vmem:[#allocation144_spill] sm:$0xff] }
 0x3ac   : > { %v2240_v30 = vadd.f32 %v7348_v3, %v2239_v50  ;;  %v7520_v56 = vpop.trf.xlu1  ;;  %v10425_v25 = vld [vmem:[#allocation168_spill] sm:$0xff] }
 0x3ad   : > { %10403 = vst [vmem:[#allocation127_spill] sm:$0xff] %v7520_v56 }
 0x3ae   : > { %1547 = vmatpush1.bf16.msra.mxu1 %v10402_v34  ;;  %v2241_v29 = vadd.f32 %v7355_v60, %v2240_v30  ;;  %v10409_v34 = vld [vmem:[#allocation112_spill] sm:$0xff]  ;;  %v7538_v6 = vpop.trf.xlu0 }
 0x3af   : > { %1548 = vmatprep.subr.bf16.mxu1 %v10407_v53  ;;  %v10410_v22 = vpack.c.bf16 %v10408_v4, %v10409_v34  ;;  %10412 = vst [vmem:[#allocation42_spill] sm:$0xff] %v7538_v6  ;;  %v10413_v53 = vpack.c.bf16 %v10323_v7, %v10322_v54 }
 0x3b0   : > { %v2242_v50 = vadd.f32 %v7371_v10, %v2241_v29  ;;  %v7536_v0 = vpop.trf.xlu1 }
 0x3b1   : > { %10411 = vst [vmem:[#allocation50_spill] sm:$0xff] %v7536_v0 }
 0x3b2   : > { %1549 = vmatpush1.bf16.msra.mxu1 %v10410_v22  ;;  %v2243_v30 = vadd.f32 %v7388_v11, %v2242_v50  ;;  %v7550_v4 = vpop.trf.xlu0  ;;  %v10419_v22 = vpack.c.bf16 %v10325_v51, %v10324_v40  ;;  %v10424_v51 = vpack.c.bf16 %v6816_v5, %v10326_v21  ;;  %v10430_v21 = vld [vmem:[#allocation169_spill] sm:$0xff] }
 0x3b3   : > { %1550 = vmatprep.subr.bf16.mxu1 %v10413_v53  ;;  %10418 = vst [vmem:[#allocation147_spill] sm:$0xff] %v7550_v4 }
 0x3b4   : > { %v2244_v26 = vadd.f32 %v7395_v44, %v2243_v30  ;;  %v7548_v29 = vpop.trf.xlu1 }
 0x3b5   : > { %10417 = vst [vmem:[#allocation142_spill] sm:$0xff] %v7548_v29 }
 0x3b6   : > { %1551 = vmatpush1.bf16.msra.mxu1 %v10416_v14  ;;  %v2245_v34 = vadd.f32 %v7412_v41, %v2244_v26  ;;  %v10421_v14 = vld [vmem:[#allocation138_spill] sm:$0xff]  ;;  %v7564_v53 = vpop.trf.xlu0 }
 0x3b7   : > { %1552 = vmatprep.subr.bf16.mxu1 %v10419_v22  ;;  %v10422_v30 = vpack.c.bf16 %v10420_v52, %v10421_v14  ;;  %10423 = vst [vmem:[#allocation162_spill] sm:$0xff] %v7564_v53  ;;  %v10426_v22 = vld [vmem:[#allocation31_spill] sm:$0xff]  ;;  %v10429_v52 = vpack.c.bf16 %v6834_v23, %v6823_v28  ;;  %v10431_v14 = vld [vmem:[#allocation146_spill] sm:$0xff] }
 0x3b8   : > { %v2246_v50 = vadd.f32 %v7423_v37, %v2245_v34  ;;  %v10427_v54 = vpack.c.bf16 %v10425_v25, %v10426_v22  ;;  %v10435_v25 = vld [vmem:[#allocation171_spill] sm:$0xff]  ;;  %v10436_v28 = vld [vmem:[#allocation170_spill] sm:$0xff] }
 0x3b9   : > { %v10437_v23 = vpack.c.bf16 %v10435_v25, %v10436_v28  ;;  %v10450_v25 = vld [vmem:[#allocation152_spill] sm:$0xff]  ;;  %v10452_v28 = vpack.c.bf16 %v10335_v39, %v10334_v63  ;;  %v10464_v63 = vpack.c.bf16 %v7232_v33, %v7226_v49  ;;  %v10473_v49 = vpack.c.bf16 %v7273_v43, %v7267_v48 }
 0x3ba   : > { %1553 = vmatpush1.bf16.msra.mxu1 %v10422_v30  ;;  %v2247_v26 = vadd.f32 %v7433_v16, %v2246_v50  ;;  %v7574_v7 = vpop.trf.xlu0  ;;  %v10432_v30 = vpack.c.bf16 %v10430_v21, %v10431_v14  ;;  %v10441_v21 = vld [vmem:[#allocation30_spill] sm:$0xff]  ;;  %v10442_v14 = vld [vmem:[#allocation29_spill] sm:$0xff]  ;;  %v10474_v33 = vpack.c.bf16 %v6975_v47, %v10347_v32  ;;  %v10480_v32 = vld [vmem:[#allocation36_spill] sm:$0xff] }
 0x3bb   : > { %1554 = vmatprep.subr.bf16.mxu1 %v10424_v51  ;;  %10428 = vst [vmem:[#allocation60_spill] sm:$0xff] %v7574_v7 }
 0x3bc   : > { %v2248_v40 = vadd.f32 %v7441_v27, %v2247_v26 }
 0x3be   : > { %1555 = vmatpush1.bf16.msra.mxu1 %v10427_v54  ;;  %v2249_v34 = vadd.f32 %v7458_v15, %v2248_v40  ;;  %v10433_v54 = vld [vmem:[#allocation135_spill] sm:$0xff] }
 0x3bf   : > { %1556 = vmatprep.subr.bf16.mxu1 %v10429_v52  ;;  %v10434_v51 = vpack.c.bf16 %v6885_v12, %v10433_v54  ;;  %v10439_v52 = vld [vmem:[#allocation143_spill] sm:$0xff]  ;;  %v10445_v12 = vld [vmem:[#allocation10_spill] sm:$0xff] }
 0x3c0   : > { %v2250_v5 = vadd.f32 %v7469_v24, %v2249_v34  ;;  %v10438_v34 = vld [vmem:[#allocation148_spill] sm:$0xff] }
 0x3c1   : > { %v10440_v50 = vpack.c.bf16 %v10438_v34, %v10439_v52  ;;  %v10455_v34 = vld [vmem:[#allocation11_spill] sm:$0xff]  ;;  %v10456_v52 = vld [vmem:[#allocation9_spill] sm:$0xff] }
 0x3c2   : > { %1557 = vmatpush1.bf16.msra.mxu1 %v10432_v30  ;;  %v2251_v26 = vadd.f32 %v7475_v55, %v2250_v5  ;;  %v10443_v5 = vpack.c.bf16 %v10441_v21, %v10442_v14  ;;  %v10444_v30 = vld [vmem:[#allocation12_spill] sm:$0xff]  ;;  %v10457_v21 = vpack.c.bf16 %v10455_v34, %v10456_v52  ;;  %v10458_v14 = vld [vmem:[#allocation131_spill] sm:$0xff]  ;;  %v10476_v34 = vld [vmem:[#allocation22_spill] sm:$0xff] }
 0x3c3   : > { %1558 = vmatprep.subr.bf16.mxu1 %v10434_v51  ;;  %v10446_v54 = vpack.c.bf16 %v10444_v30, %v10445_v12  ;;  %v10448_v51 = vld [vmem:[#allocation120_spill] sm:$0xff]  ;;  %v10462_v12 = vld [vmem:[#allocation14_spill] sm:$0xff] }
 0x3c4   : > { %v2252_v40 = vadd.f32 %v7481_v45, %v2251_v26  ;;  %v10447_v26 = vld [vmem:[#allocation139_spill] sm:$0xff]  ;;  %v444_v39 = vpop.permute.xlu1 %443 }
 0x3c5   : > { %v10449_v0 = vpack.c.bf16 %v10447_v26, %v10448_v51  ;;  %v10467_v26 = vld [vmem:[#allocation156_spill] sm:$0xff] }
 0x3c6   : > { %1559 = vmatpush1.bf16.msra.mxu1 %v10437_v23  ;;  %v7595_v22 = vadd.f32 %v7492_v17, %v2252_v40  ;;  %v10451_v40 = vpack.c.bf16 %v7187_v1, %v10450_v25  ;;  %v10468_v51 = vpack.c.bf16 %v10341_v18, %v10467_v26  ;;  %v10469_v25 = vpack.c.bf16 %v7256_v8, %v7250_v13  ;;  %v10477_v8 = vld [vmem:[#allocation17_spill] sm:$0xff]  ;;  %v10490_v26 = vld [vmem:[#allocation6_spill] sm:$0xff] }
 0x3c7   : > { %2292 = vmatprep.subr.bf16.mxu1 %v10440_v50  ;;  %v10453_v50 = vld [vmem:[#allocation165_spill] sm:$0xff]  ;;  %v10475_v18 = vpack.c.bf16 %v7300_v20, %v7293_v9  ;;  %v7652_v13 = vadd.f32 %v10476_v34, %v444_v39 }
 0x3c8   : > { %v10454_v23 = vpack.c.bf16 %v7215_v59, %v10453_v50  ;;  %v454_v48 = vpop.permute.xlu1 %453  ;;  %v10500_v34 = vld [vmem:[#allocation65_spill] sm:$0xff] }
 0x3c9   : > { %1561 = vmatmul.mubr.bf16.vlgmr.msra.gmra.mrb[68].mxu1 %v10443_v5  ;;  %v10459_v5 = vld [vmem:[#allocation125_spill] sm:$0xff] }
 0x3ca   : > { %1570 = vmatprep.mubr.bf16.mxu1 %v10446_v54  ;;  %2293 = vmatpush1.bf16.msra.mxu1 %v10449_v0  ;;  %v10460_v30 = vpack.c.bf16 %v10458_v14, %v10459_v5  ;;  %v10461_v0 = vld [vmem:[#allocation16_spill] sm:$0xff]  ;;  %v10465_v54 = vld [vmem:[#allocation21_spill] sm:$0xff]  ;;  %v10481_v5 = vld [vmem:[#allocation151_spill] sm:$0xff] }
 0x3cb   : > { %2294 = vmatprep.subr.bf16.mxu1 %v10451_v40  ;;  %v10463_v1 = vpack.c.bf16 %v10461_v0, %v10462_v12  ;;  %v7631_v59 = vadd.f32 %v10465_v54, %v444_v39  ;;  %v10470_v40 = vld [vmem:[#allocation132_spill] sm:$0xff]  ;;  %v10482_v9 = vpack.c.bf16 %v10480_v32, %v10481_v5  ;;  %v10484_v0 = vld [vmem:[#allocation7_spill] sm:$0xff]  ;;  %v10488_v39 = vld [vmem:[#allocation5_spill] sm:$0xff] }
 0x3cc   : > { %v7671_v12 = vadd.f32 %v10484_v0, %v454_v48  ;;  %v10504_v32 = vld [vmem:[#allocation78_spill] sm:$0xff]  ;;  %v10505_v5 = vld [vmem:[#allocation75_spill] sm:$0xff] }
 0x3cd   : > { %10466 = vst [vmem:[#allocation52_spill] sm:$0xff] %v7631_v59  ;;  %v10513_v0 = vld [vmem:[#allocation95_spill] sm:$0xff] }
 0x3ce   : > { %2295 = vmatpush1.bf16.msra.mxu1 %v10452_v28  ;;  %v10471_v28 = vld [vmem:[#allocation164_spill] sm:$0xff]  ;;  %10485 = vst [vmem:[#allocation70_spill] sm:$0xff] %v7671_v12 }
 0x3cf   : > { %2296 = vmatprep.subr.bf16.mxu1 %v10454_v23  ;;  %v10472_v50 = vpack.c.bf16 %v10470_v40, %v10471_v28  ;;  %v439_v23 = vpop.permute.xlu0 %438 }
 0x3d0   : > { %v7655_v52 = vadd.f32 %v10477_v8, %v439_v23  ;;  %v10501_v8 = vld [vmem:[#allocation58_spill] sm:$0xff] }
 0x3d1   : > { %1571 = vmatmul.mubr.bf16.gmra.mrb[72].mxu1 %v10457_v21  ;;  %v10479_v21 = vld [vmem:[#allocation20_spill] sm:$0xff] }
 0x3d2   : > { %2297 = vmatpush1.bf16.msra.mxu1 %v10460_v30  ;;  %2324 = vmatprep.mubr.bf16.mxu1 %v10463_v1  ;;  %10478 = vst [vmem:[#allocation155_spill] sm:$0xff] %v7655_v52  ;;  %v7658_v14 = vadd.f32 %v10479_v21, %v439_v23  ;;  %v10483_v30 = vpack.c.bf16 %v7316_v35, %v7309_v46  ;;  %v10486_v1 = vld [vmem:[#allocation8_spill] sm:$0xff]  ;;  %v10492_v35 = vld [vmem:[#allocation45_spill] sm:$0xff]  ;;  %v10493_v46 = vld [vmem:[#allocation38_spill] sm:$0xff] }
 0x3d3   : > { %2298 = vmatprep.subr.bf16.mxu1 %v10464_v63  ;;  %v449_v20 = vpop.permute.xlu0 %448  ;;  %v7674_v63 = vadd.f32 %v10486_v1, %v454_v48  ;;  %v10494_v28 = vpack.c.bf16 %v10492_v35, %v10493_v46  ;;  %v10502_v21 = vpack.c.bf16 %v10500_v34, %v10501_v8  ;;  %v10503_v48 = vpack.c.bf16 %v7388_v11, %v7371_v10  ;;  %v10516_v1 = vld [vmem:[#allocation108_spill] sm:$0xff]  ;;  %v10521_v35 = vld [vmem:[#allocation122_spill] sm:$0xff]  ;;  %v10535_v34 = vld [vmem:[#allocation25_spill] sm:$0xff] }
 0x3d4   : > { %v831_v47 = vpack.c.bf16 %v7652_v13, %v7658_v14  ;;  %v7677_v54 = vadd.f32 %v10488_v39, %v449_v20  ;;  %v10515_v11 = vpack.c.bf16 %v7458_v15, %v7441_v27  ;;  %v10517_v39 = vld [vmem:[#allocation105_spill] sm:$0xff]  ;;  %v10524_v27 = vpack.c.bf16 %v10369_v31, %v10368_v38  ;;  %v10525_v15 = vld [vmem:[#allocation28_spill] sm:$0xff]  ;;  %v10526_v46 = vld [vmem:[#allocation26_spill] sm:$0xff] }
 0x3d5   : > { %10487 = vst [vmem:[#allocation62_spill] sm:$0xff] %v7674_v63  ;;  %v10538_v8 = vld [vmem:[#allocation18_spill] sm:$0xff]  ;;  %v10540_v31 = vmov 0  }
 0x3d6   : > { %2299 = vmatpush1.bf16.msra.mxu1 %v10468_v51  ;;  %10489 = vst [vmem:[#allocation73_spill] sm:$0xff] %v7677_v54  ;;  %v7680_v51 = vadd.f32 %v10490_v26, %v449_v20  ;;  %v10509_v20 = vld [vmem:[#allocation85_spill] sm:$0xff]  ;;  %v10520_v26 = vld [vmem:[#allocation124_spill] sm:$0xff] }
 0x3d7   : > { %2300 = vmatprep.subr.bf16.mxu1 %v10469_v25 }
 0x3d8   : > { %10491 = vst [vmem:[#allocation67_spill] sm:$0xff] %v7680_v51 }
 0x3da   : > { %2301 = vmatpush1.bf16.msra.mxu1 %v10472_v50  ;;  %v10495_v50 = vpack.c.bf16 %v7339_v19, %v7332_v36  ;;  %v10506_v36 = vpack.c.bf16 %v10504_v32, %v10505_v5  ;;  %v10507_v19 = vpack.c.bf16 %v7412_v41, %v7395_v44  ;;  %v10518_v41 = vpack.c.bf16 %v10516_v1, %v10517_v39  ;;  %v10544_v5 = vld [vmem:[#allocation54_spill] sm:$0xff] }
 0x3db   : > { %2302 = vmatprep.subr.bf16.mxu1 %v10473_v49  ;;  %v10496_v49 = vld [vmem:[#allocation55_spill] sm:$0xff]  ;;  %v10519_v44 = vpack.c.bf16 %v7475_v55, %v7469_v24  ;;  %v10531_v24 = vld [vmem:[#allocation24_spill] sm:$0xff]  ;;  %v10556_v39 = vld [vmem:[#allocation94_spill] sm:$0xff] }
 0x3de   : > { %2303 = vmatpush1.bf16.msra.mxu1 %v10474_v33  ;;  %v10497_v33 = vld [vmem:[#allocation48_spill] sm:$0xff] }
 0x3df   : > { %2304 = vmatprep.subr.bf16.mxu1 %v10475_v18  ;;  %v10498_v23 = vpack.c.bf16 %v10496_v49, %v10497_v33  ;;  %v10499_v18 = vpack.c.bf16 %v7355_v60, %v7348_v3  ;;  %v10511_v3 = vpack.c.bf16 %v7433_v16, %v7423_v37  ;;  %v10522_v37 = vpack.c.bf16 %v10520_v26, %v10521_v35  ;;  %v10529_v49 = vld [vmem:[#allocation13_spill] sm:$0xff]  ;;  %v10532_v33 = vld [vmem:[#allocation19_spill] sm:$0xff]  ;;  %v10559_v26 = vld [vmem:[#allocation104_spill] sm:$0xff] }
 0x3e0   : > { %v10523_v16 = vpack.c.bf16 %v7492_v17, %v7481_v45  ;;  %v10537_v45 = vld [vmem:[#allocation23_spill] sm:$0xff] }
 0x3e1   : > { %v10539_v38 = vpack.c.bf16 %v10537_v45, %v10538_v8  ;;  %v10560_v35 = vld [vmem:[#allocation99_spill] sm:$0xff]  ;;  %v10577_v8 = vld [vmem:[#allocation86_spill] sm:$0xff] }
 0x3e2   : > { %2305 = vmatpush1.bf16.msra.mxu1 %v10482_v9  ;;  %v10508_v9 = vld [vmem:[#allocation166_spill] sm:$0xff] }
 0x3e3   : > { %2306 = vmatprep.subr.bf16.mxu1 %v10483_v30  ;;  %v10510_v60 = vpack.c.bf16 %v10508_v9, %v10509_v20  ;;  %v10512_v30 = vld [vmem:[#allocation98_spill] sm:$0xff]  ;;  %v10547_v9 = vld [vmem:[#allocation64_spill] sm:$0xff]  ;;  %v10548_v20 = vld [vmem:[#allocation59_spill] sm:$0xff] }
 0x3e4   : > { %v10514_v10 = vpack.c.bf16 %v10512_v30, %v10513_v0  ;;  %v10551_v30 = vld [vmem:[#allocation69_spill] sm:$0xff] }
 0x3e6   : > { %2307 = vmatpush1.bf16.msra.mxu1 %v10494_v28  ;;  %v10527_v28 = vpack.c.bf16 %v10525_v15, %v10526_v46  ;;  %v10565_v46 = vld [vmem:[#allocation46_spill] sm:$0xff] }
 0x3e7   : > { %2308 = vmatprep.subr.bf16.mxu1 %v10495_v50  ;;  %v10528_v50 = vld [vmem:[#allocation15_spill] sm:$0xff] }
 0x3e8   : > { %v10530_v55 = vpack.c.bf16 %v10528_v50, %v10529_v49  ;;  %v10568_v49 = vld [vmem:[#allocation56_spill] sm:$0xff] }
 0x3ea   : > { %2309 = vmatpush1.bf16.msra.mxu1 %v10498_v23  ;;  %v10533_v23 = vpack.c.bf16 %v10531_v24, %v10532_v33  ;;  %v10571_v33 = vld [vmem:[#allocation66_spill] sm:$0xff] }
 0x3eb   : > { %2310 = vmatprep.subr.bf16.mxu1 %v10499_v18  ;;  %v10534_v18 = vld [vmem:[#allocation27_spill] sm:$0xff] }
 0x3ec   : > { %v10536_v17 = vpack.c.bf16 %v10534_v18, %v10535_v34  ;;  %v10574_v34 = vld [vmem:[#allocation76_spill] sm:$0xff] }
 0x3ee   : > { %2311 = vmatpush1.bf16.msra.mxu1 %v10502_v21  ;;  %v10541_v21 = vld [vmem:[#allocation43_spill] sm:$0xff] }
 0x3ef   : > { %2312 = vmatprep.subr.bf16.mxu1 %v10503_v48  ;;  %v10542_v48 = vld [vmem:[#allocation39_spill] sm:$0xff] }
 0x3f0   : > { %v10543_v32 = vpack.c.bf16 %v10541_v21, %v10542_v48  ;;  %v10580_v48 = vld [vmem:[#allocation133_spill] sm:$0xff] }
 0x3f2   : > { %2313 = vmatpush1.bf16.msra.mxu1 %v10506_v36  ;;  %v10545_v36 = vld [vmem:[#allocation49_spill] sm:$0xff] }
 0x3f3   : > { %2314 = vmatprep.subr.bf16.mxu1 %v10507_v19  ;;  %v10546_v19 = vpack.c.bf16 %v10544_v5, %v10545_v36  ;;  %v10581_v5 = vld [vmem:[#allocation128_spill] sm:$0xff] }
 0x3f4   : > { %v1490_v36 = vrot.slane %v10581_v5, 4 }
 0x3f6   : > { %2315 = vmatpush1.bf16.msra.mxu1 %v10510_v60  ;;  %v10549_v60 = vpack.c.bf16 %v10547_v9, %v10548_v20  ;;  %v1491_v9 = vadd.f32 %v1490_v36, %v10581_v5  ;;  %v10582_v20 = vld [vmem:[#allocation96_spill] sm:$0xff] }
 0x3f7   : > { %2316 = vmatprep.subr.bf16.mxu1 %v10511_v3  ;;  %v10550_v3 = vld [vmem:[#allocation74_spill] sm:$0xff] }
 0x3f8   : > { %v10552_v0 = vpack.c.bf16 %v10550_v3, %v10551_v30 }
 0x3fa   : > { %2317 = vmatpush1.bf16.msra.mxu1 %v10514_v10  ;;  %v10553_v10 = vld [vmem:[#allocation84_spill] sm:$0xff] }
 0x3fb   : > { %2318 = vmatprep.subr.bf16.mxu1 %v10515_v11  ;;  %v10554_v11 = vld [vmem:[#allocation79_spill] sm:$0xff] }
 0x3fc   : > { %v10555_v1 = vpack.c.bf16 %v10553_v10, %v10554_v11 }
 0x3fe   : > { %2319 = vmatpush1.bf16.msra.mxu1 %v10518_v41  ;;  %v10557_v41 = vld [vmem:[#allocation89_spill] sm:$0xff] }
 0x3ff   : > { %2320 = vmatprep.subr.bf16.mxu1 %v10519_v44  ;;  %v10558_v44 = vpack.c.bf16 %v10556_v39, %v10557_v41  ;;  %v10586_v39 = vld [vmem:[#allocation101_spill] sm:$0xff] }
 0x402   : > { %2321 = vmatpush1.bf16.msra.mxu1 %v10522_v37  ;;  %v10561_v37 = vpack.c.bf16 %v10559_v26, %v10560_v35 }
 0x403   : > { %2322 = vmatprep.subr.bf16.mxu1 %v10523_v16  ;;  %v10562_v16 = vld [vmem:[#allocation114_spill] sm:$0xff] }
 0x406   : > { %2323 = vmatpush1.bf16.msra.mxu1 %v10524_v27  ;;  %v10563_v27 = vld [vmem:[#allocation109_spill] sm:$0xff] }
 0x407   : > { %2491 = vmatprep.subr.bf16.mxu1 %v10527_v28  ;;  %v10564_v15 = vpack.c.bf16 %v10562_v16, %v10563_v27  ;;  %v10566_v28 = vld [vmem:[#allocation41_spill] sm:$0xff]  ;;  %v10588_v16 = vld [vmem:[#allocation116_spill] sm:$0xff]  ;;  %v10589_v27 = vld [vmem:[#allocation111_spill] sm:$0xff] }
 0x408   : > { %v10567_v50 = vpack.c.bf16 %v10565_v46, %v10566_v28 }
 0x409   : > { %2325 = vmatmul.mubr.bf16.vlgmr.msra.gmra.mrb[76].mxu1 %v10530_v55  ;;  %v10569_v55 = vld [vmem:[#allocation51_spill] sm:$0xff] }
 0x40a   : > { %2334 = vmatprep.mubr.bf16.mxu1 %v10533_v23  ;;  %2492 = vmatpush1.bf16.msra.mxu1 %v10536_v17  ;;  %v10570_v24 = vpack.c.bf16 %v10568_v49, %v10569_v55  ;;  %v10572_v23 = vld [vmem:[#allocation61_spill] sm:$0xff]  ;;  %v10575_v17 = vld [vmem:[#allocation71_spill] sm:$0xff] }
 0x40b   : > { %v10573_v18 = vpack.c.bf16 %v10571_v33, %v10572_v23  ;;  %v10576_v45 = vpack.c.bf16 %v10574_v34, %v10575_v17 }
 0x411   : > { %2335 = vmatmul.mubr.bf16.gmra.mrb[80].mxu1 %v10539_v38  ;;  %v10578_v38 = vld [vmem:[#allocation81_spill] sm:$0xff] }
 0x412   : > { %2523 = vmatprep.mubr.bf16.mxu1 %v10540_v31  ;;  %v10579_v21 = vpack.c.bf16 %v10577_v8, %v10578_v38 }
 0x419   : > { %4163 = vmatmul.mubr.msk.bf16.vlgmr.msra.gmra.mrb[84].mxu1 %vm914_vm1, %v10543_v32  ;;  %v1453_v32 = vrot.slane %v10580_v48, 4 }
 0x41a   : > { %2533 = vmatprep.mubr.bf16.mxu1 %v10540_v31 }
 0x421   : > { %4164 = vmatmul.mubr.msk.bf16.gmra.mrb[88].mxu1 %vm914_vm1, %v10546_v19  ;;  %v1454_v19 = vadd.f32 %v1453_v32, %v10580_v48 }
 0x422   : > { %2543 = vmatprep.mubr.bf16.mxu1 %v10540_v31 }
 0x423   : > { %v1455_v30 = vrot.slane %v1454_v19, 2 }
 0x425   : > { %v1456_v10 = vadd.f32 %v1455_v30, %v1454_v19 }
 0x429   : > { %4165 = vmatmul.mubr.msk.bf16.gmra.mrb[92].mxu1 %vm914_vm1, %v10549_v60  ;;  %v10583_v60 = vld [vmem:[#allocation91_spill] sm:$0xff] }
 0x42a   : > { %2553 = vmatprep.mubr.bf16.mxu1 %v10540_v31  ;;  %v10584_v3 = vpack.c.bf16 %v10582_v20, %v10583_v60 }
 0x431   : > { %4166 = vmatmul.mubr.msk.bf16.gmra.mrb[96].mxu1 %vm914_vm1, %v10552_v0  ;;  %v1492_v0 = vrot.slane %v1491_v9, 2 }
 0x432   : > { %2563 = vmatprep.mubr.bf16.mxu1 %v10540_v31 }
 0x433   : > { %v1493_v11 = vadd.f32 %v1492_v0, %v1491_v9 }
 0x435   : > { %v1494_v26 = vrot.slane %v1493_v11, 1 }
 0x439   : > { %4167 = vmatmul.mubr.msk.bf16.gmra.mrb[100].mxu1 %vm914_vm1, %v10555_v1  ;;  %v10585_v1 = vld [vmem:[#allocation106_spill] sm:$0xff] }
 0x43a   : > { %2573 = vmatprep.mubr.bf16.mxu1 %v10540_v31  ;;  %v10587_v41 = vpack.c.bf16 %v10585_v1, %v10586_v39  ;;  %v2254_v1 = vrot.slane %v7595_v22, 4 }
 0x441   : > { %4168 = vmatmul.mubr.msk.bf16.gmra.mrb[104].mxu1 %vm914_vm1, %v10558_v44  ;;  %v1457_v44 = vrot.slane %v1456_v10, 1 }
 0x442   : > { %2583 = vmatprep.mubr.bf16.mxu1 %v10540_v31 }
 0x443   : > { %v1458_v35 = vadd.f32 %v1457_v44, %v1456_v10 }
 0x445   : > { %4631 = vrcp.f32 %v1458_v35 }
 0x449   : > { %4169 = vmatmul.mubr.msk.bf16.gmra.mrb[108].mxu1 %vm914_vm1, %v10561_v37  ;;  %v1495_v37 = vadd.f32 %v1494_v26, %v1493_v11  ;;  %v2217_v11 = vrot.slane %v7478_v57, 4 }
 0x44a   : > { %2593 = vmatprep.mubr.bf16.mxu1 %v10540_v31 }
 0x44b   : > { %4633 = vrcp.f32 %v1495_v37  ;;  %v2218_v39 = vadd.f32 %v2217_v11, %v7478_v57 }
 0x44d   : > { %v2219_v44 = vrot.slane %v2218_v39, 2 }
 0x44f   : > { %v4632_v46 = vpop.eup %4631  ;;  %v2220_v35 = vadd.f32 %v2219_v44, %v2218_v39 }
 0x451   : > { %4170 = vmatmul.mubr.msk.bf16.gmra.mrb[112].mxu1 %vm914_vm1, %v10564_v15  ;;  %v10590_v15 = vpack.c.bf16 %v10588_v16, %v10589_v27  ;;  %v2221_v16 = vrot.slane %v2220_v35, 1 }
 0x452   : > { %2603 = vmatprep.mubr.bf16.mxu1 %v10540_v31 }
 0x459   : > { %4171 = vmatmul.mubr.msk.bf16.gmra.mrb[116].mxu1 %vm914_vm1, %v10567_v50  ;;  %v4634_v50 = vpop.eup %4633 }
 0x45a   : > { %2613 = vmatprep.mubr.bf16.mxu1 %v10540_v31 }
 0x461   : > { %4172 = vmatmul.mubr.msk.bf16.gmra.mrb[120].mxu1 %vm914_vm1, %v10570_v24 }
 0x462   : > { %2623 = vmatprep.mubr.bf16.mxu1 %v10540_v31 }
 0x469   : > { %4173 = vmatmul.mubr.msk.bf16.gmra.mrb[124].mxu1 %vm914_vm1, %v10573_v18 }
 0x46a   : > { %2633 = vmatprep.mubr.bf16.mxu1 %v10540_v31 }
 0x471   : > { %4174 = vmatmul.mubr.msk.bf16.gmra.mrb[128].mxu1 %vm914_vm1, %v10576_v45 }
 0x472   : > { %2643 = vmatprep.mubr.bf16.mxu1 %v10540_v31 }
 0x479   : > { %4175 = vmatmul.mubr.msk.bf16.gmra.mrb[132].mxu1 %vm914_vm1, %v10579_v21 }
 0x47a   : > { %2653 = vmatprep.mubr.bf16.mxu1 %v10540_v31 }
 0x481   : > { %4176 = vmatmul.mubr.msk.bf16.gmra.mrb[136].mxu1 %vm914_vm1, %v10584_v3 }
 0x482   : > { %2663 = vmatprep.mubr.bf16.mxu1 %v10540_v31 }
 0x489   : > { %4177 = vmatmul.mubr.msk.bf16.gmra.mrb[140].mxu1 %vm914_vm1, %v10587_v41  ;;  %v2255_v41 = vadd.f32 %v2254_v1, %v7595_v22 }
 0x48a   : > { %2673 = vmatprep.mubr.bf16.mxu1 %v10540_v31 }
 0x48b   : > { %v2256_v26 = vrot.slane %v2255_v41, 2 }
 0x48d   : > { %v2257_v37 = vadd.f32 %v2256_v26, %v2255_v41 }
 0x48f   : > { %v2258_v27 = vrot.slane %v2257_v37, 1 }
 0x491   : > { %4178 = vmatmul.mubr.msk.bf16.gmra.mrb[144].mxu1 %vm914_vm1, %v10590_v15  ;;  %v2222_v15 = vadd.f32 %v2221_v16, %v2220_v35 }
 0x492   : > { %3852 = vmatprep.mubr.bf16.mxu1 %v831_v47 }
 0x493   : > { %4635 = vrcp.f32 %v2222_v15 }
 0x49c   : > { %v1562_v28 = vpop.f32.mrb[68].mxu1 }
 0x49d   : > { %v1583_v49 = vmul.f32 %v4632_v46, %v1562_v28  ;;  %v1564_v55 = vpop.f32.mrb[69].mxu1  ;;  %v4636_v28 = vpop.eup %4635 }
 0x49e   : > { %v1584_v24 = vmul.f32 %v4634_v50, %v1564_v55  ;;  %v1566_v33 = vpop.f32.mrb[70].mxu1 }
 0x49f   : > { %v1585_v23 = vmul.f32 %v4632_v46, %v1566_v33  ;;  %v1568_v18 = vpop.f32.mrb[71].mxu1  ;;  %v1591_v17 = vmax.f32 %v1583_v49, 0.0 }
 0x4a0   : > { %v1586_v34 = vmul.f32 %v4634_v50, %v1568_v18  ;;  %v1592_v8 = vmax.f32 %v1584_v24, 0.0 }
 0x4a1   : > { %v1593_v45 = vmax.f32 %v1585_v23, 0.0 }
 0x4a2   : > { %v1594_v38 = vmax.f32 %v1586_v34, 0.0 }
 0x4a3   : > { %v7839_v21 = vpack.c.bf16 %v1593_v45, %v1591_v17 }
 0x4a4   : > { %v7841_v48 = vpack.c.bf16 %v1594_v38, %v1592_v8  ;;  %v1572_v13 = vpop.f32.mrb[72].mxu1 }
 0x4a5   : > { %10591 = vst [vmem:[#allocation130_spill] sm:$0xff] %v7839_v21  ;;  %v1587_v14 = vmul.f32 %v4632_v46, %v1572_v13  ;;  %v1574_v47 = vpop.f32.mrb[73].mxu1 }
 0x4a6   : > { %10592 = vst [vmem:[#allocation134_spill] sm:$0xff] %v7841_v48  ;;  %v1588_v32 = vmul.f32 %v4634_v50, %v1574_v47  ;;  %v1576_v5 = vpop.f32.mrb[74].mxu1 }
 0x4a7   : > { %v1589_v36 = vmul.f32 %v4632_v46, %v1576_v5  ;;  %v1578_v19 = vpop.f32.mrb[75].mxu1  ;;  %v1595_v20 = vmax.f32 %v1587_v14, 0.0  ;;  %v2259_v46 = vadd.f32 %v2258_v27, %v2257_v37 }
 0x4a8   : > { %v1590_v9 = vmul.f32 %v4634_v50, %v1578_v19  ;;  %v1596_v3 = vmax.f32 %v1588_v32, 0.0 }
 0x4a9   : > { %v1597_v60 = vmax.f32 %v1589_v36, 0.0  ;;  %4637 = vrcp.f32 %v2259_v46 }
 0x4aa   : > { %v1598_v30 = vmax.f32 %v1590_v9, 0.0 }
 0x4ab   : > { %v7843_v0 = vpack.c.bf16 %v1597_v60, %v1595_v20 }
 0x4ac   : > { %v7845_v10 = vpack.c.bf16 %v1598_v30, %v1596_v3 }
 0x4ad   : > { %10593 = vst [vmem:[#allocation80_spill] sm:$0xff] %v7843_v0 }
 0x4ae   : > { %10594 = vst [vmem:[#allocation72_spill] sm:$0xff] %v7845_v10 }
 0x4b3   : > { %v4638_v49 = vpop.eup %4637 }
 0x4dc   : > { %v2326_v50 = vpop.f32.mrb[76].mxu1 }
 0x4dd   : > { %v2347_v55 = vmul.f32 %v4636_v28, %v2326_v50  ;;  %v2328_v24 = vpop.f32.mrb[77].mxu1 }
 0x4de   : > { %v2348_v33 = vmul.f32 %v4638_v49, %v2328_v24  ;;  %v2330_v23 = vpop.f32.mrb[78].mxu1 }
 0x4df   : > { %v2349_v57 = vmul.f32 %v4636_v28, %v2330_v23  ;;  %v2332_v18 = vpop.f32.mrb[79].mxu1  ;;  %v2355_v34 = vmax.f32 %v2347_v55, 0.0 }
 0x4e0   : > { %v2350_v22 = vmul.f32 %v4638_v49, %v2332_v18  ;;  %v2356_v45 = vmax.f32 %v2348_v33, 0.0 }
 0x4e1   : > { %v2357_v17 = vmax.f32 %v2349_v57, 0.0 }
 0x4e2   : > { %v2358_v8 = vmax.f32 %v2350_v22, 0.0 }
 0x4e3   : > { %v7851_v38 = vpack.c.bf16 %v2357_v17, %v2355_v34 }
 0x4e4   : > { %v7853_v13 = vpack.c.bf16 %v2358_v8, %v2356_v45  ;;  %v2336_v14 = vpop.f32.mrb[80].mxu1 }
 0x4e5   : > { %10595 = vst [vmem:[#allocation83_spill] sm:$0xff] %v7851_v38  ;;  %v2351_v47 = vmul.f32 %v4636_v28, %v2336_v14  ;;  %v2338_v32 = vpop.f32.mrb[81].mxu1 }
 0x4e6   : > { %10596 = vst [vmem:[#allocation77_spill] sm:$0xff] %v7853_v13  ;;  %v2352_v5 = vmul.f32 %v4638_v49, %v2338_v32  ;;  %v2340_v36 = vpop.f32.mrb[82].mxu1 }
 0x4e7   : > { %v2353_v19 = vmul.f32 %v4636_v28, %v2340_v36  ;;  %v2342_v9 = vpop.f32.mrb[83].mxu1  ;;  %v2359_v60 = vmax.f32 %v2351_v47, 0.0 }
 0x4e8   : > { %v2354_v20 = vmul.f32 %v4638_v49, %v2342_v9  ;;  %v2360_v30 = vmax.f32 %v2352_v5, 0.0 }
 0x4e9   : > { %v2361_v3 = vmax.f32 %v2353_v19, 0.0 }
 0x4ea   : > { %v2362_v11 = vmax.f32 %v2354_v20, 0.0 }
 0x4eb   : > { %v7855_v1 = vpack.c.bf16 %v2361_v3, %v2359_v60 }
 0x4ec   : > { %v7857_v39 = vpack.c.bf16 %v2362_v11, %v2360_v30  ;;  %v7859_v41 = vpop.f32.mrb[84].mxu1 }
 0x4ed   : > { %10597 = vst [vmem:[#allocation90_spill] sm:$0xff] %v7855_v1  ;;  %v7861_v44 = vpop.f32.mrb[85].mxu1 }
 0x4ee   : > { %10598 = vst [vmem:[#allocation82_spill] sm:$0xff] %v7857_v39  ;;  %v7863_v26 = vpop.f32.mrb[86].mxu1 }
 0x4ef   : > { %v7865_v35 = vpop.f32.mrb[87].mxu1 }
 0x4f4   : > { %v7867_v37 = vpop.f32.mrb[88].mxu1 }
 0x4f5   : > { %v2684_v16 = vmax.f32 %v7859_v41, %v7867_v37  ;;  %v7871_v27 = vpop.f32.mrb[89].mxu1 }
 0x4f6   : > { %v2721_v15 = vmax.f32 %v7861_v44, %v7871_v27  ;;  %v7875_v46 = vpop.f32.mrb[90].mxu1 }
 0x4f7   : > { %v2685_v28 = vmax.f32 %v7863_v26, %v7875_v46  ;;  %v7879_v50 = vpop.f32.mrb[91].mxu1 }
 0x4f8   : > { %v2722_v49 = vmax.f32 %v7865_v35, %v7879_v50 }
 0x4fc   : > { %v7883_v55 = vpop.f32.mrb[92].mxu1 }
 0x4fd   : > { %v2686_v24 = vmax.f32 %v2684_v16, %v7883_v55  ;;  %v7886_v33 = vpop.f32.mrb[93].mxu1 }
 0x4fe   : > { %v2723_v23 = vmax.f32 %v2721_v15, %v7886_v33  ;;  %v7889_v57 = vpop.f32.mrb[94].mxu1 }
 0x4ff   : > { %v2687_v18 = vmax.f32 %v2685_v28, %v7889_v57  ;;  %v7892_v22 = vpop.f32.mrb[95].mxu1 }
 0x500   : > { %v2724_v34 = vmax.f32 %v2722_v49, %v7892_v22 }
 0x504   : > { %v7895_v17 = vpop.f32.mrb[96].mxu1 }
 0x505   : > { %v2688_v45 = vmax.f32 %v2686_v24, %v7895_v17  ;;  %v7898_v8 = vpop.f32.mrb[97].mxu1 }
 0x506   : > { %v2725_v14 = vmax.f32 %v2723_v23, %v7898_v8  ;;  %v7901_v47 = vpop.f32.mrb[98].mxu1 }
 0x507   : > { %v2689_v32 = vmax.f32 %v2687_v18, %v7901_v47  ;;  %v7904_v5 = vpop.f32.mrb[99].mxu1 }
 0x508   : > { %v2726_v36 = vmax.f32 %v2724_v34, %v7904_v5 }
 0x50c   : > { %v7907_v19 = vpop.f32.mrb[100].mxu1 }
 0x50d   : > { %v2690_v9 = vmax.f32 %v2688_v45, %v7907_v19  ;;  %v7910_v20 = vpop.f32.mrb[101].mxu1 }
 0x50e   : > { %v2727_v60 = vmax.f32 %v2725_v14, %v7910_v20  ;;  %v7913_v3 = vpop.f32.mrb[102].mxu1 }
 0x50f   : > { %v2691_v30 = vmax.f32 %v2689_v32, %v7913_v3  ;;  %v7916_v11 = vpop.f32.mrb[103].mxu1 }
 0x510   : > { %v2728_v16 = vmax.f32 %v2726_v36, %v7916_v11 }
 0x514   : > { %v7919_v15 = vpop.f32.mrb[104].mxu1 }
 0x515   : > { %v2692_v28 = vmax.f32 %v2690_v9, %v7919_v15  ;;  %v7922_v49 = vpop.f32.mrb[105].mxu1 }
 0x516   : > { %v2729_v24 = vmax.f32 %v2727_v60, %v7922_v49  ;;  %v7925_v23 = vpop.f32.mrb[106].mxu1 }
 0x517   : > { %v2693_v18 = vmax.f32 %v2691_v30, %v7925_v23  ;;  %v7928_v34 = vpop.f32.mrb[107].mxu1 }
 0x518   : > { %10599 = vst [vmem:[#allocation93_spill] sm:$0xff] %v7928_v34  ;;  %v2730_v45 = vmax.f32 %v2728_v16, %v7928_v34 }
 0x51c   : > { %v7931_v14 = vpop.f32.mrb[108].mxu1 }
 0x51d   : > { %v2694_v32 = vmax.f32 %v2692_v28, %v7931_v14  ;;  %v7934_v36 = vpop.f32.mrb[109].mxu1 }
 0x51e   : > { %10600 = vst [vmem:[#allocation87_spill] sm:$0xff] %v7934_v36  ;;  %v2731_v9 = vmax.f32 %v2729_v24, %v7934_v36  ;;  %v7937_v25 = vpop.f32.mrb[110].mxu1 }
 0x51f   : > { %v2695_v60 = vmax.f32 %v2693_v18, %v7937_v25  ;;  %v7940_v40 = vpop.f32.mrb[111].mxu1 }
 0x520   : > { %10601 = vst [vmem:[#allocation100_spill] sm:$0xff] %v7940_v40  ;;  %v2732_v30 = vmax.f32 %v2730_v45, %v7940_v40 }
 0x524   : > { %v7943_v43 = vpop.f32.mrb[112].mxu1 }
 0x525   : > { %v2696_v16 = vmax.f32 %v2694_v32, %v7943_v43  ;;  %v7946_v1 = vpop.f32.mrb[113].mxu1 }
 0x526   : > { %10602 = vst [vmem:[#allocation92_spill] sm:$0xff] %v7946_v1  ;;  %v2733_v28 = vmax.f32 %v2731_v9, %v7946_v1  ;;  %v7949_v39 = vpop.f32.mrb[114].mxu1 }
 0x527   : > { %v2697_v24 = vmax.f32 %v2695_v60, %v7949_v39  ;;  %v7952_v38 = vpop.f32.mrb[115].mxu1 }
 0x528   : > { %10603 = vst [vmem:[#allocation103_spill] sm:$0xff] %v7952_v38  ;;  %v2734_v18 = vmax.f32 %v2732_v30, %v7952_v38 }
 0x52c   : > { %v7955_v54 = vpop.f32.mrb[116].mxu1 }
 0x52d   : > { %v2698_v45 = vmax.f32 %v2696_v16, %v7955_v54  ;;  %v7958_v12 = vpop.f32.mrb[117].mxu1 }
 0x52e   : > { %10604 = vst [vmem:[#allocation97_spill] sm:$0xff] %v7958_v12  ;;  %v2735_v32 = vmax.f32 %v2733_v28, %v7958_v12  ;;  %v7961_v13 = vpop.f32.mrb[118].mxu1 }
 0x52f   : > { %v2699_v9 = vmax.f32 %v2697_v24, %v7961_v13  ;;  %v7964_v0 = vpop.f32.mrb[119].mxu1 }
 0x530   : > { %10605 = vst [vmem:[#allocation110_spill] sm:$0xff] %v7964_v0  ;;  %v2736_v60 = vmax.f32 %v2734_v18, %v7964_v0 }
 0x534   : > { %v7967_v10 = vpop.f32.mrb[120].mxu1 }
 0x535   : > { %v2700_v30 = vmax.f32 %v2698_v45, %v7967_v10  ;;  %v7970_v21 = vpop.f32.mrb[121].mxu1 }
 0x536   : > { %10606 = vst [vmem:[#allocation102_spill] sm:$0xff] %v7970_v21  ;;  %v2737_v16 = vmax.f32 %v2735_v32, %v7970_v21  ;;  %v7973_v51 = vpop.f32.mrb[122].mxu1 }
 0x537   : > { %v2701_v28 = vmax.f32 %v2699_v9, %v7973_v51  ;;  %v7976_v63 = vpop.f32.mrb[123].mxu1 }
 0x538   : > { %10607 = vst [vmem:[#allocation113_spill] sm:$0xff] %v7976_v63  ;;  %v2738_v24 = vmax.f32 %v2736_v60, %v7976_v63 }
 0x53c   : > { %v7979_v52 = vpop.f32.mrb[124].mxu1 }
 0x53d   : > { %v2702_v18 = vmax.f32 %v2700_v30, %v7979_v52  ;;  %v7982_v59 = vpop.f32.mrb[125].mxu1 }
 0x53e   : > { %10608 = vst [vmem:[#allocation107_spill] sm:$0xff] %v7982_v59  ;;  %v2739_v45 = vmax.f32 %v2737_v16, %v7982_v59  ;;  %v7985_v48 = vpop.f32.mrb[126].mxu1 }
 0x53f   : > { %v2703_v32 = vmax.f32 %v2701_v28, %v7985_v48  ;;  %v7988_v29 = vpop.f32.mrb[127].mxu1 }
 0x540   : > { %10609 = vst [vmem:[#allocation119_spill] sm:$0xff] %v7988_v29  ;;  %v2740_v9 = vmax.f32 %v2738_v24, %v7988_v29 }
 0x544   : > { %v7991_v42 = vpop.f32.mrb[128].mxu1 }
 0x545   : > { %v2704_v60 = vmax.f32 %v2702_v18, %v7991_v42  ;;  %v7994_v56 = vpop.f32.mrb[129].mxu1 }
 0x546   : > { %10610 = vst [vmem:[#allocation112_spill] sm:$0xff] %v7994_v56  ;;  %v2741_v30 = vmax.f32 %v2739_v45, %v7994_v56  ;;  %v7997_v53 = vpop.f32.mrb[130].mxu1 }
 0x547   : > { %v2705_v16 = vmax.f32 %v2703_v32, %v7997_v53  ;;  %v8000_v7 = vpop.f32.mrb[131].mxu1 }
 0x548   : > { %10611 = vst [vmem:[#allocation137_spill] sm:$0xff] %v8000_v7  ;;  %v2742_v28 = vmax.f32 %v2740_v9, %v8000_v7 }
 0x54c   : > { %v8003_v6 = vpop.f32.mrb[132].mxu1 }
 0x54d   : > { %v2706_v24 = vmax.f32 %v2704_v60, %v8003_v6  ;;  %v8006_v4 = vpop.f32.mrb[133].mxu1 }
 0x54e   : > { %10612 = vst [vmem:[#allocation126_spill] sm:$0xff] %v8006_v4  ;;  %v2743_v18 = vmax.f32 %v2741_v30, %v8006_v4  ;;  %v8009_v61 = vpop.f32.mrb[134].mxu1 }
 0x54f   : > { %v2707_v45 = vmax.f32 %v2705_v16, %v8009_v61  ;;  %v8012_v2 = vpop.f32.mrb[135].mxu1 }
 0x550   : > { %10613 = vst [vmem:[#allocation144_spill] sm:$0xff] %v8012_v2  ;;  %v2744_v32 = vmax.f32 %v2742_v28, %v8012_v2 }
 0x554   : > { %v8015_v58 = vpop.f32.mrb[136].mxu1 }
 0x555   : > { %v2708_v9 = vmax.f32 %v2706_v24, %v8015_v58  ;;  %v8018_v62 = vpop.f32.mrb[137].mxu1 }
 0x556   : > { %10614 = vst [vmem:[#allocation138_spill] sm:$0xff] %v8018_v62  ;;  %v2745_v60 = vmax.f32 %v2743_v18, %v8018_v62  ;;  %v8021_v31 = vpop.f32.mrb[138].mxu1 }
 0x557   : > { %v2709_v30 = vmax.f32 %v2707_v45, %v8021_v31  ;;  %v8024_v4 = vpop.f32.mrb[139].mxu1 }
 0x558   : > { %10615 = vst [vmem:[#allocation168_spill] sm:$0xff] %v8024_v4  ;;  %v2746_v16 = vmax.f32 %v2744_v32, %v8024_v4 }
 0x55c   : > { %v8027_v7 = vpop.f32.mrb[140].mxu1 }
 0x55d   : > { %v2710_v28 = vmax.f32 %v2708_v9, %v8027_v7  ;;  %v8030_v2 = vpop.f32.mrb[141].mxu1 }
 0x55e   : > { %10616 = vst [vmem:[#allocation31_spill] sm:$0xff] %v8030_v2  ;;  %v2747_v24 = vmax.f32 %v2745_v60, %v8030_v2  ;;  %v8033_v56 = vpop.f32.mrb[142].mxu1 }
 0x55f   : > { %v2711_v18 = vmax.f32 %v2709_v30, %v8033_v56  ;;  %v8036_v62 = vpop.f32.mrb[143].mxu1 }
 0x560   : > { %10617 = vst [vmem:[#allocation169_spill] sm:$0xff] %v8036_v62  ;;  %v2748_v45 = vmax.f32 %v2746_v16, %v8036_v62 }
 0x564   : > { %v8039_v29 = vpop.f32.mrb[144].mxu1 }
 0x565   : > { %v2712_v32 = vmax.f32 %v2710_v28, %v8039_v29  ;;  %v8042_v4 = vpop.f32.mrb[145].mxu1 }
 0x566   : > { %10618 = vst [vmem:[#allocation146_spill] sm:$0xff] %v8042_v4  ;;  %v2749_v9 = vmax.f32 %v2747_v24, %v8042_v4  ;;  %v8045_v59 = vpop.f32.mrb[146].mxu1 }
 0x567   : > { %v2713_v60 = vmax.f32 %v2711_v18, %v8045_v59  ;;  %v8048_v2 = vpop.f32.mrb[147].mxu1 }
 0x568   : > { %10619 = vst [vmem:[#allocation135_spill] sm:$0xff] %v8048_v2  ;;  %v2750_v30 = vmax.f32 %v2748_v45, %v8048_v2 }
 0x569   : > { %v2714_v63 = vmax.f32 %v2712_v32, %v2713_v60 }
 0x56a   : > { %v2751_v21 = vmax.f32 %v2749_v9, %v2750_v30 }
 0x56b   : > { %v2715_v0 = vrot.slane %v2714_v63, 4 }
 0x56c   : > { %v2752_v16 = vrot.slane %v2751_v21, 4 }
 0x56d   : > { %v2716_v62 = vmax.f32 %v2714_v63, %v2715_v0 }
 0x56e   : > { %v2753_v12 = vmax.f32 %v2751_v21, %v2752_v16 }
 0x56f   : > { %v2717_v38 = vrot.slane %v2716_v62, 2 }
 0x570   : > { %v2754_v28 = vrot.slane %v2753_v12, 2 }
 0x571   : > { %v2718_v1 = vmax.f32 %v2716_v62, %v2717_v38 }
 0x572   : > { %v2755_v40 = vmax.f32 %v2753_v12, %v2754_v28 }
 0x573   : > { %v2719_v36 = vrot.slane %v2718_v1, 1 }
 0x574   : > { %v2756_v24 = vrot.slane %v2755_v40, 1 }
 0x575   : > { %v8051_v4 = vmax.f32 %v2718_v1, %v2719_v36 }
 0x576   : > { %v8053_v34 = vmax.f32 %v2755_v40, %v2756_v24 }
 0x577   : > { %v2758_v18 = vsub.f32 %v7859_v41, %v8051_v4  ;;  %v2760_v45 = vsub.f32 %v7863_v26, %v8051_v4  ;;  %v2762_v63 = vsub.f32 %v7867_v37, %v8051_v4  ;;  %v2764_v21 = vsub.f32 %v7875_v46, %v8051_v4 }
 0x578   : > { %v2766_v62 = vsub.f32 %v7883_v55, %v8051_v4  ;;  %v2768_v12 = vsub.f32 %v7889_v57, %v8051_v4  ;;  %v2770_v40 = vsub.f32 %v7895_v17, %v8051_v4  ;;  %v2772_v0 = vsub.f32 %v7901_v47, %v8051_v4 }
 0x579   : > { %v2774_v38 = vsub.f32 %v7907_v19, %v8051_v4  ;;  %v2776_v1 = vsub.f32 %v7913_v3, %v8051_v4  ;;  %v2778_v41 = vsub.f32 %v7919_v15, %v8051_v4  ;;  %v2780_v26 = vsub.f32 %v7925_v23, %v8051_v4 }
 0x57a   : > { %v2782_v37 = vsub.f32 %v7931_v14, %v8051_v4  ;;  %v2784_v46 = vsub.f32 %v7937_v25, %v8051_v4  ;;  %v2786_v55 = vsub.f32 %v7943_v43, %v8051_v4  ;;  %v2788_v57 = vsub.f32 %v7949_v39, %v8051_v4 }
 0x57b   : > { %v2790_v17 = vsub.f32 %v7955_v54, %v8051_v4  ;;  %v2792_v47 = vsub.f32 %v7961_v13, %v8051_v4  ;;  %v2794_v19 = vsub.f32 %v7967_v10, %v8051_v4  ;;  %v2796_v3 = vsub.f32 %v7973_v51, %v8051_v4  ;;  %v10639_v13 = vld [vmem:[#allocation146_spill] sm:$0xff] }
 0x57c   : > { %v2798_v25 = vsub.f32 %v7979_v52, %v8051_v4  ;;  %v2800_v43 = vsub.f32 %v7985_v48, %v8051_v4  ;;  %v2802_v39 = vsub.f32 %v7991_v42, %v8051_v4  ;;  %v2804_v54 = vsub.f32 %v7997_v53, %v8051_v4 }
 0x57d   : > { %v2822_v23 = vmul.f32 1.442695, %v2758_v18  ;;  %v2826_v14 = vmul.f32 1.442695, %v2760_v45  ;;  %v2830_v36 = vmul.f32 1.442695, %v2762_v63 }
 0x57e   : > { %v2834_v9 = vmul.f32 1.442695, %v2764_v21  ;;  %v2838_v30 = vmul.f32 1.442695, %v2766_v62  ;;  %v2842_v16 = vmul.f32 1.442695, %v2768_v12 }
 0x57f   : > { %4639 = vpow2.f32 %v2822_v23  ;;  %v2846_v28 = vmul.f32 1.442695, %v2770_v40  ;;  %v2850_v24 = vmul.f32 1.442695, %v2772_v0  ;;  %v2854_v53 = vmul.f32 1.442695, %v2774_v38 }
 0x580   : > { %4641 = vpow2.f32 %v2826_v14  ;;  %v2858_v15 = vmul.f32 1.442695, %v2776_v1  ;;  %v2862_v18 = vmul.f32 1.442695, %v2778_v41  ;;  %v2866_v45 = vmul.f32 1.442695, %v2780_v26 }
 0x581   : > { %4643 = vpow2.f32 %v2830_v36  ;;  %v2870_v63 = vmul.f32 1.442695, %v2782_v37  ;;  %v2874_v32 = vmul.f32 1.442695, %v2784_v46  ;;  %v2878_v21 = vmul.f32 1.442695, %v2786_v55 }
 0x582   : > { %4645 = vpow2.f32 %v2834_v9  ;;  %v2882_v42 = vmul.f32 1.442695, %v2788_v57  ;;  %v2886_v60 = vmul.f32 1.442695, %v2790_v17  ;;  %v2890_v23 = vmul.f32 1.442695, %v2792_v47 }
 0x583   : > { %4647 = vpow2.f32 %v2838_v30  ;;  %v2894_v62 = vmul.f32 1.442695, %v2794_v19  ;;  %v2898_v12 = vmul.f32 1.442695, %v2796_v3  ;;  %v2902_v14 = vmul.f32 1.442695, %v2798_v25 }
 0x584   : > { %4649 = vpow2.f32 %v2842_v16  ;;  %v8123_v40 = vmul.f32 1.442695, %v2800_v43  ;;  %v8125_v0 = vmul.f32 1.442695, %v2802_v39  ;;  %v8127_v38 = vmul.f32 1.442695, %v2804_v54 }
 0x585   : > { %4651 = vpow2.f32 %v2846_v28  ;;  %v10620_v25 = vld [vmem:[#allocation93_spill] sm:$0xff]  ;;  %v10622_v36 = vld [vmem:[#allocation100_spill] sm:$0xff]  ;;  %v10626_v3 = vld [vmem:[#allocation110_spill] sm:$0xff] }
 0x586   : > { %4653 = vpow2.f32 %v2850_v24  ;;  %v10623_v16 = vld [vmem:[#allocation92_spill] sm:$0xff]  ;;  %v10624_v24 = vld [vmem:[#allocation103_spill] sm:$0xff]  ;;  %v10627_v19 = vld [vmem:[#allocation102_spill] sm:$0xff] }
 0x587   : > { %4655 = vpow2.f32 %v2854_v53  ;;  %v10621_v53 = vld [vmem:[#allocation87_spill] sm:$0xff]  ;;  %v10628_v28 = vld [vmem:[#allocation113_spill] sm:$0xff]  ;;  %v10631_v9 = vld [vmem:[#allocation112_spill] sm:$0xff] }
 0x588   : > { %4657 = vpow2.f32 %v2858_v15  ;;  %v10629_v57 = vld [vmem:[#allocation107_spill] sm:$0xff]  ;;  %v10632_v26 = vld [vmem:[#allocation137_spill] sm:$0xff]  ;;  %v10634_v1 = vld [vmem:[#allocation144_spill] sm:$0xff] }
 0x589   : > { %v8137_v46 = vpop.eup %4639  ;;  %4659 = vpow2.f32 %v2862_v18  ;;  %v10630_v55 = vld [vmem:[#allocation119_spill] sm:$0xff]  ;;  %v10633_v18 = vld [vmem:[#allocation126_spill] sm:$0xff] }
 0x58a   : > { %v8145_v47 = vpop.eup %4641  ;;  %4661 = vpow2.f32 %v2866_v45  ;;  %v10625_v45 = vld [vmem:[#allocation97_spill] sm:$0xff] }
 0x58b   : > { %v8153_v39 = vpop.eup %4643  ;;  %4663 = vpow2.f32 %v2870_v63  ;;  %v2950_v54 = vadd.f32 %v8145_v47, %v8137_v46  ;;  %v10638_v63 = vld [vmem:[#allocation169_spill] sm:$0xff] }
 0x58c   : > { %v8161_v30 = vpop.eup %4645  ;;  %4665 = vpow2.f32 %v2874_v32  ;;  %v10636_v32 = vld [vmem:[#allocation168_spill] sm:$0xff] }
 0x58d   : > { %v8169_v43 = vpop.eup %4647  ;;  %4667 = vpow2.f32 %v2878_v21  ;;  %v2951_v15 = vadd.f32 %v8153_v39, %v2950_v54 }
 0x58e   : > { %v8176_v17 = vpop.eup %4649  ;;  %4669 = vpow2.f32 %v2882_v42 }
 0x58f   : > { %v8184_v37 = vpop.eup %4651  ;;  %4671 = vpow2.f32 %v2886_v60  ;;  %v2952_v54 = vadd.f32 %v8161_v30, %v2951_v15 }
 0x590   : > { %v8191_v41 = vpop.eup %4653  ;;  %4673 = vpow2.f32 %v2890_v23 }
 0x591   : > { %v8199_v52 = vpop.eup %4655  ;;  %4675 = vpow2.f32 %v2894_v62  ;;  %v2953_v15 = vadd.f32 %v8169_v43, %v2952_v54  ;;  %v10640_v54 = vsub.f32 %v8003_v6, %v8051_v4 }
 0x592   : > { %v8206_v10 = vpop.eup %4657  ;;  %4677 = vpow2.f32 %v2898_v12  ;;  %v10641_v12 = vsub.f32 %v8009_v61, %v8051_v4 }
 0x593   : > { %v8214_v48 = vpop.eup %4659  ;;  %4679 = vpow2.f32 %v2902_v14  ;;  %v2918_v42 = vmul.f32 1.442695, %v10640_v54  ;;  %v2954_v23 = vadd.f32 %v8176_v17, %v2953_v15  ;;  %v10642_v14 = vsub.f32 %v8015_v58, %v8051_v4 }
 0x594   : > { %v8220_v51 = vpop.eup %4661  ;;  %4681 = vpow2.f32 %v8123_v40  ;;  %v2922_v60 = vmul.f32 1.442695, %v10641_v12  ;;  %v10643_v40 = vsub.f32 %v8021_v31, %v8051_v4  ;;  %v10647_v31 = vsub.f32 %v8039_v29, %v8051_v4 }
 0x595   : > { %v8226_v21 = vpop.eup %4663  ;;  %4683 = vpow2.f32 %v8125_v0  ;;  %v2926_v62 = vmul.f32 1.442695, %v10642_v14  ;;  %v2955_v6 = vadd.f32 %v8184_v37, %v2954_v23  ;;  %v10644_v0 = vsub.f32 %v8027_v7, %v8051_v4 }
 0x596   : > { %v8233_v54 = vpop.eup %4665  ;;  %4685 = vpow2.f32 %v8127_v38  ;;  %v2930_v15 = vmul.f32 1.442695, %v10643_v40  ;;  %v10645_v23 = vsub.f32 %v8033_v56, %v8051_v4 }
 0x597   : > { %v8239_v61 = vpop.eup %4667  ;;  %4687 = vpow2.f32 %v2918_v42  ;;  %v2934_v12 = vmul.f32 1.442695, %v10644_v0  ;;  %v2956_v58 = vadd.f32 %v8191_v41, %v2955_v6  ;;  %v2942_v42 = vmul.f32 1.442695, %v10647_v31 }
 0x598   : > { %v8245_v14 = vpop.eup %4669  ;;  %4689 = vpow2.f32 %v2922_v60  ;;  %v2938_v38 = vmul.f32 1.442695, %v10645_v23  ;;  %v10648_v6 = vsub.f32 %v8045_v59, %v8051_v4  ;;  %v10651_v4 = vsub.f32 %v7871_v27, %v8053_v34 }
 0x599   : > { %v8250_v2 = vpop.eup %4671  ;;  %4691 = vpow2.f32 %v2926_v62  ;;  %v2957_v40 = vadd.f32 %v8199_v52, %v2956_v58  ;;  %v10649_v62 = vsub.f32 %v7861_v44, %v8053_v34  ;;  %v10650_v58 = vsub.f32 %v7865_v35, %v8053_v34 }
 0x59a   : > { %10646 = vst [vmem:[#allocation171_spill] sm:$0xff] %v8250_v2  ;;  %v8256_v7 = vpop.eup %4673  ;;  %4693 = vpow2.f32 %v2930_v15  ;;  %v2946_v60 = vmul.f32 1.442695, %v10648_v6  ;;  %v2832_v59 = vmul.f32 1.442695, %v10651_v4  ;;  %v10652_v44 = vsub.f32 %v7879_v50, %v8053_v34 }
 0x59b   : > { %v8261_v0 = vpop.eup %4675  ;;  %4695 = vpow2.f32 %v2934_v12  ;;  %v2958_v56 = vadd.f32 %v8206_v10, %v2957_v40  ;;  %v2824_v23 = vmul.f32 1.442695, %v10649_v62  ;;  %v2828_v15 = vmul.f32 1.442695, %v10650_v58 }
 0x59c   : > { %v8267_v29 = vpop.eup %4677  ;;  %4697 = vpow2.f32 %v2938_v38  ;;  %v2836_v40 = vmul.f32 1.442695, %v10652_v44  ;;  %v10653_v38 = vsub.f32 %v7886_v33, %v8053_v34  ;;  %v10654_v35 = vsub.f32 %v7892_v22, %v8053_v34 }
 0x59d   : > { %v8275_v31 = vpop.eup %4679  ;;  %4699 = vpow2.f32 %v2942_v42  ;;  %v2959_v12 = vadd.f32 %v8214_v48, %v2958_v56  ;;  %v10655_v42 = vsub.f32 %v7898_v8, %v8053_v34  ;;  %v10656_v56 = vsub.f32 %v7904_v5, %v8053_v34 }
 0x59e   : > { %v2840_v6 = vmul.f32 1.442695, %v10653_v38  ;;  %v8284_v62 = vpop.eup %4681  ;;  %4701 = vpow2.f32 %v2946_v60  ;;  %v2844_v27 = vmul.f32 1.442695, %v10654_v35  ;;  %v10657_v60 = vsub.f32 %v7910_v20, %v8053_v34 }
 0x59f   : > { %v2848_v58 = vmul.f32 1.442695, %v10655_v42  ;;  %v2852_v50 = vmul.f32 1.442695, %v10656_v56  ;;  %v8295_v4 = vpop.eup %4683  ;;  %v2960_v33 = vadd.f32 %v8220_v51, %v2959_v12  ;;  %4703 = vpow2.f32 %v2824_v23 }
 0x5a0   : > { %v2856_v44 = vmul.f32 1.442695, %v10657_v60  ;;  %v10658_v22 = vsub.f32 %v7916_v11, %v8053_v34  ;;  %v8304_v35 = vpop.eup %4685  ;;  %4705 = vpow2.f32 %v2828_v15 }
 0x5a1   : > { %v8312_v12 = vpop.eup %4687  ;;  %v2961_v20 = vadd.f32 %v8226_v21, %v2960_v33  ;;  %4707 = vpow2.f32 %v2832_v59 }
 0x5a2   : > { %v2860_v38 = vmul.f32 1.442695, %v10658_v22  ;;  %v8319_v42 = vpop.eup %4689  ;;  %4709 = vpow2.f32 %v2836_v40  ;;  %v10659_v40 = vsub.f32 %v7922_v49, %v8053_v34  ;;  %v10660_v22 = vsub.f32 %v10620_v25, %v8053_v34 }
 0x5a3   : > { %v8327_v33 = vpop.eup %4691  ;;  %v2962_v59 = vadd.f32 %v8233_v54, %v2961_v20  ;;  %4711 = vpow2.f32 %v2840_v6 }
 0x5a4   : > { %v8334_v11 = vpop.eup %4693  ;;  %4713 = vpow2.f32 %v2844_v27  ;;  %v2864_v15 = vmul.f32 1.442695, %v10659_v40  ;;  %v2868_v60 = vmul.f32 1.442695, %v10660_v22 }
 0x5a5   : > { %v8342_v20 = vpop.eup %4695  ;;  %v2963_v6 = vadd.f32 %v8239_v61, %v2962_v59  ;;  %4715 = vpow2.f32 %v2848_v58  ;;  %v10661_v58 = vsub.f32 %v10621_v53, %v8053_v34  ;;  %v10666_v53 = vsub.f32 %v10626_v3, %v8053_v34 }
 0x5a6   : > { %v8350_v23 = vpop.eup %4697  ;;  %4717 = vpow2.f32 %v2852_v50  ;;  %v10662_v50 = vsub.f32 %v10622_v36, %v8053_v34  ;;  %v10665_v36 = vsub.f32 %v10625_v45, %v8053_v34  ;;  %v10669_v3 = vsub.f32 %v10629_v57, %v8053_v34 }
 0x5a7   : > { %v8355_v56 = vpop.eup %4699  ;;  %v2964_v5 = vadd.f32 %v8245_v14, %v2963_v6  ;;  %4719 = vpow2.f32 %v2856_v44  ;;  %v2872_v49 = vmul.f32 1.442695, %v10661_v58  ;;  %v10663_v44 = vsub.f32 %v10623_v16, %v8053_v34 }
 0x5a8   : > { %v8363_v40 = vpop.eup %4701  ;;  %4721 = vpow2.f32 %v2860_v38  ;;  %v2876_v25 = vmul.f32 1.442695, %v10662_v50  ;;  %v10664_v38 = vsub.f32 %v10624_v24, %v8053_v34  ;;  %v2888_v50 = vmul.f32 1.442695, %v10665_v36 }
 0x5a9   : > { %v4704_v22 = vpop.eup %4703  ;;  %v2965_v27 = vadd.f32 %v8250_v2, %v2964_v5  ;;  %4723 = vpow2.f32 %v2864_v15  ;;  %v2880_v6 = vmul.f32 1.442695, %v10663_v44  ;;  %v10667_v24 = vsub.f32 %v10627_v19, %v8053_v34 }
 0x5aa   : > { %v4706_v58 = vpop.eup %4705  ;;  %4725 = vpow2.f32 %v2868_v60  ;;  %v2884_v59 = vmul.f32 1.442695, %v10664_v38  ;;  %v2892_v60 = vmul.f32 1.442695, %v10666_v53  ;;  %v2904_v53 = vmul.f32 1.442695, %v10669_v3 }
 0x5ab   : > { %v4708_v8 = vpop.eup %4707  ;;  %v2966_v5 = vadd.f32 %v8256_v7, %v2965_v27  ;;  %4727 = vpow2.f32 %v2872_v49  ;;  %v2987_v15 = vadd.f32 %v4706_v58, %v4704_v22  ;;  %v3025_v16 = vpack.c.bf16 %v4706_v58, %v4704_v22 }
 0x5ac   : > { %v4710_v44 = vpop.eup %4709  ;;  %4729 = vpow2.f32 %v2876_v25  ;;  %v2896_v38 = vmul.f32 1.442695, %v10667_v24  ;;  %v10668_v25 = vsub.f32 %v10628_v28, %v8053_v34  ;;  %v10670_v19 = vpack.c.bf16 %v8145_v47, %v8137_v46 }
 0x5ad   : > { %v4712_v2 = vpop.eup %4711  ;;  %v2967_v45 = vadd.f32 %v8261_v0, %v2966_v5  ;;  %4731 = vpow2.f32 %v2880_v6  ;;  %v2988_v36 = vadd.f32 %v4708_v8, %v2987_v15  ;;  %3056 = vmatprep.subr.bf16.mxu0 %v3025_v16  ;;  %v3027_v27 = vpack.c.bf16 %v4710_v44, %v4708_v8 }
 0x5ae   : > { %v4714_v49 = vpop.eup %4713  ;;  %4733 = vpow2.f32 %v2884_v59  ;;  %v2900_v22 = vmul.f32 1.442695, %v10668_v25  ;;  %3057 = vmatpush1.bf16.msra.mxu0 %v10670_v19  ;;  %v10671_v28 = vsub.f32 %v10630_v55, %v8053_v34  ;;  %v10672_v57 = vsub.f32 %v10631_v9, %v8053_v34  ;;  %v10677_v19 = vld [vmem:[#allocation138_spill] sm:$0xff] }
 0x5af   : > { %v4716_v58 = vpop.eup %4715  ;;  %v2968_v6 = vadd.f32 %v8267_v29, %v2967_v45  ;;  %4735 = vpow2.f32 %v2888_v50  ;;  %v2989_v5 = vadd.f32 %v4710_v44, %v2988_v36  ;;  %3058 = vmatprep.subr.bf16.mxu0 %v3027_v27  ;;  %v3029_v8 = vpack.c.bf16 %v4714_v49, %v4712_v2 }
 0x5b0   : > { %v4718_v59 = vpop.eup %4717  ;;  %4737 = vpow2.f32 %v2892_v60  ;;  %v2908_v15 = vmul.f32 1.442695, %v10671_v28  ;;  %v2912_v16 = vmul.f32 1.442695, %v10672_v57  ;;  %v10673_v44 = vsub.f32 %v10632_v26, %v8053_v34 }
 0x5b1   : > { %v4720_v24 = vpop.eup %4719  ;;  %v2969_v46 = vadd.f32 %v8275_v31, %v2968_v6  ;;  %4739 = vpow2.f32 %v2896_v38  ;;  %v2990_v47 = vadd.f32 %v4712_v2, %v2989_v5  ;;  %v3031_v45 = vpack.c.bf16 %v4718_v59, %v4716_v58 }
 0x5b2   : > { %v4722_v50 = vpop.eup %4721  ;;  %4741 = vpow2.f32 %v2900_v22  ;;  %v2916_v60 = vmul.f32 1.442695, %v10673_v44  ;;  %v10674_v55 = vsub.f32 %v10633_v18, %v8053_v34  ;;  %v10675_v9 = vpack.c.bf16 %v8161_v30, %v8153_v39 }
 0x5b3   : > { %v4724_v27 = vpop.eup %4723  ;;  %v2970_v25 = vadd.f32 %v8284_v62, %v2969_v46  ;;  %4743 = vpow2.f32 %v2904_v53  ;;  %v2991_v2 = vadd.f32 %v4714_v49, %v2990_v47  ;;  %v3033_v38 = vpack.c.bf16 %v4722_v50, %v4720_v24 }
 0x5b4   : > { %v2920_v36 = vmul.f32 1.442695, %v10674_v55  ;;  %3059 = vmatpush1.bf16.msra.mxu0 %v10675_v9  ;;  %v4726_v22 = vpop.eup %4725  ;;  %4745 = vpow2.f32 %v2908_v15  ;;  %v10676_v26 = vsub.f32 %v10634_v1, %v8053_v34  ;;  %v10678_v18 = vsub.f32 %v10677_v19, %v8053_v34  ;;  %v10680_v15 = vld [vmem:[#allocation31_spill] sm:$0xff] }
 0x5b5   : > { %3060 = vmatprep.subr.bf16.mxu0 %v3029_v8  ;;  %v4728_v5 = vpop.eup %4727  ;;  %v2971_v39 = vadd.f32 %v8295_v4, %v2970_v25  ;;  %4747 = vpow2.f32 %v2912_v16  ;;  %v2992_v30 = vadd.f32 %v4716_v58, %v2991_v2  ;;  %v3035_v28 = vpack.c.bf16 %v4726_v22, %v4724_v27 }
 0x5b6   : > { %v2924_v3 = vmul.f32 1.442695, %v10676_v26  ;;  %v2928_v6 = vmul.f32 1.442695, %v10678_v18  ;;  %v4730_v53 = vpop.eup %4729  ;;  %4749 = vpow2.f32 %v2916_v60  ;;  %v10679_v49 = vsub.f32 %v10636_v32, %v8053_v34 }
 0x5b7   : > { %v10681_v1 = vsub.f32 %v10680_v15, %v8053_v34  ;;  %v10682_v46 = vpack.c.bf16 %v8176_v17, %v8169_v43  ;;  %v4732_v47 = vpop.eup %4731  ;;  %v2972_v44 = vadd.f32 %v8304_v35, %v2971_v39  ;;  %4751 = vpow2.f32 %v2920_v36 }
 0x5b8   : > { %v2932_v8 = vmul.f32 1.442695, %v10679_v49  ;;  %v2993_v58 = vadd.f32 %v4718_v59, %v2992_v30  ;;  %v3037_v16 = vpack.c.bf16 %v4730_v53, %v4728_v5  ;;  %v4734_v60 = vpop.eup %4733  ;;  %4753 = vpow2.f32 %v2924_v3  ;;  %v10685_v59 = vld [vmem:[#allocation135_spill] sm:$0xff] }
 0x5b9   : > { %v2936_v57 = vmul.f32 1.442695, %v10681_v1  ;;  %3061 = vmatpush1.bf16.msra.mxu0 %v10682_v46  ;;  %v10683_v32 = vsub.f32 %v10638_v63, %v8053_v34  ;;  %v10684_v9 = vsub.f32 %v10639_v13, %v8053_v34  ;;  %v4736_v2 = vpop.eup %4735  ;;  %v2973_v17 = vadd.f32 %v8312_v12, %v2972_v44 }
 0x5ba   : > { %3062 = vmatprep.subr.bf16.mxu0 %v3031_v45  ;;  %4755 = vpow2.f32 %v2928_v6  ;;  %v2994_v43 = vadd.f32 %v4720_v24, %v2993_v58  ;;  %v3039_v26 = vpack.c.bf16 %v4734_v60, %v4732_v47  ;;  %v4738_v36 = vpop.eup %4737  ;;  %v10686_v45 = vsub.f32 %v10685_v59, %v8053_v34 }
 0x5bb   : > { %v2940_v55 = vmul.f32 1.442695, %v10683_v32  ;;  %v2944_v25 = vmul.f32 1.442695, %v10684_v9  ;;  %4757 = vpow2.f32 %v2932_v8  ;;  %v10687_v63 = vpack.c.bf16 %v8191_v41, %v8184_v37  ;;  %v4740_v19 = vpop.eup %4739 }
 0x5bc   : > { %v2948_v3 = vmul.f32 1.442695, %v10686_v45  ;;  %v2974_v13 = vadd.f32 %v8319_v42, %v2973_v17  ;;  %4759 = vpow2.f32 %v2936_v57  ;;  %v2995_v18 = vadd.f32 %v4722_v50, %v2994_v43  ;;  %v4742_v6 = vpop.eup %4741 }
 0x5bd   : > { %3063 = vmatpush1.bf16.msra.mxu0 %v10687_v63  ;;  %v3041_v39 = vpack.c.bf16 %v4738_v36, %v4736_v2  ;;  %4761 = vpow2.f32 %v2940_v55  ;;  %v4744_v24 = vpop.eup %4743  ;;  %v3043_v34 = vpack.c.bf16 %v4742_v6, %v4740_v19  ;;  %v10688_v41 = vpack.c.bf16 %v8206_v10, %v8199_v52 }
 0x5be   : > { %3064 = vmatprep.subr.bf16.mxu0 %v3033_v38  ;;  %v2975_v30 = vadd.f32 %v8327_v33, %v2974_v13  ;;  %4763 = vpow2.f32 %v2944_v25  ;;  %v2996_v49 = vadd.f32 %v4724_v27, %v2995_v18  ;;  %v4746_v8 = vpop.eup %4745  ;;  %v10689_v32 = vpack.c.bf16 %v8220_v51, %v8214_v48 }
 0x5bf   : > { %4765 = vpow2.f32 %v2948_v3  ;;  %v4748_v37 = vpop.eup %4747  ;;  %v3045_v38 = vpack.c.bf16 %v4746_v8, %v4744_v24  ;;  %v10691_v13 = vpack.c.bf16 %v8245_v14, %v8239_v61  ;;  %v10695_v61 = vpack.c.bf16 %v8284_v62, %v8275_v31 }
 0x5c0   : > { %v2976_v15 = vadd.f32 %v8334_v11, %v2975_v30  ;;  %v2997_v50 = vadd.f32 %v4726_v22, %v2996_v49  ;;  %v4750_v1 = vpop.eup %4749  ;;  %v10698_v31 = vpack.c.bf16 %v8334_v11, %v8327_v33  ;;  %v10705_v11 = vld [vmem:[#allocation141_spill] sm:$0xff] }
 0x5c1   : > { %3065 = vmatpush1.bf16.msra.mxu0 %v10688_v41  ;;  %v4752_v57 = vpop.eup %4751  ;;  %v3047_v58 = vpack.c.bf16 %v4750_v1, %v4748_v37  ;;  %v10704_v41 = vld [vmem:[#allocation145_spill] sm:$0xff] }
 0x5c2   : > { %3066 = vmatprep.subr.bf16.mxu0 %v3035_v28  ;;  %v2977_v46 = vadd.f32 %v8342_v20, %v2976_v15  ;;  %v2998_v44 = vadd.f32 %v4728_v5, %v2997_v50  ;;  %v4754_v27 = vpop.eup %4753  ;;  %v10690_v5 = vpack.c.bf16 %v8233_v54, %v8226_v21  ;;  %v10692_v21 = vld [vmem:[#allocation171_spill] sm:$0xff]  ;;  %v10706_v33 = vpack.c.bf16 %v10704_v41, %v10705_v11  ;;  %v10708_v15 = vld [vmem:[#allocation150_spill] sm:$0xff] }
 0x5c3   : > { %v3049_v9 = vpack.c.bf16 %v4754_v27, %v4752_v57  ;;  %v10693_v54 = vpack.c.bf16 %v8256_v7, %v10692_v21  ;;  %v10696_v7 = vpack.c.bf16 %v8304_v35, %v8295_v4  ;;  %v10699_v4 = vpack.c.bf16 %v8350_v23, %v8342_v20  ;;  %v10711_v20 = vld [vmem:[#allocation157_spill] sm:$0xff]  ;;  %v10742_v21 = vld [vmem:[#allocation68_spill] sm:$0xff] }
 0x5c4   : > { %v4756_v55 = vpop.eup %4755  ;;  %v2978_v10 = vadd.f32 %v8350_v23, %v2977_v46  ;;  %v2999_v52 = vadd.f32 %v4730_v53, %v2998_v44  ;;  %v10710_v23 = vld [vmem:[#allocation160_spill] sm:$0xff]  ;;  %v10718_v44 = vld [vmem:[#allocation118_spill] sm:$0xff] }
 0x5c5   : > { %3067 = vmatpush1.bf16.msra.mxu0 %v10689_v32  ;;  %v4758_v22 = vpop.eup %4757  ;;  %v10717_v46 = vld [vmem:[#allocation140_spill] sm:$0xff]  ;;  %v10721_v32 = vld [vmem:[#allocation163_spill] sm:$0xff] }
 0x5c6   : > { %3068 = vmatprep.subr.bf16.mxu0 %v3037_v16  ;;  %v4760_v28 = vpop.eup %4759  ;;  %v2979_v25 = vadd.f32 %v8355_v56, %v2978_v10  ;;  %v3000_v17 = vadd.f32 %v4732_v47, %v2999_v52  ;;  %v3051_v43 = vpack.c.bf16 %v4758_v22, %v4756_v55  ;;  %v10723_v10 = vld [vmem:[#allocation47_spill] sm:$0xff]  ;;  %v10724_v52 = vld [vmem:[#allocation37_spill] sm:$0xff] }
 0x5c7   : > { %v4762_v59 = vpop.eup %4761 }
 0x5c8   : > { %v4764_v45 = vpop.eup %4763  ;;  %v8461_v51 = vadd.f32 %v8363_v40, %v2979_v25  ;;  %v3001_v48 = vadd.f32 %v4734_v60, %v3000_v17  ;;  %v3053_v53 = vpack.c.bf16 %v4762_v59, %v4760_v28  ;;  %v10694_v60 = vpack.c.bf16 %v8267_v29, %v8261_v0  ;;  %v10729_v17 = vld [vmem:[#allocation117_spill] sm:$0xff] }
 0x5c9   : > { %3069 = vmatpush1.bf16.msra.mxu0 %v10690_v5  ;;  %v4766_v16 = vpop.eup %4765  ;;  %v10697_v0 = vpack.c.bf16 %v8319_v42, %v8312_v12  ;;  %v10700_v12 = vpack.c.bf16 %v8363_v40, %v8355_v56  ;;  %v10701_v42 = vld [vmem:[#allocation161_spill] sm:$0xff]  ;;  %v10716_v40 = vmov 0  }
 0x5ca   : > { %3070 = vmatprep.subr.bf16.mxu0 %v3039_v26  ;;  %v3002_v3 = vadd.f32 %v4736_v2, %v3001_v48  ;;  %v3055_v63 = vpack.c.bf16 %v4766_v16, %v4764_v45  ;;  %v10732_v5 = vld [vmem:[#allocation129_spill] sm:$0xff] }
 0x5cc   : > { %v3003_v47 = vadd.f32 %v4738_v36, %v3002_v3 }
 0x5cd   : > { %3071 = vmatpush1.bf16.msra.mxu0 %v10691_v13  ;;  %v10739_v13 = vld [vmem:[#allocation162_spill] sm:$0xff] }
 0x5ce   : > { %3072 = vmatprep.subr.bf16.mxu0 %v3041_v39  ;;  %v3004_v18 = vadd.f32 %v4740_v19, %v3003_v47 }
 0x5d0   : > { %v3005_v30 = vadd.f32 %v4742_v6, %v3004_v18  ;;  %v10741_v18 = vld [vmem:[#allocation88_spill] sm:$0xff] }
 0x5d1   : > { %3073 = vmatpush1.bf16.msra.mxu0 %v10693_v54  ;;  %v10743_v54 = vpack.c.bf16 %v10741_v18, %v10742_v21 }
 0x5d2   : > { %3074 = vmatprep.subr.bf16.mxu0 %v3043_v34  ;;  %v3006_v49 = vadd.f32 %v4744_v24, %v3005_v30  ;;  %v10702_v34 = vld [vmem:[#allocation158_spill] sm:$0xff]  ;;  %v10744_v30 = vld [vmem:[#allocation136_spill] sm:$0xff] }
 0x5d4   : > { %v3007_v2 = vadd.f32 %v4746_v8, %v3006_v49  ;;  %v10703_v8 = vpack.c.bf16 %v10701_v42, %v10702_v34  ;;  %v10745_v49 = vld [vmem:[#allocation115_spill] sm:$0xff]  ;;  %v10763_v42 = vld [vmem:[#allocation50_spill] sm:$0xff] }
 0x5d5   : > { %3075 = vmatpush1.bf16.msra.mxu0 %v10694_v60  ;;  %v10746_v60 = vpack.c.bf16 %v10744_v30, %v10745_v49 }
 0x5d6   : > { %3076 = vmatprep.subr.bf16.mxu0 %v3045_v38  ;;  %v3008_v26 = vadd.f32 %v4748_v37, %v3007_v2  ;;  %v10707_v37 = vld [vmem:[#allocation154_spill] sm:$0xff]  ;;  %v10712_v38 = vpack.c.bf16 %v10710_v23, %v10711_v20  ;;  %v10747_v2 = vld [vmem:[#allocation167_spill] sm:$0xff] }
 0x5d7   : > { %v10709_v50 = vpack.c.bf16 %v10707_v37, %v10708_v15 }
 0x5d8   : > { %v3009_v14 = vadd.f32 %v4750_v1, %v3008_v26  ;;  %v10713_v1 = vld [vmem:[#allocation153_spill] sm:$0xff]  ;;  %v10748_v26 = vld [vmem:[#allocation159_spill] sm:$0xff] }
 0x5d9   : > { %3077 = vmatpush1.bf16.msra.mxu0 %v10695_v61  ;;  %v10749_v61 = vpack.c.bf16 %v10747_v2, %v10748_v26 }
 0x5da   : > { %3078 = vmatprep.subr.bf16.mxu0 %v3047_v58  ;;  %v3010_v36 = vadd.f32 %v4752_v57, %v3009_v14  ;;  %v10714_v57 = vld [vmem:[#allocation149_spill] sm:$0xff]  ;;  %v10719_v58 = vpack.c.bf16 %v10717_v46, %v10718_v44  ;;  %v10750_v14 = vld [vmem:[#allocation44_spill] sm:$0xff] }
 0x5db   : > { %v10715_v56 = vpack.c.bf16 %v10713_v1, %v10714_v57 }
 0x5dc   : > { %v3011_v19 = vadd.f32 %v4754_v27, %v3010_v36  ;;  %v10720_v27 = vld [vmem:[#allocation172_spill] sm:$0xff]  ;;  %v10751_v36 = vld [vmem:[#allocation35_spill] sm:$0xff] }
 0x5dd   : > { %3079 = vmatpush1.bf16.msra.mxu0 %v10696_v7  ;;  %v10752_v7 = vpack.c.bf16 %v10750_v14, %v10751_v36 }
 0x5de   : > { %3080 = vmatprep.subr.bf16.mxu0 %v3049_v9  ;;  %v3012_v39 = vadd.f32 %v4756_v55, %v3011_v19  ;;  %v10722_v55 = vpack.c.bf16 %v10720_v27, %v10721_v32  ;;  %v10725_v9 = vpack.c.bf16 %v10723_v10, %v10724_v52  ;;  %v10753_v19 = vld [vmem:[#allocation63_spill] sm:$0xff] }
 0x5e0   : > { %v3013_v29 = vadd.f32 %v4758_v22, %v3012_v39  ;;  %v10726_v22 = vld [vmem:[#allocation33_spill] sm:$0xff] }
 0x5e1   : > { %3081 = vmatpush1.bf16.msra.mxu0 %v10697_v0  ;;  %v10754_v39 = vld [vmem:[#allocation53_spill] sm:$0xff] }
 0x5e2   : > { %3082 = vmatprep.subr.bf16.mxu0 %v3051_v43  ;;  %v3014_v6 = vadd.f32 %v4760_v28, %v3013_v29  ;;  %v10727_v28 = vld [vmem:[#allocation57_spill] sm:$0xff]  ;;  %v10730_v43 = vld [vmem:[#allocation40_spill] sm:$0xff]  ;;  %v10755_v0 = vpack.c.bf16 %v10753_v19, %v10754_v39  ;;  %v10756_v29 = vld [vmem:[#allocation34_spill] sm:$0xff] }
 0x5e3   : > { %v10728_v25 = vpack.c.bf16 %v10726_v22, %v10727_v28 }
 0x5e4   : > { %v3015_v62 = vadd.f32 %v4762_v59, %v3014_v6  ;;  %v10731_v59 = vpack.c.bf16 %v10729_v17, %v10730_v43  ;;  %v10757_v6 = vld [vmem:[#allocation32_spill] sm:$0xff] }
 0x5e5   : > { %3083 = vmatpush1.bf16.msra.mxu0 %v10698_v31  ;;  %v10758_v31 = vpack.c.bf16 %v10756_v29, %v10757_v6 }
 0x5e6   : > { %3084 = vmatprep.subr.bf16.mxu0 %v3053_v53  ;;  %v3016_v24 = vadd.f32 %v4764_v45, %v3015_v62  ;;  %v10733_v45 = vld [vmem:[#allocation123_spill] sm:$0xff] }
 0x5e7   : > { %v10734_v48 = vpack.c.bf16 %v10732_v5, %v10733_v45  ;;  %v10735_v53 = vld [vmem:[#allocation147_spill] sm:$0xff] }
 0x5e8   : > { %v3017_v35 = vadd.f32 %v4766_v16, %v3016_v24  ;;  %v10736_v16 = vld [vmem:[#allocation42_spill] sm:$0xff]  ;;  %v10759_v62 = vld [vmem:[#allocation127_spill] sm:$0xff]  ;;  %v10760_v24 = vld [vmem:[#allocation121_spill] sm:$0xff] }
 0x5e9   : > { %3085 = vmatpush1.bf16.msra.mxu0 %v10699_v4  ;;  %v10737_v3 = vpack.c.bf16 %v10735_v53, %v10736_v16  ;;  %v10761_v4 = vpack.c.bf16 %v10759_v62, %v10760_v24 }
 0x5ea   : > { %3086 = vmatprep.subr.bf16.mxu0 %v3055_v63  ;;  %v10738_v63 = vld [vmem:[#allocation60_spill] sm:$0xff]  ;;  %v3018_v41 = vrot.slane %v3017_v35, 4 }
 0x5eb   : > { %v10740_v47 = vpack.c.bf16 %v10738_v63, %v10739_v13 }
 0x5ed   : > { %3087 = vmatpush1.bf16.msra.mxu0 %v10700_v12  ;;  %v10762_v12 = vld [vmem:[#allocation142_spill] sm:$0xff] }
 0x5ee   : > { %3255 = vmatprep.subr.bf16.mxu0 %v10703_v8  ;;  %v10764_v34 = vpack.c.bf16 %v10762_v12, %v10763_v42  ;;  %v2981_v8 = vrot.slane %v8461_v51, 4 }
 0x5f0   : > { %3089 = vmatmul.mubr.bf16.vlgmr.msra.gmra.mrb[124].mxu0 %v10706_v33  ;;  %v2982_v11 = vadd.f32 %v2981_v8, %v8461_v51  ;;  %v3019_v33 = vadd.f32 %v3018_v41, %v3017_v35 }
 0x5f1   : > { %3098 = vmatprep.mubr.bf16.mxu0 %v10709_v50  ;;  %3256 = vmatpush1.bf16.msra.mxu0 %v10712_v38 }
 0x5f2   : > { %v2983_v37 = vrot.slane %v2982_v11, 2  ;;  %v3020_v15 = vrot.slane %v3019_v33, 2 }
 0x5f4   : > { %v2984_v50 = vadd.f32 %v2983_v37, %v2982_v11  ;;  %v3021_v23 = vadd.f32 %v3020_v15, %v3019_v33 }
 0x5f6   : > { %v2985_v20 = vrot.slane %v2984_v50, 1  ;;  %v3022_v38 = vrot.slane %v3021_v23, 1 }
 0x5f8   : > { %3099 = vmatmul.mubr.bf16.gmra.mrb[128].mxu0 %v10715_v56  ;;  %v2986_v1 = vadd.f32 %v2985_v20, %v2984_v50  ;;  %v3023_v57 = vadd.f32 %v3022_v38, %v3021_v23 }
 0x5f9   : > { %3287 = vmatprep.mubr.bf16.mxu0 %v10716_v40 }
 0x5fa   : > { %4767 = vrcp.f32 %v2986_v1 }
 0x5fb   : > { %4769 = vrcp.f32 %v3023_v57 }
 0x600   : > { %4179 = vmatmul.mubr.msk.bf16.vlgmr.msra.gmra.mrb[132].mxu0 %vm914_vm1, %v10719_v58 }
 0x601   : > { %3297 = vmatprep.mubr.bf16.mxu0 %v10716_v40 }
 0x604   : > { %v4768_v56 = vpop.eup %4767 }
 0x605   : > { %v4770_v46 = vpop.eup %4769 }
 0x608   : > { %4180 = vmatmul.mubr.msk.bf16.gmra.mrb[136].mxu0 %vm914_vm1, %v10722_v55 }
 0x609   : > { %3307 = vmatprep.mubr.bf16.mxu0 %v10716_v40 }
 0x610   : > { %4181 = vmatmul.mubr.msk.bf16.gmra.mrb[140].mxu0 %vm914_vm1, %v10725_v9 }
 0x611   : > { %3317 = vmatprep.mubr.bf16.mxu0 %v10716_v40 }
 0x618   : > { %4182 = vmatmul.mubr.msk.bf16.gmra.mrb[144].mxu0 %vm914_vm1, %v10728_v25 }
 0x619   : > { %3327 = vmatprep.mubr.bf16.mxu0 %v10716_v40 }
 0x620   : > { %4183 = vmatmul.mubr.msk.bf16.gmra.mrb[148].mxu0 %vm914_vm1, %v10731_v59 }
 0x621   : > { %3337 = vmatprep.mubr.bf16.mxu0 %v10716_v40 }
 0x628   : > { %4184 = vmatmul.mubr.msk.bf16.gmra.mrb[152].mxu0 %vm914_vm1, %v10734_v48 }
 0x629   : > { %3347 = vmatprep.mubr.bf16.mxu0 %v10716_v40 }
 0x630   : > { %4185 = vmatmul.mubr.msk.bf16.gmra.mrb[156].mxu0 %vm914_vm1, %v10737_v3 }
 0x631   : > { %3357 = vmatprep.mubr.bf16.mxu0 %v10716_v40 }
 0x638   : > { %4186 = vmatmul.mubr.msk.bf16.gmra.mrb[160].mxu0 %vm914_vm1, %v10740_v47 }
 0x639   : > { %3367 = vmatprep.mubr.bf16.mxu0 %v10716_v40 }
 0x640   : > { %4187 = vmatmul.mubr.msk.bf16.gmra.mrb[164].mxu0 %vm914_vm1, %v10743_v54 }
 0x641   : > { %3377 = vmatprep.mubr.bf16.mxu0 %v10716_v40 }
 0x648   : > { %4188 = vmatmul.mubr.msk.bf16.gmra.mrb[168].mxu0 %vm914_vm1, %v10746_v60 }
 0x649   : > { %3387 = vmatprep.mubr.bf16.mxu0 %v10716_v40 }
 0x650   : > { %4189 = vmatmul.mubr.msk.bf16.gmra.mrb[172].mxu0 %vm914_vm1, %v10749_v61 }
 0x651   : > { %3397 = vmatprep.mubr.bf16.mxu0 %v10716_v40 }
 0x658   : > { %4190 = vmatmul.mubr.msk.bf16.gmra.mrb[176].mxu0 %vm914_vm1, %v10752_v7 }
 0x659   : > { %3407 = vmatprep.mubr.bf16.mxu0 %v10716_v40 }
 0x660   : > { %4191 = vmatmul.mubr.msk.bf16.gmra.mrb[180].mxu0 %vm914_vm1, %v10755_v0 }
 0x661   : > { %3417 = vmatprep.mubr.bf16.mxu0 %v10716_v40 }
 0x668   : > { %4192 = vmatmul.mubr.msk.bf16.gmra.mrb[184].mxu0 %vm914_vm1, %v10758_v31 }
 0x669   : > { %3427 = vmatprep.mubr.bf16.mxu0 %v10716_v40 }
 0x670   : > { %4193 = vmatmul.mubr.msk.bf16.gmra.mrb[188].mxu0 %vm914_vm1, %v10761_v4 }
 0x671   : > { %3437 = vmatprep.mubr.bf16.mxu0 %v10716_v40 }
 0x678   : > { %4194 = vmatmul.mubr.msk.bf16.gmra.mrb[192].mxu0 %vm914_vm1, %v10764_v34 }
 0x6c3   : > { %v3090_v40 = vpop.f32.mrb[124].mxu0 }
 0x6c4   : > { %v3111_v44 = vmul.f32 %v4768_v56, %v3090_v40  ;;  %v3092_v58 = vpop.f32.mrb[125].mxu0 }
 0x6c5   : > { %v3112_v27 = vmul.f32 %v4770_v46, %v3092_v58  ;;  %v3094_v32 = vpop.f32.mrb[126].mxu0 }
 0x6c6   : > { %v3113_v55 = vmul.f32 %v4768_v56, %v3094_v32  ;;  %v3096_v51 = vpop.f32.mrb[127].mxu0  ;;  %v3119_v10 = vmax.f32 %v3111_v44, 0.0 }
 0x6c7   : > { %v3114_v35 = vmul.f32 %v4770_v46, %v3096_v51  ;;  %v3120_v9 = vmax.f32 %v3112_v27, 0.0 }
 0x6c8   : > { %v3121_v52 = vmax.f32 %v3113_v55, 0.0 }
 0x6c9   : > { %v3122_v22 = vmax.f32 %v3114_v35, 0.0 }
 0x6ca   : > { %v8587_v28 = vpack.c.bf16 %v3121_v52, %v3119_v10 }
 0x6cb   : > { %v8589_v25 = vpack.c.bf16 %v3122_v22, %v3120_v9  ;;  %v3100_v17 = vpop.f32.mrb[128].mxu0 }
 0x6cc   : > { %10765 = vst [vmem:[#allocation170_spill] sm:$0xff] %v8587_v28  ;;  %v3115_v43 = vmul.f32 %v4768_v56, %v3100_v17  ;;  %v3102_v59 = vpop.f32.mrb[129].mxu0 }
 0x6cd   : > { %10766 = vst [vmem:[#allocation148_spill] sm:$0xff] %v8589_v25  ;;  %v3116_v5 = vmul.f32 %v4770_v46, %v3102_v59  ;;  %v3104_v45 = vpop.f32.mrb[130].mxu0 }
 0x6ce   : > { %v3117_v48 = vmul.f32 %v4768_v56, %v3104_v45  ;;  %v3106_v53 = vpop.f32.mrb[131].mxu0  ;;  %v3123_v3 = vmax.f32 %v3115_v43, 0.0 }
 0x6cf   : > { %v3118_v16 = vmul.f32 %v4770_v46, %v3106_v53  ;;  %v3124_v13 = vmax.f32 %v3116_v5, 0.0 }
 0x6d0   : > { %v3125_v63 = vmax.f32 %v3117_v48, 0.0 }
 0x6d1   : > { %v3126_v47 = vmax.f32 %v3118_v16, 0.0 }
 0x6d2   : > { %v8591_v18 = vpack.c.bf16 %v3125_v63, %v3123_v3 }
 0x6d3   : > { %v8593_v21 = vpack.c.bf16 %v3126_v47, %v3124_v13  ;;  %v8595_v54 = vpop.f32.mrb[132].mxu0 }
 0x6d4   : > { %10767 = vst [vmem:[#allocation143_spill] sm:$0xff] %v8591_v18  ;;  %v8597_v30 = vpop.f32.mrb[133].mxu0 }
 0x6d5   : > { %10768 = vst [vmem:[#allocation30_spill] sm:$0xff] %v8593_v21  ;;  %v8599_v49 = vpop.f32.mrb[134].mxu0 }
 0x6d6   : > { %v8601_v60 = vpop.f32.mrb[135].mxu0 }
 0x6db   : > { %v8603_v2 = vpop.f32.mrb[136].mxu0 }
 0x6dc   : > { %v3448_v26 = vmax.f32 %v8595_v54, %v8603_v2  ;;  %v8607_v61 = vpop.f32.mrb[137].mxu0 }
 0x6dd   : > { %v3485_v14 = vmax.f32 %v8597_v30, %v8607_v61  ;;  %v8611_v36 = vpop.f32.mrb[138].mxu0 }
 0x6de   : > { %v3449_v7 = vmax.f32 %v8599_v49, %v8611_v36  ;;  %v8615_v19 = vpop.f32.mrb[139].mxu0 }
 0x6df   : > { %v3486_v39 = vmax.f32 %v8601_v60, %v8615_v19 }
 0x6e3   : > { %v8619_v0 = vpop.f32.mrb[140].mxu0 }
 0x6e4   : > { %v3450_v29 = vmax.f32 %v3448_v26, %v8619_v0  ;;  %v8622_v6 = vpop.f32.mrb[141].mxu0 }
 0x6e5   : > { %v3487_v31 = vmax.f32 %v3485_v14, %v8622_v6  ;;  %v8625_v62 = vpop.f32.mrb[142].mxu0 }
 0x6e6   : > { %v3451_v24 = vmax.f32 %v3449_v7, %v8625_v62  ;;  %v8628_v4 = vpop.f32.mrb[143].mxu0 }
 0x6e7   : > { %v3488_v12 = vmax.f32 %v3486_v39, %v8628_v4 }
 0x6eb   : > { %v8631_v42 = vpop.f32.mrb[144].mxu0 }
 0x6ec   : > { %v3452_v34 = vmax.f32 %v3450_v29, %v8631_v42  ;;  %v8634_v8 = vpop.f32.mrb[145].mxu0 }
 0x6ed   : > { %v3489_v41 = vmax.f32 %v3487_v31, %v8634_v8  ;;  %v8637_v11 = vpop.f32.mrb[146].mxu0 }
 0x6ee   : > { %v3453_v33 = vmax.f32 %v3451_v24, %v8637_v11  ;;  %v8640_v37 = vpop.f32.mrb[147].mxu0 }
 0x6ef   : > { %v3490_v15 = vmax.f32 %v3488_v12, %v8640_v37 }
 0x6f3   : > { %v8643_v50 = vpop.f32.mrb[148].mxu0 }
 0x6f4   : > { %v3454_v23 = vmax.f32 %v3452_v34, %v8643_v50  ;;  %v8646_v20 = vpop.f32.mrb[149].mxu0 }
 0x6f5   : > { %v3491_v38 = vmax.f32 %v3489_v41, %v8646_v20  ;;  %v8649_v1 = vpop.f32.mrb[150].mxu0 }
 0x6f6   : > { %v3455_v57 = vmax.f32 %v3453_v33, %v8649_v1  ;;  %v8652_v56 = vpop.f32.mrb[151].mxu0 }
 0x6f7   : > { %v3492_v40 = vmax.f32 %v3490_v15, %v8652_v56 }
 0x6fb   : > { %v8655_v46 = vpop.f32.mrb[152].mxu0 }
 0x6fc   : > { %v3456_v44 = vmax.f32 %v3454_v23, %v8655_v46  ;;  %v8658_v58 = vpop.f32.mrb[153].mxu0 }
 0x6fd   : > { %v3493_v27 = vmax.f32 %v3491_v38, %v8658_v58  ;;  %v8661_v32 = vpop.f32.mrb[154].mxu0 }
 0x6fe   : > { %v3457_v55 = vmax.f32 %v3455_v57, %v8661_v32  ;;  %v8664_v51 = vpop.f32.mrb[155].mxu0 }
 0x6ff   : > { %10769 = vst [vmem:[#allocation29_spill] sm:$0xff] %v8664_v51  ;;  %v3494_v35 = vmax.f32 %v3492_v40, %v8664_v51 }
 0x703   : > { %v8667_v10 = vpop.f32.mrb[156].mxu0 }
 0x704   : > { %v3458_v52 = vmax.f32 %v3456_v44, %v8667_v10  ;;  %v8670_v9 = vpop.f32.mrb[157].mxu0 }
 0x705   : > { %10770 = vst [vmem:[#allocation12_spill] sm:$0xff] %v8670_v9  ;;  %v3495_v22 = vmax.f32 %v3493_v27, %v8670_v9  ;;  %v8673_v17 = vpop.f32.mrb[158].mxu0 }
 0x706   : > { %v3459_v43 = vmax.f32 %v3457_v55, %v8673_v17  ;;  %v8676_v59 = vpop.f32.mrb[159].mxu0 }
 0x707   : > { %10771 = vst [vmem:[#allocation10_spill] sm:$0xff] %v8676_v59  ;;  %v3496_v5 = vmax.f32 %v3494_v35, %v8676_v59 }
 0x70b   : > { %v8679_v45 = vpop.f32.mrb[160].mxu0 }
 0x70c   : > { %v3460_v48 = vmax.f32 %v3458_v52, %v8679_v45  ;;  %v8682_v53 = vpop.f32.mrb[161].mxu0 }
 0x70d   : > { %10772 = vst [vmem:[#allocation139_spill] sm:$0xff] %v8682_v53  ;;  %v3497_v16 = vmax.f32 %v3495_v22, %v8682_v53  ;;  %v8685_v3 = vpop.f32.mrb[162].mxu0 }
 0x70e   : > { %v3461_v63 = vmax.f32 %v3459_v43, %v8685_v3  ;;  %v8688_v13 = vpop.f32.mrb[163].mxu0 }
 0x70f   : > { %10773 = vst [vmem:[#allocation120_spill] sm:$0xff] %v8688_v13  ;;  %v3498_v47 = vmax.f32 %v3496_v5, %v8688_v13 }
 0x713   : > { %v8691_v26 = vpop.f32.mrb[164].mxu0 }
 0x714   : > { %v3462_v14 = vmax.f32 %v3460_v48, %v8691_v26  ;;  %v8694_v7 = vpop.f32.mrb[165].mxu0 }
 0x715   : > { %10774 = vst [vmem:[#allocation152_spill] sm:$0xff] %v8694_v7  ;;  %v3499_v39 = vmax.f32 %v3497_v16, %v8694_v7  ;;  %v8697_v29 = vpop.f32.mrb[166].mxu0 }
 0x716   : > { %v3463_v31 = vmax.f32 %v3461_v63, %v8697_v29  ;;  %v8700_v24 = vpop.f32.mrb[167].mxu0 }
 0x717   : > { %10775 = vst [vmem:[#allocation165_spill] sm:$0xff] %v8700_v24  ;;  %v3500_v12 = vmax.f32 %v3498_v47, %v8700_v24 }
 0x71b   : > { %v8703_v34 = vpop.f32.mrb[168].mxu0 }
 0x71c   : > { %v3464_v41 = vmax.f32 %v3462_v14, %v8703_v34  ;;  %v8706_v33 = vpop.f32.mrb[169].mxu0 }
 0x71d   : > { %10776 = vst [vmem:[#allocation11_spill] sm:$0xff] %v8706_v33  ;;  %v3501_v15 = vmax.f32 %v3499_v39, %v8706_v33  ;;  %v8709_v23 = vpop.f32.mrb[170].mxu0 }
 0x71e   : > { %v3465_v38 = vmax.f32 %v3463_v31, %v8709_v23  ;;  %v8712_v57 = vpop.f32.mrb[171].mxu0 }
 0x71f   : > { %10777 = vst [vmem:[#allocation9_spill] sm:$0xff] %v8712_v57  ;;  %v3502_v40 = vmax.f32 %v3500_v12, %v8712_v57 }
 0x723   : > { %v8715_v44 = vpop.f32.mrb[172].mxu0 }
 0x724   : > { %v3466_v27 = vmax.f32 %v3464_v41, %v8715_v44  ;;  %v8718_v55 = vpop.f32.mrb[173].mxu0 }
 0x725   : > { %10778 = vst [vmem:[#allocation131_spill] sm:$0xff] %v8718_v55  ;;  %v3503_v35 = vmax.f32 %v3501_v15, %v8718_v55  ;;  %v8721_v52 = vpop.f32.mrb[174].mxu0 }
 0x726   : > { %v3467_v22 = vmax.f32 %v3465_v38, %v8721_v52  ;;  %v8724_v43 = vpop.f32.mrb[175].mxu0 }
 0x727   : > { %10779 = vst [vmem:[#allocation125_spill] sm:$0xff] %v8724_v43  ;;  %v3504_v5 = vmax.f32 %v3502_v40, %v8724_v43 }
 0x72b   : > { %v8727_v48 = vpop.f32.mrb[176].mxu0 }
 0x72c   : > { %v3468_v16 = vmax.f32 %v3466_v27, %v8727_v48  ;;  %v8730_v63 = vpop.f32.mrb[177].mxu0 }
 0x72d   : > { %10780 = vst [vmem:[#allocation16_spill] sm:$0xff] %v8730_v63  ;;  %v3505_v47 = vmax.f32 %v3503_v35, %v8730_v63  ;;  %v8733_v14 = vpop.f32.mrb[178].mxu0 }
 0x72e   : > { %v3469_v39 = vmax.f32 %v3467_v22, %v8733_v14  ;;  %v8736_v31 = vpop.f32.mrb[179].mxu0 }
 0x72f   : > { %10781 = vst [vmem:[#allocation14_spill] sm:$0xff] %v8736_v31  ;;  %v3506_v12 = vmax.f32 %v3504_v5, %v8736_v31 }
 0x733   : > { %v8739_v41 = vpop.f32.mrb[180].mxu0 }
 0x734   : > { %v3470_v15 = vmax.f32 %v3468_v16, %v8739_v41  ;;  %v8742_v38 = vpop.f32.mrb[181].mxu0 }
 0x735   : > { %10782 = vst [vmem:[#allocation21_spill] sm:$0xff] %v8742_v38  ;;  %v3507_v40 = vmax.f32 %v3505_v47, %v8742_v38  ;;  %v8745_v27 = vpop.f32.mrb[182].mxu0 }
 0x736   : > { %v3471_v35 = vmax.f32 %v3469_v39, %v8745_v27  ;;  %v8748_v18 = vpop.f32.mrb[183].mxu0 }
 0x737   : > { %10783 = vst [vmem:[#allocation156_spill] sm:$0xff] %v8748_v18  ;;  %v3508_v22 = vmax.f32 %v3506_v12, %v8748_v18 }
 0x73b   : > { %v8751_v21 = vpop.f32.mrb[184].mxu0 }
 0x73c   : > { %v3472_v5 = vmax.f32 %v3470_v15, %v8751_v21  ;;  %v8754_v28 = vpop.f32.mrb[185].mxu0 }
 0x73d   : > { %10784 = vst [vmem:[#allocation132_spill] sm:$0xff] %v8754_v28  ;;  %v3509_v16 = vmax.f32 %v3507_v40, %v8754_v28  ;;  %v8757_v25 = vpop.f32.mrb[186].mxu0 }
 0x73e   : > { %v3473_v47 = vmax.f32 %v3471_v35, %v8757_v25  ;;  %v8760_v38 = vpop.f32.mrb[187].mxu0 }
 0x73f   : > { %10785 = vst [vmem:[#allocation164_spill] sm:$0xff] %v8760_v38  ;;  %v3510_v39 = vmax.f32 %v3508_v22, %v8760_v38 }
 0x743   : > { %v8763_v31 = vpop.f32.mrb[188].mxu0 }
 0x744   : > { %v3474_v12 = vmax.f32 %v3472_v5, %v8763_v31  ;;  %v8766_v18 = vpop.f32.mrb[189].mxu0 }
 0x745   : > { %10786 = vst [vmem:[#allocation22_spill] sm:$0xff] %v8766_v18  ;;  %v3511_v15 = vmax.f32 %v3509_v16, %v8766_v18  ;;  %v8769_v63 = vpop.f32.mrb[190].mxu0 }
 0x746   : > { %v3475_v40 = vmax.f32 %v3473_v47, %v8769_v63  ;;  %v8772_v28 = vpop.f32.mrb[191].mxu0 }
 0x747   : > { %10787 = vst [vmem:[#allocation17_spill] sm:$0xff] %v8772_v28  ;;  %v3512_v35 = vmax.f32 %v3510_v39, %v8772_v28 }
 0x74b   : > { %v8775_v43 = vpop.f32.mrb[192].mxu0 }
 0x74c   : > { %v3476_v22 = vmax.f32 %v3474_v12, %v8775_v43  ;;  %v8778_v38 = vpop.f32.mrb[193].mxu0 }
 0x74d   : > { %10788 = vst [vmem:[#allocation20_spill] sm:$0xff] %v8778_v38  ;;  %v3513_v5 = vmax.f32 %v3511_v15, %v8778_v38  ;;  %v8781_v55 = vpop.f32.mrb[194].mxu0 }
 0x74e   : > { %v3477_v16 = vmax.f32 %v3475_v40, %v8781_v55  ;;  %v8784_v18 = vpop.f32.mrb[195].mxu0 }
 0x74f   : > { %10789 = vst [vmem:[#allocation36_spill] sm:$0xff] %v8784_v18  ;;  %v3514_v47 = vmax.f32 %v3512_v35, %v8784_v18 }
 0x750   : > { %v3478_v57 = vmax.f32 %v3476_v22, %v3477_v16 }
 0x751   : > { %v3515_v33 = vmax.f32 %v3513_v5, %v3514_v47 }
 0x752   : > { %v3479_v24 = vrot.slane %v3478_v57, 4 }
 0x753   : > { %v3516_v39 = vrot.slane %v3515_v33, 4 }
 0x754   : > { %v3480_v28 = vmax.f32 %v3478_v57, %v3479_v24 }
 0x755   : > { %v3517_v7 = vmax.f32 %v3515_v33, %v3516_v39 }
 0x756   : > { %v3481_v13 = vrot.slane %v3480_v28, 2 }
 0x757   : > { %v3518_v12 = vrot.slane %v3517_v7, 2 }
 0x758   : > { %v3482_v53 = vmax.f32 %v3480_v28, %v3481_v13  ;;  %v10809_v13 = vld [vmem:[#allocation20_spill] sm:$0xff] }
 0x759   : > { %v3519_v59 = vmax.f32 %v3517_v7, %v3518_v12 }
 0x75a   : > { %v3483_v9 = vrot.slane %v3482_v53, 1 }
 0x75b   : > { %v3520_v15 = vrot.slane %v3519_v59, 1 }
 0x75c   : > { %v8787_v38 = vmax.f32 %v3482_v53, %v3483_v9 }
 0x75d   : > { %v8789_v51 = vmax.f32 %v3519_v59, %v3520_v15 }
 0x75e   : > { %v3522_v40 = vsub.f32 %v8595_v54, %v8787_v38  ;;  %v3524_v35 = vsub.f32 %v8599_v49, %v8787_v38  ;;  %v3526_v24 = vsub.f32 %v8603_v2, %v8787_v38  ;;  %v3528_v33 = vsub.f32 %v8611_v36, %v8787_v38 }
 0x75f   : > { %v3530_v28 = vsub.f32 %v8619_v0, %v8787_v38  ;;  %v3532_v9 = vsub.f32 %v8625_v62, %v8787_v38  ;;  %v3534_v59 = vsub.f32 %v8631_v42, %v8787_v38  ;;  %v3536_v54 = vsub.f32 %v8637_v11, %v8787_v38 }
 0x760   : > { %v3538_v49 = vsub.f32 %v8643_v50, %v8787_v38  ;;  %v3540_v2 = vsub.f32 %v8649_v1, %v8787_v38  ;;  %v3542_v36 = vsub.f32 %v8655_v46, %v8787_v38  ;;  %v3544_v0 = vsub.f32 %v8661_v32, %v8787_v38 }
 0x761   : > { %v3546_v62 = vsub.f32 %v8667_v10, %v8787_v38  ;;  %v3548_v42 = vsub.f32 %v8673_v17, %v8787_v38  ;;  %v3550_v11 = vsub.f32 %v8679_v45, %v8787_v38  ;;  %v3552_v50 = vsub.f32 %v8685_v3, %v8787_v38 }
 0x762   : > { %v3554_v1 = vsub.f32 %v8691_v26, %v8787_v38  ;;  %v3556_v46 = vsub.f32 %v8697_v29, %v8787_v38  ;;  %v3558_v32 = vsub.f32 %v8703_v34, %v8787_v38  ;;  %v3560_v10 = vsub.f32 %v8709_v23, %v8787_v38 }
 0x763   : > { %v3562_v17 = vsub.f32 %v8715_v44, %v8787_v38  ;;  %v3564_v45 = vsub.f32 %v8721_v52, %v8787_v38  ;;  %v3566_v53 = vsub.f32 %v8727_v48, %v8787_v38  ;;  %v3568_v3 = vsub.f32 %v8733_v14, %v8787_v38 }
 0x764   : > { %v3586_v52 = vmul.f32 1.442695, %v3522_v40  ;;  %v3590_v48 = vmul.f32 1.442695, %v3524_v35  ;;  %v3594_v14 = vmul.f32 1.442695, %v3526_v24 }
 0x765   : > { %v3598_v5 = vmul.f32 1.442695, %v3528_v33  ;;  %v3602_v47 = vmul.f32 1.442695, %v3530_v28  ;;  %v3606_v39 = vmul.f32 1.442695, %v3532_v9 }
 0x766   : > { %4771 = vpow2.f32 %v3586_v52  ;;  %v3610_v12 = vmul.f32 1.442695, %v3534_v59  ;;  %v3614_v15 = vmul.f32 1.442695, %v3536_v54  ;;  %v3618_v57 = vmul.f32 1.442695, %v3538_v49 }
 0x767   : > { %4773 = vpow2.f32 %v3590_v48  ;;  %v3622_v44 = vmul.f32 1.442695, %v3540_v2  ;;  %v3626_v40 = vmul.f32 1.442695, %v3542_v36  ;;  %v3630_v35 = vmul.f32 1.442695, %v3544_v0 }
 0x768   : > { %4775 = vpow2.f32 %v3594_v14  ;;  %v3634_v24 = vmul.f32 1.442695, %v3546_v62  ;;  %v3638_v22 = vmul.f32 1.442695, %v3548_v42  ;;  %v3642_v33 = vmul.f32 1.442695, %v3550_v11 }
 0x769   : > { %4777 = vpow2.f32 %v3598_v5  ;;  %v3646_v23 = vmul.f32 1.442695, %v3552_v50  ;;  %v3650_v16 = vmul.f32 1.442695, %v3554_v1  ;;  %v3654_v52 = vmul.f32 1.442695, %v3556_v46 }
 0x76a   : > { %4779 = vpow2.f32 %v3602_v47  ;;  %v3658_v28 = vmul.f32 1.442695, %v3558_v32  ;;  %v3662_v9 = vmul.f32 1.442695, %v3560_v10  ;;  %v3666_v48 = vmul.f32 1.442695, %v3562_v17 }
 0x76b   : > { %4781 = vpow2.f32 %v3606_v39  ;;  %v8859_v59 = vmul.f32 1.442695, %v3564_v45  ;;  %v8861_v54 = vmul.f32 1.442695, %v3566_v53  ;;  %v8863_v49 = vmul.f32 1.442695, %v3568_v3 }
 0x76c   : > { %4783 = vpow2.f32 %v3610_v12  ;;  %v10790_v17 = vld [vmem:[#allocation29_spill] sm:$0xff]  ;;  %v10792_v14 = vld [vmem:[#allocation10_spill] sm:$0xff]  ;;  %v10793_v39 = vld [vmem:[#allocation139_spill] sm:$0xff] }
 0x76d   : > { %4785 = vpow2.f32 %v3614_v15  ;;  %v10794_v15 = vld [vmem:[#allocation120_spill] sm:$0xff]  ;;  %v10796_v10 = vld [vmem:[#allocation165_spill] sm:$0xff]  ;;  %v10797_v32 = vld [vmem:[#allocation11_spill] sm:$0xff] }
 0x76e   : > { %4787 = vpow2.f32 %v3618_v57  ;;  %v10791_v57 = vld [vmem:[#allocation12_spill] sm:$0xff]  ;;  %v10798_v12 = vld [vmem:[#allocation9_spill] sm:$0xff]  ;;  %v10799_v50 = vld [vmem:[#allocation131_spill] sm:$0xff] }
 0x76f   : > { %4789 = vpow2.f32 %v3622_v44  ;;  %v10800_v11 = vld [vmem:[#allocation125_spill] sm:$0xff]  ;;  %v10801_v5 = vld [vmem:[#allocation16_spill] sm:$0xff]  ;;  %v10802_v0 = vld [vmem:[#allocation14_spill] sm:$0xff] }
 0x770   : > { %v8873_v42 = vpop.eup %4771  ;;  %4791 = vpow2.f32 %v3626_v40  ;;  %v10803_v40 = vld [vmem:[#allocation21_spill] sm:$0xff]  ;;  %v10804_v2 = vld [vmem:[#allocation156_spill] sm:$0xff] }
 0x771   : > { %v8881_v46 = vpop.eup %4773  ;;  %4793 = vpow2.f32 %v3630_v35  ;;  %v10795_v35 = vld [vmem:[#allocation152_spill] sm:$0xff] }
 0x772   : > { %v8889_v53 = vpop.eup %4775  ;;  %4795 = vpow2.f32 %v3634_v24  ;;  %v3714_v3 = vadd.f32 %v8881_v46, %v8873_v42  ;;  %v10808_v24 = vld [vmem:[#allocation17_spill] sm:$0xff] }
 0x773   : > { %v8897_v47 = vpop.eup %4777  ;;  %4797 = vpow2.f32 %v3638_v22  ;;  %v10806_v22 = vld [vmem:[#allocation164_spill] sm:$0xff] }
 0x774   : > { %v8905_v45 = vpop.eup %4779  ;;  %4799 = vpow2.f32 %v3642_v33  ;;  %v3715_v44 = vadd.f32 %v8889_v53, %v3714_v3 }
 0x775   : > { %v8912_v1 = vpop.eup %4781  ;;  %4801 = vpow2.f32 %v3646_v23 }
 0x776   : > { %v8920_v62 = vpop.eup %4783  ;;  %4803 = vpow2.f32 %v3650_v16  ;;  %v3716_v3 = vadd.f32 %v8897_v47, %v3715_v44 }
 0x777   : > { %v8927_v36 = vpop.eup %4785  ;;  %4805 = vpow2.f32 %v3654_v52 }
 0x778   : > { %v8935_v29 = vpop.eup %4787  ;;  %4807 = vpow2.f32 %v3658_v28  ;;  %v3717_v44 = vadd.f32 %v8905_v45, %v3716_v3  ;;  %v10810_v3 = vsub.f32 %v8739_v41, %v8787_v38 }
 0x779   : > { %v8942_v26 = vpop.eup %4789  ;;  %4809 = vpow2.f32 %v3662_v9  ;;  %v10811_v9 = vsub.f32 %v8745_v27, %v8787_v38 }
 0x77a   : > { %v8950_v34 = vpop.eup %4791  ;;  %4811 = vpow2.f32 %v3666_v48  ;;  %v3682_v23 = vmul.f32 1.442695, %v10810_v3  ;;  %v3718_v52 = vadd.f32 %v8912_v1, %v3717_v44  ;;  %v10812_v48 = vsub.f32 %v8751_v21, %v8787_v38 }
 0x77b   : > { %v8956_v7 = vpop.eup %4793  ;;  %4813 = vpow2.f32 %v8859_v59  ;;  %v3686_v16 = vmul.f32 1.442695, %v10811_v9  ;;  %v10813_v59 = vsub.f32 %v8757_v25, %v8787_v38  ;;  %v10817_v25 = vsub.f32 %v8775_v43, %v8787_v38 }
 0x77c   : > { %v8962_v33 = vpop.eup %4795  ;;  %4815 = vpow2.f32 %v8861_v54  ;;  %v3690_v28 = vmul.f32 1.442695, %v10812_v48  ;;  %v3719_v41 = vadd.f32 %v8920_v62, %v3718_v52  ;;  %v10814_v54 = vsub.f32 %v8763_v31, %v8787_v38 }
 0x77d   : > { %v8969_v3 = vpop.eup %4797  ;;  %4817 = vpow2.f32 %v8863_v49  ;;  %v3694_v44 = vmul.f32 1.442695, %v10813_v59  ;;  %v10815_v52 = vsub.f32 %v8769_v63, %v8787_v38 }
 0x77e   : > { %v8975_v27 = vpop.eup %4799  ;;  %4819 = vpow2.f32 %v3682_v23  ;;  %v3698_v9 = vmul.f32 1.442695, %v10814_v54  ;;  %v3720_v21 = vadd.f32 %v8927_v36, %v3719_v41  ;;  %v3706_v23 = vmul.f32 1.442695, %v10817_v25 }
 0x77f   : > { %v8981_v48 = vpop.eup %4801  ;;  %4821 = vpow2.f32 %v3686_v16  ;;  %v3702_v49 = vmul.f32 1.442695, %v10815_v52  ;;  %v10818_v41 = vsub.f32 %v8781_v55, %v8787_v38  ;;  %v10821_v55 = vsub.f32 %v8607_v61, %v8789_v51 }
 0x780   : > { %v8986_v18 = vpop.eup %4803  ;;  %4823 = vpow2.f32 %v3690_v28  ;;  %v3721_v59 = vadd.f32 %v8935_v29, %v3720_v21  ;;  %v10819_v28 = vsub.f32 %v8597_v30, %v8789_v51  ;;  %v10820_v21 = vsub.f32 %v8601_v60, %v8789_v51 }
 0x781   : > { %10816 = vst [vmem:[#allocation151_spill] sm:$0xff] %v8986_v18  ;;  %v8992_v31 = vpop.eup %4805  ;;  %4825 = vpow2.f32 %v3694_v44  ;;  %v3710_v16 = vmul.f32 1.442695, %v10818_v41  ;;  %v3596_v38 = vmul.f32 1.442695, %v10821_v55  ;;  %v10822_v30 = vsub.f32 %v8615_v19, %v8789_v51 }
 0x782   : > { %v8997_v54 = vpop.eup %4807  ;;  %4827 = vpow2.f32 %v3698_v9  ;;  %v3722_v63 = vadd.f32 %v8942_v26, %v3721_v59  ;;  %v3588_v52 = vmul.f32 1.442695, %v10819_v28  ;;  %v3592_v44 = vmul.f32 1.442695, %v10820_v21 }
 0x783   : > { %v9003_v43 = vpop.eup %4809  ;;  %4829 = vpow2.f32 %v3702_v49  ;;  %v3600_v59 = vmul.f32 1.442695, %v10822_v30  ;;  %v10823_v49 = vsub.f32 %v8622_v6, %v8789_v51  ;;  %v10824_v60 = vsub.f32 %v8628_v4, %v8789_v51 }
 0x784   : > { %v9011_v25 = vpop.eup %4811  ;;  %4831 = vpow2.f32 %v3706_v23  ;;  %v3723_v9 = vadd.f32 %v8950_v34, %v3722_v63  ;;  %v10825_v23 = vsub.f32 %v8634_v8, %v8789_v51  ;;  %v10826_v63 = vsub.f32 %v8640_v37, %v8789_v51 }
 0x785   : > { %v3604_v41 = vmul.f32 1.442695, %v10823_v49  ;;  %v9020_v28 = vpop.eup %4813  ;;  %4833 = vpow2.f32 %v3710_v16  ;;  %v3608_v61 = vmul.f32 1.442695, %v10824_v60  ;;  %v10827_v16 = vsub.f32 %v8646_v20, %v8789_v51 }
 0x786   : > { %v3612_v21 = vmul.f32 1.442695, %v10825_v23  ;;  %v3616_v19 = vmul.f32 1.442695, %v10826_v63  ;;  %v9031_v55 = vpop.eup %4815  ;;  %v3724_v6 = vadd.f32 %v8956_v7, %v3723_v9  ;;  %4835 = vpow2.f32 %v3588_v52 }
 0x787   : > { %v3620_v30 = vmul.f32 1.442695, %v10827_v16  ;;  %v10828_v4 = vsub.f32 %v8652_v56, %v8789_v51  ;;  %v9040_v60 = vpop.eup %4817  ;;  %4837 = vpow2.f32 %v3592_v44 }
 0x788   : > { %v9048_v9 = vpop.eup %4819  ;;  %v3725_v20 = vadd.f32 %v8962_v33, %v3724_v6  ;;  %4839 = vpow2.f32 %v3596_v38 }
 0x789   : > { %v3624_v49 = vmul.f32 1.442695, %v10828_v4  ;;  %v9055_v23 = vpop.eup %4821  ;;  %4841 = vpow2.f32 %v3600_v59  ;;  %v10829_v59 = vsub.f32 %v8658_v58, %v8789_v51  ;;  %v10830_v4 = vsub.f32 %v10790_v17, %v8789_v51 }
 0x78a   : > { %v9063_v6 = vpop.eup %4823  ;;  %v3726_v38 = vadd.f32 %v8969_v3, %v3725_v20  ;;  %4843 = vpow2.f32 %v3604_v41 }
 0x78b   : > { %v9070_v56 = vpop.eup %4825  ;;  %4845 = vpow2.f32 %v3608_v61  ;;  %v3628_v44 = vmul.f32 1.442695, %v10829_v59  ;;  %v3632_v16 = vmul.f32 1.442695, %v10830_v4 }
 0x78c   : > { %v9078_v20 = vpop.eup %4827  ;;  %v3727_v41 = vadd.f32 %v8975_v27, %v3726_v38  ;;  %4847 = vpow2.f32 %v3612_v21  ;;  %v10831_v21 = vsub.f32 %v10791_v57, %v8789_v51  ;;  %v10836_v57 = vsub.f32 %v10796_v10, %v8789_v51 }
 0x78d   : > { %v9086_v52 = vpop.eup %4829  ;;  %4849 = vpow2.f32 %v3616_v19  ;;  %v10832_v19 = vsub.f32 %v10792_v14, %v8789_v51  ;;  %v10835_v14 = vsub.f32 %v10795_v35, %v8789_v51  ;;  %v10839_v10 = vsub.f32 %v10799_v50, %v8789_v51 }
 0x78e   : > { %v9091_v63 = vpop.eup %4831  ;;  %v3728_v37 = vadd.f32 %v8981_v48, %v3727_v41  ;;  %4851 = vpow2.f32 %v3620_v30  ;;  %v3636_v58 = vmul.f32 1.442695, %v10831_v21  ;;  %v10833_v30 = vsub.f32 %v10793_v39, %v8789_v51 }
 0x78f   : > { %v9099_v59 = vpop.eup %4833  ;;  %4853 = vpow2.f32 %v3624_v49  ;;  %v3640_v17 = vmul.f32 1.442695, %v10832_v19  ;;  %v10834_v49 = vsub.f32 %v10794_v15, %v8789_v51  ;;  %v3652_v19 = vmul.f32 1.442695, %v10835_v14 }
 0x790   : > { %v4836_v4 = vpop.eup %4835  ;;  %v3729_v61 = vadd.f32 %v8986_v18, %v3728_v37  ;;  %4855 = vpow2.f32 %v3628_v44  ;;  %v3644_v41 = vmul.f32 1.442695, %v10833_v30  ;;  %v10837_v15 = vsub.f32 %v10797_v32, %v8789_v51 }
 0x791   : > { %v4838_v21 = vpop.eup %4837  ;;  %4857 = vpow2.f32 %v3632_v16  ;;  %v3648_v38 = vmul.f32 1.442695, %v10834_v49  ;;  %v3656_v16 = vmul.f32 1.442695, %v10836_v57  ;;  %v3668_v57 = vmul.f32 1.442695, %v10839_v10 }
 0x792   : > { %v4840_v8 = vpop.eup %4839  ;;  %v3730_v37 = vadd.f32 %v8992_v31, %v3729_v61  ;;  %4859 = vpow2.f32 %v3636_v58  ;;  %v3751_v44 = vadd.f32 %v4838_v21, %v4836_v4  ;;  %v3789_v39 = vpack.c.bf16 %v4838_v21, %v4836_v4 }
 0x793   : > { %v4842_v30 = vpop.eup %4841  ;;  %4861 = vpow2.f32 %v3640_v17  ;;  %v3660_v49 = vmul.f32 1.442695, %v10837_v15  ;;  %v10838_v17 = vsub.f32 %v10798_v12, %v8789_v51  ;;  %v10840_v32 = vpack.c.bf16 %v8881_v46, %v8873_v42 }
 0x794   : > { %v4844_v18 = vpop.eup %4843  ;;  %v3731_v35 = vadd.f32 %v8997_v54, %v3730_v37  ;;  %4863 = vpow2.f32 %v3644_v41  ;;  %v3752_v14 = vadd.f32 %v4840_v8, %v3751_v44  ;;  %3820 = vmatprep.subr.bf16.mxu1 %v3789_v39  ;;  %v3791_v61 = vpack.c.bf16 %v4842_v30, %v4840_v8 }
 0x795   : > { %v4846_v58 = vpop.eup %4845  ;;  %4865 = vpow2.f32 %v3648_v38  ;;  %v3664_v4 = vmul.f32 1.442695, %v10838_v17  ;;  %3821 = vmatpush1.bf16.msra.mxu1 %v10840_v32  ;;  %v10841_v12 = vsub.f32 %v10800_v11, %v8789_v51  ;;  %v10842_v50 = vsub.f32 %v10801_v5, %v8789_v51  ;;  %v10847_v32 = vld [vmem:[#allocation132_spill] sm:$0xff] }
 0x796   : > { %v4848_v21 = vpop.eup %4847  ;;  %v3732_v41 = vadd.f32 %v9003_v43, %v3731_v35  ;;  %4867 = vpow2.f32 %v3652_v19  ;;  %v3753_v37 = vadd.f32 %v4842_v30, %v3752_v14  ;;  %3822 = vmatprep.subr.bf16.mxu1 %v3791_v61  ;;  %v3793_v8 = vpack.c.bf16 %v4846_v58, %v4844_v18 }
 0x797   : > { %v4850_v38 = vpop.eup %4849  ;;  %4869 = vpow2.f32 %v3656_v16  ;;  %v3672_v44 = vmul.f32 1.442695, %v10841_v12  ;;  %v3676_v39 = vmul.f32 1.442695, %v10842_v50  ;;  %v10843_v30 = vsub.f32 %v10802_v0, %v8789_v51 }
 0x798   : > { %v4852_v15 = vpop.eup %4851  ;;  %v3733_v42 = vadd.f32 %v9011_v25, %v3732_v41  ;;  %4871 = vpow2.f32 %v3660_v49  ;;  %v3754_v46 = vadd.f32 %v4844_v18, %v3753_v37  ;;  %v3795_v35 = vpack.c.bf16 %v4850_v38, %v4848_v21 }
 0x799   : > { %v4854_v19 = vpop.eup %4853  ;;  %4873 = vpow2.f32 %v3664_v4  ;;  %v3680_v16 = vmul.f32 1.442695, %v10843_v30  ;;  %v10844_v11 = vsub.f32 %v10803_v40, %v8789_v51  ;;  %v10845_v5 = vpack.c.bf16 %v8897_v47, %v8889_v53 }
 0x79a   : > { %v4856_v61 = vpop.eup %4855  ;;  %v3734_v17 = vadd.f32 %v9020_v28, %v3733_v42  ;;  %4875 = vpow2.f32 %v3668_v57  ;;  %v3755_v18 = vadd.f32 %v4846_v58, %v3754_v46  ;;  %v3797_v49 = vpack.c.bf16 %v4854_v19, %v4852_v15 }
 0x79b   : > { %v3684_v14 = vmul.f32 1.442695, %v10844_v11  ;;  %3823 = vmatpush1.bf16.msra.mxu1 %v10845_v5  ;;  %v4858_v4 = vpop.eup %4857  ;;  %4877 = vpow2.f32 %v3672_v44  ;;  %v10846_v0 = vsub.f32 %v10804_v2, %v8789_v51  ;;  %v10848_v40 = vsub.f32 %v10847_v32, %v8789_v51  ;;  %v10850_v44 = vld [vmem:[#allocation22_spill] sm:$0xff] }
 0x79c   : > { %3824 = vmatprep.subr.bf16.mxu1 %v3793_v8  ;;  %v4860_v37 = vpop.eup %4859  ;;  %v3735_v53 = vadd.f32 %v9031_v55, %v3734_v17  ;;  %4879 = vpow2.f32 %v3676_v39  ;;  %v3756_v47 = vadd.f32 %v4848_v21, %v3755_v18  ;;  %v3799_v12 = vpack.c.bf16 %v4858_v4, %v4856_v61 }
 0x79d   : > { %v3688_v10 = vmul.f32 1.442695, %v10846_v0  ;;  %v3692_v41 = vmul.f32 1.442695, %v10848_v40  ;;  %v4862_v57 = vpop.eup %4861  ;;  %4881 = vpow2.f32 %v3680_v16  ;;  %v10849_v58 = vsub.f32 %v10806_v22, %v8789_v51 }
 0x79e   : > { %v10851_v2 = vsub.f32 %v10850_v44, %v8789_v51  ;;  %v10852_v42 = vpack.c.bf16 %v8912_v1, %v8905_v45  ;;  %v4864_v46 = vpop.eup %4863  ;;  %v3736_v30 = vadd.f32 %v9040_v60, %v3735_v53  ;;  %4883 = vpow2.f32 %v3684_v14 }
 0x79f   : > { %v3696_v8 = vmul.f32 1.442695, %v10849_v58  ;;  %v3757_v21 = vadd.f32 %v4850_v38, %v3756_v47  ;;  %v3801_v39 = vpack.c.bf16 %v4862_v57, %v4860_v37  ;;  %v4866_v16 = vpop.eup %4865  ;;  %4885 = vpow2.f32 %v3688_v10  ;;  %v10855_v38 = vld [vmem:[#allocation36_spill] sm:$0xff] }
 0x7a0   : > { %v3700_v50 = vmul.f32 1.442695, %v10851_v2  ;;  %3825 = vmatpush1.bf16.msra.mxu1 %v10852_v42  ;;  %v10853_v22 = vsub.f32 %v10808_v24, %v8789_v51  ;;  %v10854_v5 = vsub.f32 %v10809_v13, %v8789_v51  ;;  %v4868_v18 = vpop.eup %4867  ;;  %v3737_v1 = vadd.f32 %v9048_v9, %v3736_v30 }
 0x7a1   : > { %3826 = vmatprep.subr.bf16.mxu1 %v3795_v35  ;;  %4887 = vpow2.f32 %v3692_v41  ;;  %v3758_v45 = vadd.f32 %v4852_v15, %v3757_v21  ;;  %v3803_v0 = vpack.c.bf16 %v4866_v16, %v4864_v46  ;;  %v4870_v14 = vpop.eup %4869  ;;  %v10856_v35 = vsub.f32 %v10855_v38, %v8789_v51 }
 0x7a2   : > { %v3704_v11 = vmul.f32 1.442695, %v10853_v22  ;;  %v3708_v17 = vmul.f32 1.442695, %v10854_v5  ;;  %4889 = vpow2.f32 %v3696_v8  ;;  %v10857_v24 = vpack.c.bf16 %v8927_v36, %v8920_v62  ;;  %v4872_v32 = vpop.eup %4871 }
 0x7a3   : > { %v3712_v10 = vmul.f32 1.442695, %v10856_v35  ;;  %v3738_v13 = vadd.f32 %v9055_v23, %v3737_v1  ;;  %4891 = vpow2.f32 %v3700_v50  ;;  %v3759_v40 = vadd.f32 %v4854_v19, %v3758_v45  ;;  %v4874_v41 = vpop.eup %4873 }
 0x7a4   : > { %3827 = vmatpush1.bf16.msra.mxu1 %v10857_v24  ;;  %v3805_v53 = vpack.c.bf16 %v4870_v14, %v4868_v18  ;;  %4893 = vpow2.f32 %v3704_v11  ;;  %v4876_v15 = vpop.eup %4875  ;;  %v3807_v51 = vpack.c.bf16 %v4874_v41, %v4872_v32  ;;  %v10858_v36 = vpack.c.bf16 %v8942_v26, %v8935_v29 }
 0x7a5   : > { %3828 = vmatprep.subr.bf16.mxu1 %v3797_v49  ;;  %v3739_v47 = vadd.f32 %v9063_v6, %v3738_v13  ;;  %4895 = vpow2.f32 %v3708_v17  ;;  %v3760_v58 = vadd.f32 %v4856_v61, %v3759_v40  ;;  %v4878_v8 = vpop.eup %4877  ;;  %v10859_v22 = vpack.c.bf16 %v8956_v7, %v8950_v34 }
 0x7a6   : > { %4897 = vpow2.f32 %v3712_v10  ;;  %v4880_v62 = vpop.eup %4879  ;;  %v3809_v49 = vpack.c.bf16 %v4878_v8, %v4876_v15  ;;  %v10861_v13 = vpack.c.bf16 %v8981_v48, %v8975_v27  ;;  %v10865_v27 = vpack.c.bf16 %v9020_v28, %v9011_v25 }
 0x7a7   : > { %v3740_v44 = vadd.f32 %v9070_v56, %v3739_v47  ;;  %v3761_v19 = vadd.f32 %v4858_v4, %v3760_v58  ;;  %v4882_v2 = vpop.eup %4881  ;;  %v10862_v47 = vld [vmem:[#allocation151_spill] sm:$0xff]  ;;  %v10868_v25 = vpack.c.bf16 %v9070_v56, %v9063_v6  ;;  %v10875_v56 = vld [vmem:[#allocation62_spill] sm:$0xff] }
 0x7a8   : > { %3829 = vmatpush1.bf16.msra.mxu1 %v10858_v36  ;;  %v4884_v50 = vpop.eup %4883  ;;  %v3811_v21 = vpack.c.bf16 %v4882_v2, %v4880_v62  ;;  %v10876_v6 = vld [vmem:[#allocation67_spill] sm:$0xff] }
 0x7a9   : > { %3830 = vmatprep.subr.bf16.mxu1 %v3799_v12  ;;  %v3741_v42 = vadd.f32 %v9078_v20, %v3740_v44  ;;  %v3762_v30 = vadd.f32 %v4860_v37, %v3761_v19  ;;  %v4886_v61 = vpop.eup %4885  ;;  %v10860_v37 = vpack.c.bf16 %v8969_v3, %v8962_v33  ;;  %v10863_v33 = vpack.c.bf16 %v8992_v31, %v10862_v47  ;;  %v10878_v44 = vld [vmem:[#allocation130_spill] sm:$0xff]  ;;  %v10881_v19 = vld [vmem:[#allocation77_spill] sm:$0xff] }
 0x7aa   : > { %v3813_v5 = vpack.c.bf16 %v4886_v61, %v4884_v50  ;;  %v10866_v31 = vpack.c.bf16 %v9040_v60, %v9031_v55  ;;  %v10869_v55 = vpack.c.bf16 %v9086_v52, %v9078_v20  ;;  %v10880_v20 = vld [vmem:[#allocation80_spill] sm:$0xff] }
 0x7ab   : > { %v4888_v11 = vpop.eup %4887  ;;  %v3742_v26 = vadd.f32 %v9086_v52, %v3741_v42  ;;  %v3763_v29 = vadd.f32 %v4862_v57, %v3762_v30  ;;  %v10879_v52 = vld [vmem:[#allocation72_spill] sm:$0xff]  ;;  %v10887_v42 = vld [vmem:[#allocation82_spill] sm:$0xff] }
 0x7ac   : > { %3831 = vmatpush1.bf16.msra.mxu1 %v10859_v22  ;;  %v4890_v4 = vpop.eup %4889  ;;  %v10888_v30 = vld [vmem:[#allocation90_spill] sm:$0xff] }
 0x7ad   : > { %3832 = vmatprep.subr.bf16.mxu1 %v3801_v39  ;;  %v4892_v12 = vpop.eup %4891  ;;  %v3743_v17 = vadd.f32 %v9091_v63, %v3742_v26  ;;  %v3764_v1 = vadd.f32 %v4864_v46, %v3763_v29  ;;  %v3815_v45 = vpack.c.bf16 %v4890_v4, %v4888_v11  ;;  %v10891_v22 = vld [vmem:[#allocation30_spill] sm:$0xff] }
 0x7ae   : > { %v4894_v38 = vpop.eup %4893 }
 0x7af   : > { %v4896_v35 = vpop.eup %4895  ;;  %v3744_v7 = vadd.f32 %v9099_v59, %v3743_v17  ;;  %v3765_v34 = vadd.f32 %v4866_v16, %v3764_v1  ;;  %v3817_v10 = vpack.c.bf16 %v4894_v38, %v4892_v12  ;;  %v10864_v16 = vpack.c.bf16 %v9003_v43, %v8997_v54 }
 0x7b0   : > { %3833 = vmatpush1.bf16.msra.mxu1 %v10860_v37  ;;  %v4898_v57 = vpop.eup %4897  ;;  %v10867_v54 = vpack.c.bf16 %v9055_v23, %v9048_v9  ;;  %v10870_v9 = vpack.c.bf16 %v9099_v59, %v9091_v63  ;;  %v10871_v23 = vld [vmem:[#allocation134_spill] sm:$0xff]  ;;  %v10883_v59 = vld [vmem:[#allocation73_spill] sm:$0xff] }
 0x7b1   : > { %3834 = vmatprep.subr.bf16.mxu1 %v3803_v0  ;;  %v3766_v39 = vadd.f32 %v4868_v18, %v3765_v34  ;;  %v3819_v24 = vpack.c.bf16 %v4898_v57, %v4896_v35  ;;  %v10882_v63 = vld [vmem:[#allocation70_spill] sm:$0xff]  ;;  %v3745_v26 = vrot.slane %v3744_v7, 4 }
 0x7b3   : > { %v3767_v46 = vadd.f32 %v4870_v14, %v3766_v39 }
 0x7b4   : > { %3835 = vmatpush1.bf16.msra.mxu1 %v10861_v13 }
 0x7b5   : > { %3836 = vmatprep.subr.bf16.mxu1 %v3805_v53  ;;  %v3768_v40 = vadd.f32 %v4872_v32, %v3767_v46 }
 0x7b7   : > { %v3769_v3 = vadd.f32 %v4874_v41, %v3768_v40 }
 0x7b8   : > { %3837 = vmatpush1.bf16.msra.mxu1 %v10863_v33 }
 0x7b9   : > { %3838 = vmatprep.subr.bf16.mxu1 %v3807_v51  ;;  %v3770_v58 = vadd.f32 %v4876_v15, %v3769_v3  ;;  %v10872_v51 = vld [vmem:[#allocation52_spill] sm:$0xff] }
 0x7bb   : > { %v3771_v18 = vadd.f32 %v4878_v8, %v3770_v58  ;;  %v10873_v8 = vld [vmem:[#allocation155_spill] sm:$0xff] }
 0x7bc   : > { %3839 = vmatpush1.bf16.msra.mxu1 %v10864_v16  ;;  %v10874_v36 = vpack.c.bf16 %v10872_v51, %v10873_v8  ;;  %v3892_v51 = vld [vmem:[%s9318_s3 + $0x8] sm:$0xff]  ;;  %v3893_v8 = vld [vmem:[%s9318_s3 + $0x10] sm:$0xff] }
 0x7bd   : > { %3840 = vmatprep.subr.bf16.mxu1 %v3809_v49  ;;  %v3772_v0 = vadd.f32 %v4880_v62, %v3771_v18  ;;  %v10877_v62 = vpack.c.bf16 %v10875_v56, %v10876_v6  ;;  %v10884_v49 = vpack.c.bf16 %v10882_v63, %v10883_v59  ;;  %v3902_v56 = vpop.permute.xlu0 %3901 }
 0x7bf   : > { %v3773_v48 = vadd.f32 %v4882_v2, %v3772_v0  ;;  %v10885_v2 = vld [vmem:[#allocation83_spill] sm:$0xff] }
 0x7c0   : > { %3841 = vmatpush1.bf16.msra.mxu1 %v10865_v27 }
 0x7c1   : > { %3842 = vmatprep.subr.bf16.mxu1 %v3811_v21  ;;  %v3774_v14 = vadd.f32 %v4884_v50, %v3773_v48  ;;  %v10886_v50 = vmov 0.0   ;;  %v10889_v21 = vld [vmem:[#allocation148_spill] sm:$0xff] }
 0x7c3   : > { %v3775_v32 = vadd.f32 %v4886_v61, %v3774_v14  ;;  %v10890_v61 = vld [vmem:[#allocation170_spill] sm:$0xff] }
 0x7c4   : > { %3843 = vmatpush1.bf16.msra.mxu1 %v10866_v31 }
 0x7c5   : > { %3844 = vmatprep.subr.bf16.mxu1 %v3813_v5  ;;  %v3776_v53 = vadd.f32 %v4888_v11, %v3775_v32  ;;  %v10892_v11 = vld [vmem:[#allocation143_spill] sm:$0xff]  ;;  %v3746_v5 = vadd.f32 %v3745_v26, %v3744_v7 }
 0x7c7   : > { %v3777_v43 = vadd.f32 %v4890_v4, %v3776_v53 }
 0x7c8   : > { %3845 = vmatpush1.bf16.msra.mxu1 %v10867_v54 }
 0x7c9   : > { %3846 = vmatprep.subr.bf16.mxu1 %v3815_v45  ;;  %v3778_v41 = vadd.f32 %v4892_v12, %v3777_v43  ;;  %v3747_v12 = vrot.slane %v3746_v5, 2 }
 0x7cb   : > { %v3779_v28 = vadd.f32 %v4894_v38, %v3778_v41  ;;  %v3748_v1 = vadd.f32 %v3747_v12, %v3746_v5 }
 0x7cc   : > { %3847 = vmatpush1.bf16.msra.mxu1 %v10868_v25 }
 0x7cd   : > { %3848 = vmatprep.subr.bf16.mxu1 %v3817_v10  ;;  %v3780_v15 = vadd.f32 %v4896_v35, %v3779_v28  ;;  %v3749_v38 = vrot.slane %v3748_v1, 1 }
 0x7cf   : > { %v3781_v60 = vadd.f32 %v4898_v57, %v3780_v15  ;;  %v3750_v35 = vadd.f32 %v3749_v38, %v3748_v1 }
 0x7d0   : > { %3849 = vmatpush1.bf16.msra.mxu1 %v10869_v55 }
 0x7d1   : > { %3850 = vmatprep.subr.bf16.mxu1 %v3819_v24  ;;  %v3782_v29 = vrot.slane %v3781_v60, 4  ;;  %4899 = vrcp.f32 %v3750_v35 }
 0x7d3   : > { %v3783_v4 = vadd.f32 %v3782_v29, %v3781_v60 }
 0x7d4   : > { %3851 = vmatpush1.bf16.msra.mxu1 %v10870_v9 }
 0x7d5   : > { %4211 = vmatprep.subr.bf16.mxu1 %v10871_v23  ;;  %v3784_v17 = vrot.slane %v3783_v4, 2  ;;  %v3891_v23 = vld [vmem:[%s9318_s3] sm:$0xff] }
 0x7d7   : > { %3853 = vmatmul.mubr.bf16.vlgmr.msra.gmra.mrb[148].mxu1 %v10874_v36  ;;  %v3785_v45 = vadd.f32 %v3784_v17, %v3783_v4  ;;  %v3894_v36 = vld [vmem:[%s9318_s3 + $0x18] sm:$0xff] }
 0x7d8   : > { %3862 = vmatprep.mubr.bf16.mxu1 %v10877_v62  ;;  %4213 = vmatpush1.bf16.msra.mxu1 %v10878_v44 }
 0x7d9   : > { %4215 = vmatprep.subr.bf16.mxu1 %v10879_v52  ;;  %v3786_v37 = vrot.slane %v3785_v45, 1 }
 0x7db   : > { %v3787_v34 = vadd.f32 %v3786_v37, %v3785_v45  ;;  %v4900_v10 = vpop.eup %4899 }
 0x7dc   : > { %4217 = vmatpush1.bf16.msra.mxu1 %v10880_v20  ;;  %v3907_v20 = vpop.permute.xlu1 %3906 }
 0x7dd   : > { %4219 = vmatprep.subr.bf16.mxu1 %v10881_v19  ;;  %4901 = vrcp.f32 %v3787_v34 }
 0x7df   : > { %3863 = vmatmul.mubr.bf16.gmra.mrb[152].mxu1 %v10884_v49 }
 0x7e0   : > { %4221 = vmatpush1.bf16.msra.mxu1 %v10885_v2  ;;  %3983 = vmatprep.mubr.f32.mxu1 %v10886_v50  ;;  %v3912_v2 = vpop.permute.xlu0 %3911 }
 0x7e1   : > { %4223 = vmatprep.subr.bf16.mxu1 %v10887_v42 }
 0x7e4   : > { %4225 = vmatpush1.bf16.msra.mxu1 %v10888_v30 }
 0x7e5   : > { %4227 = vmatprep.subr.bf16.mxu1 %v10889_v21 }
 0x7e7   : > { %v4902_v39 = vpop.eup %4901 }
 0x7e8   : > { %4229 = vmatpush1.bf16.msra.mxu1 %v10890_v61  ;;  %v3917_v61 = vpop.permute.xlu1 %3916 }
 0x7e9   : > { %4231 = vmatprep.subr.bf16.mxu1 %v10891_v22 }
 0x7ec   : > { %4233 = vmatpush1.bf16.msra.mxu1 %v10892_v11 }
 0x8aa   : > { %v3854_v57 = vpop.f32.mrb[148].mxu1 }
 0x8ab   : > { %v3875_v24 = vmul.f32 %v4900_v10, %v3854_v57  ;;  %v3856_v13 = vpop.f32.mrb[149].mxu1 }
 0x8ac   : > { %v3876_v46 = vmul.f32 %v4902_v39, %v3856_v13  ;;  %v3858_v40 = vpop.f32.mrb[150].mxu1 }
 0x8ad   : > { %v3877_v47 = vmul.f32 %v4900_v10, %v3858_v40  ;;  %v3860_v7 = vpop.f32.mrb[151].mxu1  ;;  %v3883_v3 = vmax.f32 %v3875_v24, 0.0 }
 0x8ae   : > { %v3878_v33 = vmul.f32 %v4902_v39, %v3860_v7  ;;  %v3884_v16 = vmax.f32 %v3876_v46, 0.0 }
 0x8af   : > { %v3885_v58 = vmax.f32 %v3877_v47, 0.0 }
 0x8b0   : > { %v3886_v18 = vmax.f32 %v3878_v33, 0.0 }
 0x8b1   : > { %v4236_v0 = vpack.c.bf16 %v3885_v58, %v3883_v3 }
 0x8b2   : > { %v4234_v27 = vpack.c.bf16 %v3886_v18, %v3884_v16  ;;  %v3864_v48 = vpop.f32.mrb[152].mxu1 }
 0x8b3   : > { %v3879_v14 = vmul.f32 %v4900_v10, %v3864_v48  ;;  %v3866_v31 = vpop.f32.mrb[153].mxu1 }
 0x8b4   : > { %v3880_v32 = vmul.f32 %v4902_v39, %v3866_v31  ;;  %v3868_v53 = vpop.f32.mrb[154].mxu1  ;;  %4235 = vmatprep.subr.bf16.mxu1 %v4234_v27 }
 0x8b5   : > { %v3881_v54 = vmul.f32 %v4900_v10, %v3868_v53  ;;  %v3870_v43 = vpop.f32.mrb[155].mxu1  ;;  %4237 = vmatpush1.bf16.msra.mxu1 %v4236_v0  ;;  %v3887_v25 = vmax.f32 %v3879_v14, 0.0 }
 0x8b6   : > { %v3882_v41 = vmul.f32 %v4902_v39, %v3870_v43  ;;  %v3888_v15 = vmax.f32 %v3880_v32, 0.0 }
 0x8b7   : > { %v3889_v28 = vmax.f32 %v3881_v54, 0.0 }
 0x8b8   : > { %v3890_v55 = vmax.f32 %v3882_v41, 0.0 }
 0x8b9   : > { %v4240_v60 = vpack.c.bf16 %v3889_v28, %v3887_v25 }
 0x8ba   : > { %v4238_v9 = vpack.c.bf16 %v3890_v55, %v3888_v15 }
 0x8bc   : > { %4239 = vmatprep.subr.bf16.mxu1 %v4238_v9 }
 0x8bd   : > { %4241 = vmatpush1.bf16.msra.mxu1 %v4240_v60 }
 0x8c0   : > { %3984 = vmatmul.mubr.f32.vlgmr.msra.gmra.mrb[156].mxu1 %v3891_v23 }
 0x8c1   : > { %3989 = vmatprep.mubr.f32.mxu1 %v10886_v50 }
 0x8c4   : > { %3990 = vmatmul.mubr.f32.gmra.mrb[158].mxu1 %v3892_v51 }
 0x8c5   : > { %3995 = vmatprep.mubr.f32.mxu1 %v10886_v50 }
 0x8c8   : > { %3996 = vmatmul.mubr.f32.gmra.mrb[160].mxu1 %v3893_v8 }
 0x8c9   : > { %4001 = vmatprep.mubr.f32.mxu1 %v10886_v50 }
 0x8cc   : > { %4002 = vmatmul.mubr.f32.gmra.mrb[162].mxu1 %v3894_v36 }
 0x993   : > { %v3985_v6 = vpop.f32.mrb[156].mxu1 }
 0x994   : > { %v3986_v62 = vadd.f32 %v3985_v6, %v3902_v56  ;;  %v3987_v44 = vpop.f32.mrb[157].mxu1 }
 0x995   : > { %v3988_v52 = vadd.f32 %v3987_v44, %v3902_v56 }
 0x996   : > { %4008 = vst [vmem:[%s217_s12] sm:$0xff] %v3986_v62 }
 0x997   : > { %4009 = vst [vmem:[%s217_s12 + $0x8] sm:$0xff] %v3988_v52  ;;  %v3991_v19 = vpop.f32.mrb[158].mxu1 }
 0x998   : > { %v3992_v63 = vadd.f32 %v3991_v19, %v3907_v20  ;;  %v3993_v59 = vpop.f32.mrb[159].mxu1 }
 0x999   : > { %v3994_v49 = vadd.f32 %v3993_v59, %v3907_v20 }
 0x99a   : > { %4010 = vst [vmem:[%s217_s12 + $0x10] sm:$0xff] %v3992_v63 }
 0x99b   : > { %4011 = vst [vmem:[%s217_s12 + $0x18] sm:$0xff] %v3994_v49  ;;  %v3997_v50 = vpop.f32.mrb[160].mxu1 }
 0x99c   : > { %v3998_v42 = vadd.f32 %v3997_v50, %v3912_v2  ;;  %v3999_v30 = vpop.f32.mrb[161].mxu1 }
 0x99d   : > { %v4000_v21 = vadd.f32 %v3999_v30, %v3912_v2 }
 0x99e   : > { %4012 = vst [vmem:[%s217_s12 + $0x20] sm:$0xff] %v3998_v42 }
 0x99f   : > { %4013 = vst [vmem:[%s217_s12 + $0x28] sm:$0xff] %v4000_v21  ;;  %v4003_v22 = vpop.f32.mrb[162].mxu1 }
 0x9a0   : > { %v4004_v11 = vadd.f32 %v4003_v22, %v3917_v61  ;;  %v4005_v26 = vpop.f32.mrb[163].mxu1 }
 0x9a1   : > { %v4006_v29 = vadd.f32 %v4005_v26, %v3917_v61 }
 0x9a2   : > { %4014 = vst [vmem:[%s217_s12 + $0x30] sm:$0xff] %v4004_v11 }
 0x9a3   : > { %4015 = vst [vmem:[%s217_s12 + $0x38] sm:$0xff] %v4006_v29 }
 0x9a4   : > { %4916 = shalt.err (!%p4913_p3)
}
 0x9a5   : > { %s4917_s6 = scalar_lea.hbm %s9268_s17, 1024  ;;  %s4921_s9 = scalar_lea.hbm %s9320_s5, 2048 }
 0x9a6   : > { %p4918_p4 = scmp.ne.s32.totalorder %s9268_s17, %s4917_s6  ;;  %p4922_p9 = scmp.lt.u32.totalorder %s9268_s17, %s9320_s5 }
 0x9a7   : > { %p4923_p10 = scmp.lt.u32.totalorder %s4921_s9, %s4917_s6  ;;  %p4925_p12 = scmp.lt.u32.totalorder %s4917_s6, %s9268_s17 }
 0x9a8   : > { %p4919_p7 = pnand %p4918_p4, %p5040_p5 }
 0x9a9   : > { %p4924_p11 = por %p4923_p10, %p4922_p9 }
 0x9aa   : > { %p4920_p8 = pneg %p4919_p7 }
 0x9ab   : > { %p4926_p13 = por %p4925_p12, %p4924_p11 }
 0x9ad   : > { %p4927_p0 = pnand %p4926_p13, %p4920_p8 }
 0x9af   : > { %4930 = shalt.err (!%p4927_p0)
}
 0x9b0   : > { %s4970_s12 = smov 256   ;;  %s4971_s13 = smov 16  }
 0x9b1   : > { %4246 = dma.vmem_to_hbm [thread:$0]  (%p5040_p5), %s9270_s14, 1024, %s9268_s17, %s9274_s22, %s4970_s12, %s4970_s12, %s4971_s13  }
 0x9b2 PF: > { %p4252_p1 = scmp.ge.s32.totalorder %s4965_s21, 2  ;;  %s4045_s15 = sand.u32 1, %s4953_s18  }
 0x9b3   : > { %s4046_s16 = scalar_lea.sflag [#allocation3], %s4045_s15 }
 0x9b4   : > { %p4249_p2 = pnand %p4252_p1, %p5044_p6 }
 0x9b6   : > { %4948 = dma.done.wait (!%p4249_p2), %s4046_s16, 1024  }
 0x9b7   : > { %4950 = vsyncadd (!%p4249_p2), %s4046_s16, 4294966272  ;;  %p15_p3 = scmp.ge.s32.totalorder %s5027_s24, 4   ;;  %s10893_s18 = smov %s4957_s19 }
 0x9b8   : > { %s10894_s19 = smov %s4961_s20  ;;  %s10895_s20 = smov %s5038_s27 }
 0x9b9   : > { %s10896_s21 = smov %s5027_s24  ;;  %17 = sbr.rel (!%p15_p3) target bundleno = 3 (0x3), region = 75 }
 0x9c0   :  { %4051 = vsyncpa [#allocation3], 1 }
 0x9c1   :  { %4053 = vsyncpa [#allocation3 + $0x1], 1 }

</bundles_post_ra>
